<compile_context>
chip_gen: v7x
topology: tpu7x:2x2x1
jax: 0.10.0
libtpu: 0.0.40
codegen_flags: <defaults>
</compile_context>

<pallas_src>
import functools
import math

import jax
import jax.numpy as jnp
from jax import lax
from jax.experimental import pallas as pl
from jax.experimental.pallas import tpu as pltpu


_WEIGHT_KEYS = (
    "sa_wqkv", "sa_bqkv", "sa_wo", "sa_bo", "ln1_g", "ln1_b",
    "ca_wq", "ca_bq", "ca_wkv", "ca_bkv", "ca_wo", "ca_bo", "ln2_g", "ln2_b",
    "w1", "b1", "w2", "b2", "ln3_g", "ln3_b",
)


# --------------------------- fused whole-forward kernel ----------------------

def decoder_forward_kernel(
    x_ref, ctx_ref,
    sa_wqkv, sa_bqkv, sa_wo, sa_bo, ln1_g, ln1_b,
    ca_wq, ca_bq, ca_wkv, ca_bkv, ca_wo, ca_bo, ln2_g, ln2_b,
    w1, b1, w2, b2, ln3_g, ln3_b,
    o_ref, *, n_heads, eps):
    B, T, C = x_ref.shape
    S = ctx_ref.shape[1]
    L = sa_wqkv.shape[0]
    H = n_heads
    D = C // H
    scale = 1.0 / math.sqrt(D)
    f32 = jnp.float32

    # Flatten batch*time rows once; every projection / FFN / LN works on the
    # (B*T, C) slab (doubles sublane fill vs. a per-batch grid step).
    xf = x_ref[...].reshape(B * T, C).astype(f32)
    ctxf = ctx_ref[...].reshape(B * S, C).astype(f32)

    # Causal mask built ONCE per kernel (hoisted out of layers and heads).
    row = lax.broadcasted_iota(jnp.int32, (T, T), 0)
    col = lax.broadcasted_iota(jnp.int32, (T, T), 1)
    causal_ok = col <= row
    neg = f32(-1e30)   # finite large-neg: exp underflows to 0, no NaN rows

    def layernorm(y, g, b):
        mu = jnp.mean(y, axis=-1, keepdims=True)
        var = jnp.mean(jnp.square(y - mu), axis=-1, keepdims=True)
        return (y - mu) * lax.rsqrt(var + eps) * g + b

    def gelu(v):
        # tanh-approx GELU: transcendental goes to the (otherwise idle) EUP.
        # TODO(synk): PyTorch F.gelu default is the exact-erf form; tanh form
        #   differs by ~1e-3 in the tails.
        c = 0.7978845608028654  # sqrt(2/pi)
        return 0.5 * v * (1.0 + jnp.tanh(c * (v + 0.044715 * v * v * v)))

    def mha(q, k, v, n_q, n_kv, causal):
        """q: (B*n_q, C), k/v: (B*n_kv, C).  One head-batched dot_general pair
        per batch element; mask + softmax vectorized over all heads."""
        q = q.reshape(B, n_q, C)
        k = k.reshape(B, n_kv, C)
        v = v.reshape(B, n_kv, C)
        outs = []
        for b in range(B):   # B is tiny & static; scores must stay per-batch
            # Build (H, rows, D) head-batched operands from static lane slices.
            q3 = jnp.stack([q[b, :, h * D:(h + 1) * D] for h in range(H)], axis=0)
            k3 = jnp.stack([k[b, :, h * D:(h + 1) * D] for h in range(H)], axis=0)
            v3 = jnp.stack([v[b, :, h * D:(h + 1) * D] for h in range(H)], axis=0)
            # Scores for all heads in one batched dot_general: (H, n_q, n_kv).
            s = lax.dot_general(q3, k3, (((2,), (2,)), ((0,), (0,))),
                                preferred_element_type=f32) * scale
            if causal:
                s = jnp.where(causal_ok, s, neg)     # (T,T) broadcast over H
            m = jnp.max(s, axis=-1, keepdims=True)
            p = jnp.exp(s - m)
            p = p / jnp.sum(p, axis=-1, keepdims=True)   # exact divide
            # PV for all heads in one batched dot_general: (H, n_q, D).
            o3 = lax.dot_general(p, v3, (((2,), (1,)), ((0,), (0,))),
                                 preferred_element_type=f32)
            outs.append(jnp.concatenate([o3[h] for h in range(H)], axis=-1))
        return jnp.concatenate(outs, axis=0)          # (B*n_q, C)

    # Static loop over layers: all weights already VMEM-resident, the
    # activation slab never leaves VMEM between layers.
    for l in range(L):
        # ---- causal self-attention -> add & LN1 (post-norm) ----------------
        qkv = jnp.dot(xf, sa_wqkv[l], preferred_element_type=f32) + sa_bqkv[l]
        att = mha(qkv[:, :C], qkv[:, C:2 * C], qkv[:, 2 * C:], T, T, True)
        att = jnp.dot(att, sa_wo[l], preferred_element_type=f32) + sa_bo[l]
        xf = layernorm(xf + att, ln1_g[l], ln1_b[l])

        # ---- cross-attention -> add & LN2 -----------------------------------
        q = jnp.dot(xf, ca_wq[l], preferred_element_type=f32) + ca_bq[l]
        kv = jnp.dot(ctxf, ca_wkv[l], preferred_element_type=f32) + ca_bkv[l]
        att = mha(q, kv[:, :C], kv[:, C:], T, S, False)
        att = jnp.dot(att, ca_wo[l], preferred_element_type=f32) + ca_bo[l]
        xf = layernorm(xf + att, ln2_g[l], ln2_b[l])

        # ---- FFN -> add & LN3 ------------------------------------------------
        hdn = gelu(jnp.dot(xf, w1[l], preferred_element_type=f32) + b1[l])
        ff = jnp.dot(hdn, w2[l], preferred_element_type=f32) + b2[l]
        xf = layernorm(xf + ff, ln3_g[l], ln3_b[l])

    # Output last dim C=32 < 128 lanes -> masked stores; acceptable (real model
    # uses C=512), so no extra relayout is done here.
    o_ref[...] = xf.reshape(B, T, C).astype(o_ref.dtype)


# ----------------------------- wrapper (JAX) ----------------------------------

def transformer_decoder(x, context, stacked_params, n_heads, eps=1e-5):
    """Entire L-layer decoder forward in ONE pallas_call (no grid)."""
    B, T, C = x.shape
    weights = [stacked_params[k] for k in _WEIGHT_KEYS]   # each (L, ...)
    vmem_spec = pl.BlockSpec(memory_space=pltpu.MemorySpace.VMEM)
    return pl.pallas_call(
        functools.partial(decoder_forward_kernel, n_heads=n_heads, eps=eps),
        out_shape=jax.ShapeDtypeStruct((B, T, C), x.dtype),
        in_specs=[vmem_spec] * (2 + len(weights)),
        out_specs=vmem_spec,
    )(x, context, *weights)


# ----------------------------- parameter init ---------------------------------

def init_linear_params(key, cin, cout):
    # mimics nn.Linear default init; weight stored (in, out) for x @ W
    kw, kb = jax.random.split(key)
    bound = 1.0 / math.sqrt(cin)
    w = jax.random.uniform(kw, (cin, cout), jnp.float32, -bound, bound)
    b = jax.random.uniform(kb, (cout,), jnp.float32, -bound, bound)
    return w, b


def init_layer_params(key, C):
    ks = jax.random.split(key, 10)
    wq, bq = init_linear_params(ks[0], C, C)
    wk, bk = init_linear_params(ks[1], C, C)
    wv, bv = init_linear_params(ks[2], C, C)
    wo_s, bo_s = init_linear_params(ks[3], C, C)
    cwq, cbq = init_linear_params(ks[4], C, C)
    cwk, cbk = init_linear_params(ks[5], C, C)
    cwv, cbv = init_linear_params(ks[6], C, C)
    wo_c, bo_c = init_linear_params(ks[7], C, C)
    w1, b1 = init_linear_params(ks[8], C, 4 * C)
    w2, b2 = init_linear_params(ks[9], 4 * C, C)
    row = lambda v: v.reshape(1, -1)
    ones = jnp.ones((1, C), jnp.float32)
    zeros = jnp.zeros((1, C), jnp.float32)
    return dict(
        sa_wqkv=jnp.concatenate([wq, wk, wv], axis=1),
        sa_bqkv=row(jnp.concatenate([bq, bk, bv])),
        sa_wo=wo_s, sa_bo=row(bo_s), ln1_g=ones, ln1_b=zeros,
        ca_wq=cwq, ca_bq=row(cbq),
        ca_wkv=jnp.concatenate([cwk, cwv], axis=1),
        ca_bkv=row(jnp.concatenate([cbk, cbv])),
        ca_wo=wo_c, ca_bo=row(bo_c), ln2_g=ones, ln2_b=zeros,
        w1=w1, b1=row(b1), w2=w2, b2=row(b2), ln3_g=ones, ln3_b=zeros,
    )


def stack_params(per_layer):
    # stack each weight across layers -> leading L dim, passed to the kernel once
    return {k: jnp.stack([p[k] for p in per_layer], axis=0) for k in _WEIGHT_KEYS}


# ---------------------------------- main ---------------------------------------

if __name__ == "__main__":
    B, T, S, C, H, L = 2, 8, 8, 32, 4, 2   # batch, tgt seq, src seq, embed, heads, layers
    key = jax.random.PRNGKey(0)
    kx, kc, kp = jax.random.split(key, 3)
    x = jax.random.normal(kx, (B, T, C), jnp.float32)
    context = jax.random.normal(kc, (B, S, C), jnp.float32)
    params = stack_params([init_layer_params(k, C) for k in jax.random.split(kp, L)])

    fwd = jax.jit(functools.partial(transformer_decoder, n_heads=H))
    out = fwd(x, context, params)
    jax.block_until_ready(out)
    assert out.shape == (B, T, C) and out.dtype == jnp.float32
    assert bool(jnp.all(jnp.isfinite(out)))
    # TODO(synk): dropout is identity (eval mode); train-mode dropout would need pltpu PRNG.
    print("KERNEL_OK")
</pallas_src>

<mosaic_0001>
module attributes {stable_mosaic.version = 11 : i64} {
  func.func @decoder_forward_kernel(%arg0: memref<2x8x32xf32, #tpu.memory_space<vmem>>, %arg1: memref<2x8x32xf32, #tpu.memory_space<vmem>>, %arg2: memref<2x32x96xf32, #tpu.memory_space<vmem>>, %arg3: memref<2x1x96xf32, #tpu.memory_space<vmem>>, %arg4: memref<2x32x32xf32, #tpu.memory_space<vmem>>, %arg5: memref<2x1x32xf32, #tpu.memory_space<vmem>>, %arg6: memref<2x1x32xf32, #tpu.memory_space<vmem>>, %arg7: memref<2x1x32xf32, #tpu.memory_space<vmem>>, %arg8: memref<2x32x32xf32, #tpu.memory_space<vmem>>, %arg9: memref<2x1x32xf32, #tpu.memory_space<vmem>>, %arg10: memref<2x32x64xf32, #tpu.memory_space<vmem>>, %arg11: memref<2x1x64xf32, #tpu.memory_space<vmem>>, %arg12: memref<2x32x32xf32, #tpu.memory_space<vmem>>, %arg13: memref<2x1x32xf32, #tpu.memory_space<vmem>>, %arg14: memref<2x1x32xf32, #tpu.memory_space<vmem>>, %arg15: memref<2x1x32xf32, #tpu.memory_space<vmem>>, %arg16: memref<2x32x128xf32, #tpu.memory_space<vmem>>, %arg17: memref<2x1x128xf32, #tpu.memory_space<vmem>>, %arg18: memref<2x128x32xf32, #tpu.memory_space<vmem>>, %arg19: memref<2x1x32xf32, #tpu.memory_space<vmem>>, %arg20: memref<2x1x32xf32, #tpu.memory_space<vmem>>, %arg21: memref<2x1x32xf32, #tpu.memory_space<vmem>>, %arg22: memref<2x8x32xf32, #tpu.memory_space<vmem>>) attributes {dimension_semantics = [], scalar_prefetch = 0 : i64, scratch_operands = 0 : i64, tpu.core_type = #tpu.core_type<tc>} {
    %c0 = arith.constant 0 : index
    %c0_0 = arith.constant 0 : index
    %c0_1 = arith.constant 0 : index
    %0 = vector.load %arg0[%c0, %c0_0, %c0_1] : memref<2x8x32xf32, #tpu.memory_space<vmem>>, vector<2x8x32xf32>
    %1 = vector.shape_cast %0 : vector<2x8x32xf32> to vector<16x32xf32>
    %c0_2 = arith.constant 0 : index
    %c0_3 = arith.constant 0 : index
    %c0_4 = arith.constant 0 : index
    %2 = vector.load %arg1[%c0_2, %c0_3, %c0_4] : memref<2x8x32xf32, #tpu.memory_space<vmem>>, vector<2x8x32xf32>
    %3 = vector.shape_cast %2 : vector<2x8x32xf32> to vector<16x32xf32>
    %4 = tpu.iota {dimensions = array<i32: 0>} : vector<8x8xi32>
    %5 = tpu.iota {dimensions = array<i32: 1>} : vector<8x8xi32>
    %6 = arith.cmpi sle, %5, %4 : vector<8x8xi32>
    %c0_5 = arith.constant 0 : index
    %c0_6 = arith.constant 0 : index
    %c0_7 = arith.constant 0 : index
    %7 = vector.load %arg2[%c0_5, %c0_6, %c0_7] : memref<2x32x96xf32, #tpu.memory_space<vmem>>, vector<1x32x96xf32>
    %8 = vector.shape_cast %7 : vector<1x32x96xf32> to vector<32x96xf32>
    %cst = arith.constant dense<0.000000e+00> : vector<16x96xf32>
    %9 = tpu.matmul %1, %8, %cst {dimension_numbers = #tpu.dot_dimension_numbers<[1], [0], [0], [1], [0, 0, 1, 1], [], []>} : vector<16x32xf32>, vector<32x96xf32>, vector<16x96xf32> -> vector<16x96xf32>
    %c0_8 = arith.constant 0 : index
    %c0_9 = arith.constant 0 : index
    %c0_10 = arith.constant 0 : index
    %10 = vector.load %arg3[%c0_8, %c0_9, %c0_10] : memref<2x1x96xf32, #tpu.memory_space<vmem>>, vector<1x1x96xf32>
    %11 = vector.shape_cast %10 : vector<1x1x96xf32> to vector<1x96xf32>
    %12 = vector.broadcast %11 : vector<1x96xf32> to vector<16x96xf32>
    %13 = arith.addf %9, %12 : vector<16x96xf32>
    %14 = vector.extract_strided_slice %13 {offsets = [0, 0], sizes = [16, 32], strides = [1, 1]} : vector<16x96xf32> to vector<16x32xf32>
    %15 = vector.extract_strided_slice %13 {offsets = [0, 32], sizes = [16, 32], strides = [1, 1]} : vector<16x96xf32> to vector<16x32xf32>
    %16 = vector.extract_strided_slice %13 {offsets = [0, 64], sizes = [16, 32], strides = [1, 1]} : vector<16x96xf32> to vector<16x32xf32>
    %17 = vector.shape_cast %14 : vector<16x32xf32> to vector<2x8x32xf32>
    %18 = vector.shape_cast %15 : vector<16x32xf32> to vector<2x8x32xf32>
    %19 = vector.shape_cast %16 : vector<16x32xf32> to vector<2x8x32xf32>
    %20 = vector.extract_strided_slice %17 {offsets = [0, 0, 0], sizes = [1, 8, 8], strides = [1, 1, 1]} : vector<2x8x32xf32> to vector<1x8x8xf32>
    %21 = vector.shape_cast %20 : vector<1x8x8xf32> to vector<8x8xf32>
    %22 = vector.extract_strided_slice %17 {offsets = [0, 0, 8], sizes = [1, 8, 8], strides = [1, 1, 1]} : vector<2x8x32xf32> to vector<1x8x8xf32>
    %23 = vector.shape_cast %22 : vector<1x8x8xf32> to vector<8x8xf32>
    %24 = vector.extract_strided_slice %17 {offsets = [0, 0, 16], sizes = [1, 8, 8], strides = [1, 1, 1]} : vector<2x8x32xf32> to vector<1x8x8xf32>
    %25 = vector.shape_cast %24 : vector<1x8x8xf32> to vector<8x8xf32>
    %26 = vector.extract_strided_slice %17 {offsets = [0, 0, 24], sizes = [1, 8, 8], strides = [1, 1, 1]} : vector<2x8x32xf32> to vector<1x8x8xf32>
    %27 = vector.shape_cast %26 : vector<1x8x8xf32> to vector<8x8xf32>
    %28 = vector.shape_cast %21 : vector<8x8xf32> to vector<1x8x8xf32>
    %29 = vector.shape_cast %23 : vector<8x8xf32> to vector<1x8x8xf32>
    %30 = vector.shape_cast %25 : vector<8x8xf32> to vector<1x8x8xf32>
    %31 = vector.shape_cast %27 : vector<8x8xf32> to vector<1x8x8xf32>
    %32 = tpu.concatenate %28, %29, %30, %31 in 0 : vector<1x8x8xf32>, vector<1x8x8xf32>, vector<1x8x8xf32>, vector<1x8x8xf32> -> vector<4x8x8xf32>
    %33 = vector.extract_strided_slice %18 {offsets = [0, 0, 0], sizes = [1, 8, 8], strides = [1, 1, 1]} : vector<2x8x32xf32> to vector<1x8x8xf32>
    %34 = vector.shape_cast %33 : vector<1x8x8xf32> to vector<8x8xf32>
    %35 = vector.extract_strided_slice %18 {offsets = [0, 0, 8], sizes = [1, 8, 8], strides = [1, 1, 1]} : vector<2x8x32xf32> to vector<1x8x8xf32>
    %36 = vector.shape_cast %35 : vector<1x8x8xf32> to vector<8x8xf32>
    %37 = vector.extract_strided_slice %18 {offsets = [0, 0, 16], sizes = [1, 8, 8], strides = [1, 1, 1]} : vector<2x8x32xf32> to vector<1x8x8xf32>
    %38 = vector.shape_cast %37 : vector<1x8x8xf32> to vector<8x8xf32>
    %39 = vector.extract_strided_slice %18 {offsets = [0, 0, 24], sizes = [1, 8, 8], strides = [1, 1, 1]} : vector<2x8x32xf32> to vector<1x8x8xf32>
    %40 = vector.shape_cast %39 : vector<1x8x8xf32> to vector<8x8xf32>
    %41 = vector.shape_cast %34 : vector<8x8xf32> to vector<1x8x8xf32>
    %42 = vector.shape_cast %36 : vector<8x8xf32> to vector<1x8x8xf32>
    %43 = vector.shape_cast %38 : vector<8x8xf32> to vector<1x8x8xf32>
    %44 = vector.shape_cast %40 : vector<8x8xf32> to vector<1x8x8xf32>
    %45 = tpu.concatenate %41, %42, %43, %44 in 0 : vector<1x8x8xf32>, vector<1x8x8xf32>, vector<1x8x8xf32>, vector<1x8x8xf32> -> vector<4x8x8xf32>
    %46 = vector.extract_strided_slice %19 {offsets = [0, 0, 0], sizes = [1, 8, 8], strides = [1, 1, 1]} : vector<2x8x32xf32> to vector<1x8x8xf32>
    %47 = vector.shape_cast %46 : vector<1x8x8xf32> to vector<8x8xf32>
    %48 = vector.extract_strided_slice %19 {offsets = [0, 0, 8], sizes = [1, 8, 8], strides = [1, 1, 1]} : vector<2x8x32xf32> to vector<1x8x8xf32>
    %49 = vector.shape_cast %48 : vector<1x8x8xf32> to vector<8x8xf32>
    %50 = vector.extract_strided_slice %19 {offsets = [0, 0, 16], sizes = [1, 8, 8], strides = [1, 1, 1]} : vector<2x8x32xf32> to vector<1x8x8xf32>
    %51 = vector.shape_cast %50 : vector<1x8x8xf32> to vector<8x8xf32>
    %52 = vector.extract_strided_slice %19 {offsets = [0, 0, 24], sizes = [1, 8, 8], strides = [1, 1, 1]} : vector<2x8x32xf32> to vector<1x8x8xf32>
    %53 = vector.shape_cast %52 : vector<1x8x8xf32> to vector<8x8xf32>
    %54 = vector.shape_cast %47 : vector<8x8xf32> to vector<1x8x8xf32>
    %55 = vector.shape_cast %49 : vector<8x8xf32> to vector<1x8x8xf32>
    %56 = vector.shape_cast %51 : vector<8x8xf32> to vector<1x8x8xf32>
    %57 = vector.shape_cast %53 : vector<8x8xf32> to vector<1x8x8xf32>
    %58 = tpu.concatenate %54, %55, %56, %57 in 0 : vector<1x8x8xf32>, vector<1x8x8xf32>, vector<1x8x8xf32>, vector<1x8x8xf32> -> vector<4x8x8xf32>
    %cst_11 = arith.constant dense<0.000000e+00> : vector<4x8x8xf32>
    %59 = tpu.matmul %32, %45, %cst_11 {dimension_numbers = #tpu.dot_dimension_numbers<[2], [2], [1], [1], [0, 0, 0, 1, 1, 1], [0], [0]>} : vector<4x8x8xf32>, vector<4x8x8xf32>, vector<4x8x8xf32> -> vector<4x8x8xf32>
    %cst_12 = arith.constant 0.353553385 : f32
    %60 = vector.broadcast %cst_12 : f32 to vector<4x8x8xf32>
    %61 = arith.mulf %59, %60 : vector<4x8x8xf32>
    %cst_13 = arith.constant -1.000000e+30 : f32
    %62 = vector.shape_cast %6 : vector<8x8xi1> to vector<1x8x8xi1>
    %63 = vector.broadcast %62 : vector<1x8x8xi1> to vector<4x8x8xi1>
    %64 = vector.broadcast %cst_13 : f32 to vector<4x8x8xf32>
    %65 = arith.select %63, %61, %64 : vector<4x8x8xi1>, vector<4x8x8xf32>
    %cst_14 = arith.constant dense<0xFF800000> : vector<4x8xf32>
    %66 = vector.multi_reduction <maximumf>, %65, %cst_14 [2] : vector<4x8x8xf32> to vector<4x8xf32>
    %67 = vector.shape_cast %66 : vector<4x8xf32> to vector<4x8x1xf32>
    %68 = vector.broadcast %67 : vector<4x8x1xf32> to vector<4x8x8xf32>
    %69 = arith.subf %65, %68 : vector<4x8x8xf32>
    %70 = math.exp %69 : vector<4x8x8xf32>
    %cst_15 = arith.constant dense<0.000000e+00> : vector<4x8xf32>
    %71 = vector.multi_reduction <add>, %70, %cst_15 [2] : vector<4x8x8xf32> to vector<4x8xf32>
    %72 = vector.shape_cast %71 : vector<4x8xf32> to vector<4x8x1xf32>
    %73 = vector.broadcast %72 : vector<4x8x1xf32> to vector<4x8x8xf32>
    %74 = arith.divf %70, %73 : vector<4x8x8xf32>
    %cst_16 = arith.constant dense<0.000000e+00> : vector<4x8x8xf32>
    %75 = tpu.matmul %74, %58, %cst_16 {dimension_numbers = #tpu.dot_dimension_numbers<[2], [1], [1], [2], [0, 0, 0, 1, 1, 2], [0], [0]>} : vector<4x8x8xf32>, vector<4x8x8xf32>, vector<4x8x8xf32> -> vector<4x8x8xf32>
    %76 = vector.extract_strided_slice %75 {offsets = [0, 0, 0], sizes = [1, 8, 8], strides = [1, 1, 1]} : vector<4x8x8xf32> to vector<1x8x8xf32>
    %77 = vector.shape_cast %76 : vector<1x8x8xf32> to vector<8x8xf32>
    %78 = vector.extract_strided_slice %75 {offsets = [1, 0, 0], sizes = [1, 8, 8], strides = [1, 1, 1]} : vector<4x8x8xf32> to vector<1x8x8xf32>
    %79 = vector.shape_cast %78 : vector<1x8x8xf32> to vector<8x8xf32>
    %80 = vector.extract_strided_slice %75 {offsets = [2, 0, 0], sizes = [1, 8, 8], strides = [1, 1, 1]} : vector<4x8x8xf32> to vector<1x8x8xf32>
    %81 = vector.shape_cast %80 : vector<1x8x8xf32> to vector<8x8xf32>
    %82 = vector.extract_strided_slice %75 {offsets = [3, 0, 0], sizes = [1, 8, 8], strides = [1, 1, 1]} : vector<4x8x8xf32> to vector<1x8x8xf32>
    %83 = vector.shape_cast %82 : vector<1x8x8xf32> to vector<8x8xf32>
    %84 = tpu.concatenate %77, %79, %81, %83 in 1 : vector<8x8xf32>, vector<8x8xf32>, vector<8x8xf32>, vector<8x8xf32> -> vector<8x32xf32>
    %85 = vector.extract_strided_slice %17 {offsets = [1, 0, 0], sizes = [1, 8, 8], strides = [1, 1, 1]} : vector<2x8x32xf32> to vector<1x8x8xf32>
    %86 = vector.shape_cast %85 : vector<1x8x8xf32> to vector<8x8xf32>
    %87 = vector.extract_strided_slice %17 {offsets = [1, 0, 8], sizes = [1, 8, 8], strides = [1, 1, 1]} : vector<2x8x32xf32> to vector<1x8x8xf32>
    %88 = vector.shape_cast %87 : vector<1x8x8xf32> to vector<8x8xf32>
    %89 = vector.extract_strided_slice %17 {offsets = [1, 0, 16], sizes = [1, 8, 8], strides = [1, 1, 1]} : vector<2x8x32xf32> to vector<1x8x8xf32>
    %90 = vector.shape_cast %89 : vector<1x8x8xf32> to vector<8x8xf32>
    %91 = vector.extract_strided_slice %17 {offsets = [1, 0, 24], sizes = [1, 8, 8], strides = [1, 1, 1]} : vector<2x8x32xf32> to vector<1x8x8xf32>
    %92 = vector.shape_cast %91 : vector<1x8x8xf32> to vector<8x8xf32>
    %93 = vector.shape_cast %86 : vector<8x8xf32> to vector<1x8x8xf32>
    %94 = vector.shape_cast %88 : vector<8x8xf32> to vector<1x8x8xf32>
    %95 = vector.shape_cast %90 : vector<8x8xf32> to vector<1x8x8xf32>
    %96 = vector.shape_cast %92 : vector<8x8xf32> to vector<1x8x8xf32>
    %97 = tpu.concatenate %93, %94, %95, %96 in 0 : vector<1x8x8xf32>, vector<1x8x8xf32>, vector<1x8x8xf32>, vector<1x8x8xf32> -> vector<4x8x8xf32>
    %98 = vector.extract_strided_slice %18 {offsets = [1, 0, 0], sizes = [1, 8, 8], strides = [1, 1, 1]} : vector<2x8x32xf32> to vector<1x8x8xf32>
    %99 = vector.shape_cast %98 : vector<1x8x8xf32> to vector<8x8xf32>
    %100 = vector.extract_strided_slice %18 {offsets = [1, 0, 8], sizes = [1, 8, 8], strides = [1, 1, 1]} : vector<2x8x32xf32> to vector<1x8x8xf32>
    %101 = vector.shape_cast %100 : vector<1x8x8xf32> to vector<8x8xf32>
    %102 = vector.extract_strided_slice %18 {offsets = [1, 0, 16], sizes = [1, 8, 8], strides = [1, 1, 1]} : vector<2x8x32xf32> to vector<1x8x8xf32>
    %103 = vector.shape_cast %102 : vector<1x8x8xf32> to vector<8x8xf32>
    %104 = vector.extract_strided_slice %18 {offsets = [1, 0, 24], sizes = [1, 8, 8], strides = [1, 1, 1]} : vector<2x8x32xf32> to vector<1x8x8xf32>
    %105 = vector.shape_cast %104 : vector<1x8x8xf32> to vector<8x8xf32>
    %106 = vector.shape_cast %99 : vector<8x8xf32> to vector<1x8x8xf32>
    %107 = vector.shape_cast %101 : vector<8x8xf32> to vector<1x8x8xf32>
    %108 = vector.shape_cast %103 : vector<8x8xf32> to vector<1x8x8xf32>
    %109 = vector.shape_cast %105 : vector<8x8xf32> to vector<1x8x8xf32>
    %110 = tpu.concatenate %106, %107, %108, %109 in 0 : vector<1x8x8xf32>, vector<1x8x8xf32>, vector<1x8x8xf32>, vector<1x8x8xf32> -> vector<4x8x8xf32>
    %111 = vector.extract_strided_slice %19 {offsets = [1, 0, 0], sizes = [1, 8, 8], strides = [1, 1, 1]} : vector<2x8x32xf32> to vector<1x8x8xf32>
    %112 = vector.shape_cast %111 : vector<1x8x8xf32> to vector<8x8xf32>
    %113 = vector.extract_strided_slice %19 {offsets = [1, 0, 8], sizes = [1, 8, 8], strides = [1, 1, 1]} : vector<2x8x32xf32> to vector<1x8x8xf32>
    %114 = vector.shape_cast %113 : vector<1x8x8xf32> to vector<8x8xf32>
    %115 = vector.extract_strided_slice %19 {offsets = [1, 0, 16], sizes = [1, 8, 8], strides = [1, 1, 1]} : vector<2x8x32xf32> to vector<1x8x8xf32>
    %116 = vector.shape_cast %115 : vector<1x8x8xf32> to vector<8x8xf32>
    %117 = vector.extract_strided_slice %19 {offsets = [1, 0, 24], sizes = [1, 8, 8], strides = [1, 1, 1]} : vector<2x8x32xf32> to vector<1x8x8xf32>
    %118 = vector.shape_cast %117 : vector<1x8x8xf32> to vector<8x8xf32>
    %119 = vector.shape_cast %112 : vector<8x8xf32> to vector<1x8x8xf32>
    %120 = vector.shape_cast %114 : vector<8x8xf32> to vector<1x8x8xf32>
    %121 = vector.shape_cast %116 : vector<8x8xf32> to vector<1x8x8xf32>
    %122 = vector.shape_cast %118 : vector<8x8xf32> to vector<1x8x8xf32>
    %123 = tpu.concatenate %119, %120, %121, %122 in 0 : vector<1x8x8xf32>, vector<1x8x8xf32>, vector<1x8x8xf32>, vector<1x8x8xf32> -> vector<4x8x8xf32>
    %cst_17 = arith.constant dense<0.000000e+00> : vector<4x8x8xf32>
    %124 = tpu.matmul %97, %110, %cst_17 {dimension_numbers = #tpu.dot_dimension_numbers<[2], [2], [1], [1], [0, 0, 0, 1, 1, 1], [0], [0]>} : vector<4x8x8xf32>, vector<4x8x8xf32>, vector<4x8x8xf32> -> vector<4x8x8xf32>
    %cst_18 = arith.constant 0.353553385 : f32
    %125 = vector.broadcast %cst_18 : f32 to vector<4x8x8xf32>
    %126 = arith.mulf %124, %125 : vector<4x8x8xf32>
    %cst_19 = arith.constant -1.000000e+30 : f32
    %127 = vector.shape_cast %6 : vector<8x8xi1> to vector<1x8x8xi1>
    %128 = vector.broadcast %127 : vector<1x8x8xi1> to vector<4x8x8xi1>
    %129 = vector.broadcast %cst_19 : f32 to vector<4x8x8xf32>
    %130 = arith.select %128, %126, %129 : vector<4x8x8xi1>, vector<4x8x8xf32>
    %cst_20 = arith.constant dense<0xFF800000> : vector<4x8xf32>
    %131 = vector.multi_reduction <maximumf>, %130, %cst_20 [2] : vector<4x8x8xf32> to vector<4x8xf32>
    %132 = vector.shape_cast %131 : vector<4x8xf32> to vector<4x8x1xf32>
    %133 = vector.broadcast %132 : vector<4x8x1xf32> to vector<4x8x8xf32>
    %134 = arith.subf %130, %133 : vector<4x8x8xf32>
    %135 = math.exp %134 : vector<4x8x8xf32>
    %cst_21 = arith.constant dense<0.000000e+00> : vector<4x8xf32>
    %136 = vector.multi_reduction <add>, %135, %cst_21 [2] : vector<4x8x8xf32> to vector<4x8xf32>
    %137 = vector.shape_cast %136 : vector<4x8xf32> to vector<4x8x1xf32>
    %138 = vector.broadcast %137 : vector<4x8x1xf32> to vector<4x8x8xf32>
    %139 = arith.divf %135, %138 : vector<4x8x8xf32>
    %cst_22 = arith.constant dense<0.000000e+00> : vector<4x8x8xf32>
    %140 = tpu.matmul %139, %123, %cst_22 {dimension_numbers = #tpu.dot_dimension_numbers<[2], [1], [1], [2], [0, 0, 0, 1, 1, 2], [0], [0]>} : vector<4x8x8xf32>, vector<4x8x8xf32>, vector<4x8x8xf32> -> vector<4x8x8xf32>
    %141 = vector.extract_strided_slice %140 {offsets = [0, 0, 0], sizes = [1, 8, 8], strides = [1, 1, 1]} : vector<4x8x8xf32> to vector<1x8x8xf32>
    %142 = vector.shape_cast %141 : vector<1x8x8xf32> to vector<8x8xf32>
    %143 = vector.extract_strided_slice %140 {offsets = [1, 0, 0], sizes = [1, 8, 8], strides = [1, 1, 1]} : vector<4x8x8xf32> to vector<1x8x8xf32>
    %144 = vector.shape_cast %143 : vector<1x8x8xf32> to vector<8x8xf32>
    %145 = vector.extract_strided_slice %140 {offsets = [2, 0, 0], sizes = [1, 8, 8], strides = [1, 1, 1]} : vector<4x8x8xf32> to vector<1x8x8xf32>
    %146 = vector.shape_cast %145 : vector<1x8x8xf32> to vector<8x8xf32>
    %147 = vector.extract_strided_slice %140 {offsets = [3, 0, 0], sizes = [1, 8, 8], strides = [1, 1, 1]} : vector<4x8x8xf32> to vector<1x8x8xf32>
    %148 = vector.shape_cast %147 : vector<1x8x8xf32> to vector<8x8xf32>
    %149 = tpu.concatenate %142, %144, %146, %148 in 1 : vector<8x8xf32>, vector<8x8xf32>, vector<8x8xf32>, vector<8x8xf32> -> vector<8x32xf32>
    %150 = tpu.concatenate %84, %149 in 0 : vector<8x32xf32>, vector<8x32xf32> -> vector<16x32xf32>
    %c0_23 = arith.constant 0 : index
    %c0_24 = arith.constant 0 : index
    %c0_25 = arith.constant 0 : index
    %151 = vector.load %arg4[%c0_23, %c0_24, %c0_25] : memref<2x32x32xf32, #tpu.memory_space<vmem>>, vector<1x32x32xf32>
    %152 = vector.shape_cast %151 : vector<1x32x32xf32> to vector<32x32xf32>
    %cst_26 = arith.constant dense<0.000000e+00> : vector<16x32xf32>
    %153 = tpu.matmul %150, %152, %cst_26 {dimension_numbers = #tpu.dot_dimension_numbers<[1], [0], [0], [1], [0, 0, 1, 1], [], []>} : vector<16x32xf32>, vector<32x32xf32>, vector<16x32xf32> -> vector<16x32xf32>
    %c0_27 = arith.constant 0 : index
    %c0_28 = arith.constant 0 : index
    %c0_29 = arith.constant 0 : index
    %154 = vector.load %arg5[%c0_27, %c0_28, %c0_29] : memref<2x1x32xf32, #tpu.memory_space<vmem>>, vector<1x1x32xf32>
    %155 = vector.shape_cast %154 : vector<1x1x32xf32> to vector<1x32xf32>
    %156 = vector.broadcast %155 : vector<1x32xf32> to vector<16x32xf32>
    %157 = arith.addf %153, %156 : vector<16x32xf32>
    %158 = arith.addf %1, %157 : vector<16x32xf32>
    %c0_30 = arith.constant 0 : index
    %c0_31 = arith.constant 0 : index
    %c0_32 = arith.constant 0 : index
    %159 = vector.load %arg6[%c0_30, %c0_31, %c0_32] : memref<2x1x32xf32, #tpu.memory_space<vmem>>, vector<1x1x32xf32>
    %160 = vector.shape_cast %159 : vector<1x1x32xf32> to vector<1x32xf32>
    %c0_33 = arith.constant 0 : index
    %c0_34 = arith.constant 0 : index
    %c0_35 = arith.constant 0 : index
    %161 = vector.load %arg7[%c0_33, %c0_34, %c0_35] : memref<2x1x32xf32, #tpu.memory_space<vmem>>, vector<1x1x32xf32>
    %162 = vector.shape_cast %161 : vector<1x1x32xf32> to vector<1x32xf32>
    %cst_36 = arith.constant dense<0.000000e+00> : vector<16xf32>
    %163 = vector.multi_reduction <add>, %158, %cst_36 [1] : vector<16x32xf32> to vector<16xf32>
    %164 = vector.shape_cast %163 : vector<16xf32> to vector<16x1xf32>
    %cst_37 = arith.constant 3.200000e+01 : f32
    %165 = vector.broadcast %cst_37 : f32 to vector<16x1xf32>
    %166 = arith.divf %164, %165 : vector<16x1xf32>
    %167 = vector.broadcast %166 : vector<16x1xf32> to vector<16x32xf32>
    %168 = arith.subf %158, %167 : vector<16x32xf32>
    %169 = arith.mulf %168, %168 : vector<16x32xf32>
    %cst_38 = arith.constant dense<0.000000e+00> : vector<16xf32>
    %170 = vector.multi_reduction <add>, %169, %cst_38 [1] : vector<16x32xf32> to vector<16xf32>
    %171 = vector.shape_cast %170 : vector<16xf32> to vector<16x1xf32>
    %cst_39 = arith.constant 3.200000e+01 : f32
    %172 = vector.broadcast %cst_39 : f32 to vector<16x1xf32>
    %173 = arith.divf %171, %172 : vector<16x1xf32>
    %174 = vector.broadcast %166 : vector<16x1xf32> to vector<16x32xf32>
    %175 = arith.subf %158, %174 : vector<16x32xf32>
    %cst_40 = arith.constant 9.99999974E-6 : f32
    %176 = vector.broadcast %cst_40 : f32 to vector<16x1xf32>
    %177 = arith.addf %173, %176 : vector<16x1xf32>
    %178 = math.rsqrt %177 : vector<16x1xf32>
    %179 = vector.broadcast %178 : vector<16x1xf32> to vector<16x32xf32>
    %180 = arith.mulf %175, %179 : vector<16x32xf32>
    %181 = vector.broadcast %160 : vector<1x32xf32> to vector<16x32xf32>
    %182 = arith.mulf %180, %181 : vector<16x32xf32>
    %183 = vector.broadcast %162 : vector<1x32xf32> to vector<16x32xf32>
    %184 = arith.addf %182, %183 : vector<16x32xf32>
    %c0_41 = arith.constant 0 : index
    %c0_42 = arith.constant 0 : index
    %c0_43 = arith.constant 0 : index
    %185 = vector.load %arg8[%c0_41, %c0_42, %c0_43] : memref<2x32x32xf32, #tpu.memory_space<vmem>>, vector<1x32x32xf32>
    %186 = vector.shape_cast %185 : vector<1x32x32xf32> to vector<32x32xf32>
    %cst_44 = arith.constant dense<0.000000e+00> : vector<16x32xf32>
    %187 = tpu.matmul %184, %186, %cst_44 {dimension_numbers = #tpu.dot_dimension_numbers<[1], [0], [0], [1], [0, 0, 1, 1], [], []>} : vector<16x32xf32>, vector<32x32xf32>, vector<16x32xf32> -> vector<16x32xf32>
    %c0_45 = arith.constant 0 : index
    %c0_46 = arith.constant 0 : index
    %c0_47 = arith.constant 0 : index
    %188 = vector.load %arg9[%c0_45, %c0_46, %c0_47] : memref<2x1x32xf32, #tpu.memory_space<vmem>>, vector<1x1x32xf32>
    %189 = vector.shape_cast %188 : vector<1x1x32xf32> to vector<1x32xf32>
    %190 = vector.broadcast %189 : vector<1x32xf32> to vector<16x32xf32>
    %191 = arith.addf %187, %190 : vector<16x32xf32>
    %c0_48 = arith.constant 0 : index
    %c0_49 = arith.constant 0 : index
    %c0_50 = arith.constant 0 : index
    %192 = vector.load %arg10[%c0_48, %c0_49, %c0_50] : memref<2x32x64xf32, #tpu.memory_space<vmem>>, vector<1x32x64xf32>
    %193 = vector.shape_cast %192 : vector<1x32x64xf32> to vector<32x64xf32>
    %cst_51 = arith.constant dense<0.000000e+00> : vector<16x64xf32>
    %194 = tpu.matmul %3, %193, %cst_51 {dimension_numbers = #tpu.dot_dimension_numbers<[1], [0], [0], [1], [0, 0, 1, 1], [], []>} : vector<16x32xf32>, vector<32x64xf32>, vector<16x64xf32> -> vector<16x64xf32>
    %c0_52 = arith.constant 0 : index
    %c0_53 = arith.constant 0 : index
    %c0_54 = arith.constant 0 : index
    %195 = vector.load %arg11[%c0_52, %c0_53, %c0_54] : memref<2x1x64xf32, #tpu.memory_space<vmem>>, vector<1x1x64xf32>
    %196 = vector.shape_cast %195 : vector<1x1x64xf32> to vector<1x64xf32>
    %197 = vector.broadcast %196 : vector<1x64xf32> to vector<16x64xf32>
    %198 = arith.addf %194, %197 : vector<16x64xf32>
    %199 = vector.extract_strided_slice %198 {offsets = [0, 0], sizes = [16, 32], strides = [1, 1]} : vector<16x64xf32> to vector<16x32xf32>
    %200 = vector.extract_strided_slice %198 {offsets = [0, 32], sizes = [16, 32], strides = [1, 1]} : vector<16x64xf32> to vector<16x32xf32>
    %201 = vector.shape_cast %191 : vector<16x32xf32> to vector<2x8x32xf32>
    %202 = vector.shape_cast %199 : vector<16x32xf32> to vector<2x8x32xf32>
    %203 = vector.shape_cast %200 : vector<16x32xf32> to vector<2x8x32xf32>
    %204 = vector.extract_strided_slice %201 {offsets = [0, 0, 0], sizes = [1, 8, 8], strides = [1, 1, 1]} : vector<2x8x32xf32> to vector<1x8x8xf32>
    %205 = vector.shape_cast %204 : vector<1x8x8xf32> to vector<8x8xf32>
    %206 = vector.extract_strided_slice %201 {offsets = [0, 0, 8], sizes = [1, 8, 8], strides = [1, 1, 1]} : vector<2x8x32xf32> to vector<1x8x8xf32>
    %207 = vector.shape_cast %206 : vector<1x8x8xf32> to vector<8x8xf32>
    %208 = vector.extract_strided_slice %201 {offsets = [0, 0, 16], sizes = [1, 8, 8], strides = [1, 1, 1]} : vector<2x8x32xf32> to vector<1x8x8xf32>
    %209 = vector.shape_cast %208 : vector<1x8x8xf32> to vector<8x8xf32>
    %210 = vector.extract_strided_slice %201 {offsets = [0, 0, 24], sizes = [1, 8, 8], strides = [1, 1, 1]} : vector<2x8x32xf32> to vector<1x8x8xf32>
    %211 = vector.shape_cast %210 : vector<1x8x8xf32> to vector<8x8xf32>
    %212 = vector.shape_cast %205 : vector<8x8xf32> to vector<1x8x8xf32>
    %213 = vector.shape_cast %207 : vector<8x8xf32> to vector<1x8x8xf32>
    %214 = vector.shape_cast %209 : vector<8x8xf32> to vector<1x8x8xf32>
    %215 = vector.shape_cast %211 : vector<8x8xf32> to vector<1x8x8xf32>
    %216 = tpu.concatenate %212, %213, %214, %215 in 0 : vector<1x8x8xf32>, vector<1x8x8xf32>, vector<1x8x8xf32>, vector<1x8x8xf32> -> vector<4x8x8xf32>
    %217 = vector.extract_strided_slice %202 {offsets = [0, 0, 0], sizes = [1, 8, 8], strides = [1, 1, 1]} : vector<2x8x32xf32> to vector<1x8x8xf32>
    %218 = vector.shape_cast %217 : vector<1x8x8xf32> to vector<8x8xf32>
    %219 = vector.extract_strided_slice %202 {offsets = [0, 0, 8], sizes = [1, 8, 8], strides = [1, 1, 1]} : vector<2x8x32xf32> to vector<1x8x8xf32>
    %220 = vector.shape_cast %219 : vector<1x8x8xf32> to vector<8x8xf32>
    %221 = vector.extract_strided_slice %202 {offsets = [0, 0, 16], sizes = [1, 8, 8], strides = [1, 1, 1]} : vector<2x8x32xf32> to vector<1x8x8xf32>
    %222 = vector.shape_cast %221 : vector<1x8x8xf32> to vector<8x8xf32>
    %223 = vector.extract_strided_slice %202 {offsets = [0, 0, 24], sizes = [1, 8, 8], strides = [1, 1, 1]} : vector<2x8x32xf32> to vector<1x8x8xf32>
    %224 = vector.shape_cast %223 : vector<1x8x8xf32> to vector<8x8xf32>
    %225 = vector.shape_cast %218 : vector<8x8xf32> to vector<1x8x8xf32>
    %226 = vector.shape_cast %220 : vector<8x8xf32> to vector<1x8x8xf32>
    %227 = vector.shape_cast %222 : vector<8x8xf32> to vector<1x8x8xf32>
    %228 = vector.shape_cast %224 : vector<8x8xf32> to vector<1x8x8xf32>
    %229 = tpu.concatenate %225, %226, %227, %228 in 0 : vector<1x8x8xf32>, vector<1x8x8xf32>, vector<1x8x8xf32>, vector<1x8x8xf32> -> vector<4x8x8xf32>
    %230 = vector.extract_strided_slice %203 {offsets = [0, 0, 0], sizes = [1, 8, 8], strides = [1, 1, 1]} : vector<2x8x32xf32> to vector<1x8x8xf32>
    %231 = vector.shape_cast %230 : vector<1x8x8xf32> to vector<8x8xf32>
    %232 = vector.extract_strided_slice %203 {offsets = [0, 0, 8], sizes = [1, 8, 8], strides = [1, 1, 1]} : vector<2x8x32xf32> to vector<1x8x8xf32>
    %233 = vector.shape_cast %232 : vector<1x8x8xf32> to vector<8x8xf32>
    %234 = vector.extract_strided_slice %203 {offsets = [0, 0, 16], sizes = [1, 8, 8], strides = [1, 1, 1]} : vector<2x8x32xf32> to vector<1x8x8xf32>
    %235 = vector.shape_cast %234 : vector<1x8x8xf32> to vector<8x8xf32>
    %236 = vector.extract_strided_slice %203 {offsets = [0, 0, 24], sizes = [1, 8, 8], strides = [1, 1, 1]} : vector<2x8x32xf32> to vector<1x8x8xf32>
    %237 = vector.shape_cast %236 : vector<1x8x8xf32> to vector<8x8xf32>
    %238 = vector.shape_cast %231 : vector<8x8xf32> to vector<1x8x8xf32>
    %239 = vector.shape_cast %233 : vector<8x8xf32> to vector<1x8x8xf32>
    %240 = vector.shape_cast %235 : vector<8x8xf32> to vector<1x8x8xf32>
    %241 = vector.shape_cast %237 : vector<8x8xf32> to vector<1x8x8xf32>
    %242 = tpu.concatenate %238, %239, %240, %241 in 0 : vector<1x8x8xf32>, vector<1x8x8xf32>, vector<1x8x8xf32>, vector<1x8x8xf32> -> vector<4x8x8xf32>
    %cst_55 = arith.constant dense<0.000000e+00> : vector<4x8x8xf32>
    %243 = tpu.matmul %216, %229, %cst_55 {dimension_numbers = #tpu.dot_dimension_numbers<[2], [2], [1], [1], [0, 0, 0, 1, 1, 1], [0], [0]>} : vector<4x8x8xf32>, vector<4x8x8xf32>, vector<4x8x8xf32> -> vector<4x8x8xf32>
    %cst_56 = arith.constant 0.353553385 : f32
    %244 = vector.broadcast %cst_56 : f32 to vector<4x8x8xf32>
    %245 = arith.mulf %243, %244 : vector<4x8x8xf32>
    %cst_57 = arith.constant dense<0xFF800000> : vector<4x8xf32>
    %246 = vector.multi_reduction <maximumf>, %245, %cst_57 [2] : vector<4x8x8xf32> to vector<4x8xf32>
    %247 = vector.shape_cast %246 : vector<4x8xf32> to vector<4x8x1xf32>
    %248 = vector.broadcast %247 : vector<4x8x1xf32> to vector<4x8x8xf32>
    %249 = arith.subf %245, %248 : vector<4x8x8xf32>
    %250 = math.exp %249 : vector<4x8x8xf32>
    %cst_58 = arith.constant dense<0.000000e+00> : vector<4x8xf32>
    %251 = vector.multi_reduction <add>, %250, %cst_58 [2] : vector<4x8x8xf32> to vector<4x8xf32>
    %252 = vector.shape_cast %251 : vector<4x8xf32> to vector<4x8x1xf32>
    %253 = vector.broadcast %252 : vector<4x8x1xf32> to vector<4x8x8xf32>
    %254 = arith.divf %250, %253 : vector<4x8x8xf32>
    %cst_59 = arith.constant dense<0.000000e+00> : vector<4x8x8xf32>
    %255 = tpu.matmul %254, %242, %cst_59 {dimension_numbers = #tpu.dot_dimension_numbers<[2], [1], [1], [2], [0, 0, 0, 1, 1, 2], [0], [0]>} : vector<4x8x8xf32>, vector<4x8x8xf32>, vector<4x8x8xf32> -> vector<4x8x8xf32>
    %256 = vector.extract_strided_slice %255 {offsets = [0, 0, 0], sizes = [1, 8, 8], strides = [1, 1, 1]} : vector<4x8x8xf32> to vector<1x8x8xf32>
    %257 = vector.shape_cast %256 : vector<1x8x8xf32> to vector<8x8xf32>
    %258 = vector.extract_strided_slice %255 {offsets = [1, 0, 0], sizes = [1, 8, 8], strides = [1, 1, 1]} : vector<4x8x8xf32> to vector<1x8x8xf32>
    %259 = vector.shape_cast %258 : vector<1x8x8xf32> to vector<8x8xf32>
    %260 = vector.extract_strided_slice %255 {offsets = [2, 0, 0], sizes = [1, 8, 8], strides = [1, 1, 1]} : vector<4x8x8xf32> to vector<1x8x8xf32>
    %261 = vector.shape_cast %260 : vector<1x8x8xf32> to vector<8x8xf32>
    %262 = vector.extract_strided_slice %255 {offsets = [3, 0, 0], sizes = [1, 8, 8], strides = [1, 1, 1]} : vector<4x8x8xf32> to vector<1x8x8xf32>
    %263 = vector.shape_cast %262 : vector<1x8x8xf32> to vector<8x8xf32>
    %264 = tpu.concatenate %257, %259, %261, %263 in 1 : vector<8x8xf32>, vector<8x8xf32>, vector<8x8xf32>, vector<8x8xf32> -> vector<8x32xf32>
    %265 = vector.extract_strided_slice %201 {offsets = [1, 0, 0], sizes = [1, 8, 8], strides = [1, 1, 1]} : vector<2x8x32xf32> to vector<1x8x8xf32>
    %266 = vector.shape_cast %265 : vector<1x8x8xf32> to vector<8x8xf32>
    %267 = vector.extract_strided_slice %201 {offsets = [1, 0, 8], sizes = [1, 8, 8], strides = [1, 1, 1]} : vector<2x8x32xf32> to vector<1x8x8xf32>
    %268 = vector.shape_cast %267 : vector<1x8x8xf32> to vector<8x8xf32>
    %269 = vector.extract_strided_slice %201 {offsets = [1, 0, 16], sizes = [1, 8, 8], strides = [1, 1, 1]} : vector<2x8x32xf32> to vector<1x8x8xf32>
    %270 = vector.shape_cast %269 : vector<1x8x8xf32> to vector<8x8xf32>
    %271 = vector.extract_strided_slice %201 {offsets = [1, 0, 24], sizes = [1, 8, 8], strides = [1, 1, 1]} : vector<2x8x32xf32> to vector<1x8x8xf32>
    %272 = vector.shape_cast %271 : vector<1x8x8xf32> to vector<8x8xf32>
    %273 = vector.shape_cast %266 : vector<8x8xf32> to vector<1x8x8xf32>
    %274 = vector.shape_cast %268 : vector<8x8xf32> to vector<1x8x8xf32>
    %275 = vector.shape_cast %270 : vector<8x8xf32> to vector<1x8x8xf32>
    %276 = vector.shape_cast %272 : vector<8x8xf32> to vector<1x8x8xf32>
    %277 = tpu.concatenate %273, %274, %275, %276 in 0 : vector<1x8x8xf32>, vector<1x8x8xf32>, vector<1x8x8xf32>, vector<1x8x8xf32> -> vector<4x8x8xf32>
    %278 = vector.extract_strided_slice %202 {offsets = [1, 0, 0], sizes = [1, 8, 8], strides = [1, 1, 1]} : vector<2x8x32xf32> to vector<1x8x8xf32>
    %279 = vector.shape_cast %278 : vector<1x8x8xf32> to vector<8x8xf32>
    %280 = vector.extract_strided_slice %202 {offsets = [1, 0, 8], sizes = [1, 8, 8], strides = [1, 1, 1]} : vector<2x8x32xf32> to vector<1x8x8xf32>
    %281 = vector.shape_cast %280 : vector<1x8x8xf32> to vector<8x8xf32>
    %282 = vector.extract_strided_slice %202 {offsets = [1, 0, 16], sizes = [1, 8, 8], strides = [1, 1, 1]} : vector<2x8x32xf32> to vector<1x8x8xf32>
    %283 = vector.shape_cast %282 : vector<1x8x8xf32> to vector<8x8xf32>
    %284 = vector.extract_strided_slice %202 {offsets = [1, 0, 24], sizes = [1, 8, 8], strides = [1, 1, 1]} : vector<2x8x32xf32> to vector<1x8x8xf32>
    %285 = vector.shape_cast %284 : vector<1x8x8xf32> to vector<8x8xf32>
    %286 = vector.shape_cast %279 : vector<8x8xf32> to vector<1x8x8xf32>
    %287 = vector.shape_cast %281 : vector<8x8xf32> to vector<1x8x8xf32>
    %288 = vector.shape_cast %283 : vector<8x8xf32> to vector<1x8x8xf32>
    %289 = vector.shape_cast %285 : vector<8x8xf32> to vector<1x8x8xf32>
    %290 = tpu.concatenate %286, %287, %288, %289 in 0 : vector<1x8x8xf32>, vector<1x8x8xf32>, vector<1x8x8xf32>, vector<1x8x8xf32> -> vector<4x8x8xf32>
    %291 = vector.extract_strided_slice %203 {offsets = [1, 0, 0], sizes = [1, 8, 8], strides = [1, 1, 1]} : vector<2x8x32xf32> to vector<1x8x8xf32>
    %292 = vector.shape_cast %291 : vector<1x8x8xf32> to vector<8x8xf32>
    %293 = vector.extract_strided_slice %203 {offsets = [1, 0, 8], sizes = [1, 8, 8], strides = [1, 1, 1]} : vector<2x8x32xf32> to vector<1x8x8xf32>
    %294 = vector.shape_cast %293 : vector<1x8x8xf32> to vector<8x8xf32>
    %295 = vector.extract_strided_slice %203 {offsets = [1, 0, 16], sizes = [1, 8, 8], strides = [1, 1, 1]} : vector<2x8x32xf32> to vector<1x8x8xf32>
    %296 = vector.shape_cast %295 : vector<1x8x8xf32> to vector<8x8xf32>
    %297 = vector.extract_strided_slice %203 {offsets = [1, 0, 24], sizes = [1, 8, 8], strides = [1, 1, 1]} : vector<2x8x32xf32> to vector<1x8x8xf32>
    %298 = vector.shape_cast %297 : vector<1x8x8xf32> to vector<8x8xf32>
    %299 = vector.shape_cast %292 : vector<8x8xf32> to vector<1x8x8xf32>
    %300 = vector.shape_cast %294 : vector<8x8xf32> to vector<1x8x8xf32>
    %301 = vector.shape_cast %296 : vector<8x8xf32> to vector<1x8x8xf32>
    %302 = vector.shape_cast %298 : vector<8x8xf32> to vector<1x8x8xf32>
    %303 = tpu.concatenate %299, %300, %301, %302 in 0 : vector<1x8x8xf32>, vector<1x8x8xf32>, vector<1x8x8xf32>, vector<1x8x8xf32> -> vector<4x8x8xf32>
    %cst_60 = arith.constant dense<0.000000e+00> : vector<4x8x8xf32>
    %304 = tpu.matmul %277, %290, %cst_60 {dimension_numbers = #tpu.dot_dimension_numbers<[2], [2], [1], [1], [0, 0, 0, 1, 1, 1], [0], [0]>} : vector<4x8x8xf32>, vector<4x8x8xf32>, vector<4x8x8xf32> -> vector<4x8x8xf32>
    %cst_61 = arith.constant 0.353553385 : f32
    %305 = vector.broadcast %cst_61 : f32 to vector<4x8x8xf32>
    %306 = arith.mulf %304, %305 : vector<4x8x8xf32>
    %cst_62 = arith.constant dense<0xFF800000> : vector<4x8xf32>
    %307 = vector.multi_reduction <maximumf>, %306, %cst_62 [2] : vector<4x8x8xf32> to vector<4x8xf32>
    %308 = vector.shape_cast %307 : vector<4x8xf32> to vector<4x8x1xf32>
    %309 = vector.broadcast %308 : vector<4x8x1xf32> to vector<4x8x8xf32>
    %310 = arith.subf %306, %309 : vector<4x8x8xf32>
    %311 = math.exp %310 : vector<4x8x8xf32>
    %cst_63 = arith.constant dense<0.000000e+00> : vector<4x8xf32>
    %312 = vector.multi_reduction <add>, %311, %cst_63 [2] : vector<4x8x8xf32> to vector<4x8xf32>
    %313 = vector.shape_cast %312 : vector<4x8xf32> to vector<4x8x1xf32>
    %314 = vector.broadcast %313 : vector<4x8x1xf32> to vector<4x8x8xf32>
    %315 = arith.divf %311, %314 : vector<4x8x8xf32>
    %cst_64 = arith.constant dense<0.000000e+00> : vector<4x8x8xf32>
    %316 = tpu.matmul %315, %303, %cst_64 {dimension_numbers = #tpu.dot_dimension_numbers<[2], [1], [1], [2], [0, 0, 0, 1, 1, 2], [0], [0]>} : vector<4x8x8xf32>, vector<4x8x8xf32>, vector<4x8x8xf32> -> vector<4x8x8xf32>
    %317 = vector.extract_strided_slice %316 {offsets = [0, 0, 0], sizes = [1, 8, 8], strides = [1, 1, 1]} : vector<4x8x8xf32> to vector<1x8x8xf32>
    %318 = vector.shape_cast %317 : vector<1x8x8xf32> to vector<8x8xf32>
    %319 = vector.extract_strided_slice %316 {offsets = [1, 0, 0], sizes = [1, 8, 8], strides = [1, 1, 1]} : vector<4x8x8xf32> to vector<1x8x8xf32>
    %320 = vector.shape_cast %319 : vector<1x8x8xf32> to vector<8x8xf32>
    %321 = vector.extract_strided_slice %316 {offsets = [2, 0, 0], sizes = [1, 8, 8], strides = [1, 1, 1]} : vector<4x8x8xf32> to vector<1x8x8xf32>
    %322 = vector.shape_cast %321 : vector<1x8x8xf32> to vector<8x8xf32>
    %323 = vector.extract_strided_slice %316 {offsets = [3, 0, 0], sizes = [1, 8, 8], strides = [1, 1, 1]} : vector<4x8x8xf32> to vector<1x8x8xf32>
    %324 = vector.shape_cast %323 : vector<1x8x8xf32> to vector<8x8xf32>
    %325 = tpu.concatenate %318, %320, %322, %324 in 1 : vector<8x8xf32>, vector<8x8xf32>, vector<8x8xf32>, vector<8x8xf32> -> vector<8x32xf32>
    %326 = tpu.concatenate %264, %325 in 0 : vector<8x32xf32>, vector<8x32xf32> -> vector<16x32xf32>
    %c0_65 = arith.constant 0 : index
    %c0_66 = arith.constant 0 : index
    %c0_67 = arith.constant 0 : index
    %327 = vector.load %arg12[%c0_65, %c0_66, %c0_67] : memref<2x32x32xf32, #tpu.memory_space<vmem>>, vector<1x32x32xf32>
    %328 = vector.shape_cast %327 : vector<1x32x32xf32> to vector<32x32xf32>
    %cst_68 = arith.constant dense<0.000000e+00> : vector<16x32xf32>
    %329 = tpu.matmul %326, %328, %cst_68 {dimension_numbers = #tpu.dot_dimension_numbers<[1], [0], [0], [1], [0, 0, 1, 1], [], []>} : vector<16x32xf32>, vector<32x32xf32>, vector<16x32xf32> -> vector<16x32xf32>
    %c0_69 = arith.constant 0 : index
    %c0_70 = arith.constant 0 : index
    %c0_71 = arith.constant 0 : index
    %330 = vector.load %arg13[%c0_69, %c0_70, %c0_71] : memref<2x1x32xf32, #tpu.memory_space<vmem>>, vector<1x1x32xf32>
    %331 = vector.shape_cast %330 : vector<1x1x32xf32> to vector<1x32xf32>
    %332 = vector.broadcast %331 : vector<1x32xf32> to vector<16x32xf32>
    %333 = arith.addf %329, %332 : vector<16x32xf32>
    %334 = arith.addf %184, %333 : vector<16x32xf32>
    %c0_72 = arith.constant 0 : index
    %c0_73 = arith.constant 0 : index
    %c0_74 = arith.constant 0 : index
    %335 = vector.load %arg14[%c0_72, %c0_73, %c0_74] : memref<2x1x32xf32, #tpu.memory_space<vmem>>, vector<1x1x32xf32>
    %336 = vector.shape_cast %335 : vector<1x1x32xf32> to vector<1x32xf32>
    %c0_75 = arith.constant 0 : index
    %c0_76 = arith.constant 0 : index
    %c0_77 = arith.constant 0 : index
    %337 = vector.load %arg15[%c0_75, %c0_76, %c0_77] : memref<2x1x32xf32, #tpu.memory_space<vmem>>, vector<1x1x32xf32>
    %338 = vector.shape_cast %337 : vector<1x1x32xf32> to vector<1x32xf32>
    %cst_78 = arith.constant dense<0.000000e+00> : vector<16xf32>
    %339 = vector.multi_reduction <add>, %334, %cst_78 [1] : vector<16x32xf32> to vector<16xf32>
    %340 = vector.shape_cast %339 : vector<16xf32> to vector<16x1xf32>
    %cst_79 = arith.constant 3.200000e+01 : f32
    %341 = vector.broadcast %cst_79 : f32 to vector<16x1xf32>
    %342 = arith.divf %340, %341 : vector<16x1xf32>
    %343 = vector.broadcast %342 : vector<16x1xf32> to vector<16x32xf32>
    %344 = arith.subf %334, %343 : vector<16x32xf32>
    %345 = arith.mulf %344, %344 : vector<16x32xf32>
    %cst_80 = arith.constant dense<0.000000e+00> : vector<16xf32>
    %346 = vector.multi_reduction <add>, %345, %cst_80 [1] : vector<16x32xf32> to vector<16xf32>
    %347 = vector.shape_cast %346 : vector<16xf32> to vector<16x1xf32>
    %cst_81 = arith.constant 3.200000e+01 : f32
    %348 = vector.broadcast %cst_81 : f32 to vector<16x1xf32>
    %349 = arith.divf %347, %348 : vector<16x1xf32>
    %350 = vector.broadcast %342 : vector<16x1xf32> to vector<16x32xf32>
    %351 = arith.subf %334, %350 : vector<16x32xf32>
    %cst_82 = arith.constant 9.99999974E-6 : f32
    %352 = vector.broadcast %cst_82 : f32 to vector<16x1xf32>
    %353 = arith.addf %349, %352 : vector<16x1xf32>
    %354 = math.rsqrt %353 : vector<16x1xf32>
    %355 = vector.broadcast %354 : vector<16x1xf32> to vector<16x32xf32>
    %356 = arith.mulf %351, %355 : vector<16x32xf32>
    %357 = vector.broadcast %336 : vector<1x32xf32> to vector<16x32xf32>
    %358 = arith.mulf %356, %357 : vector<16x32xf32>
    %359 = vector.broadcast %338 : vector<1x32xf32> to vector<16x32xf32>
    %360 = arith.addf %358, %359 : vector<16x32xf32>
    %c0_83 = arith.constant 0 : index
    %c0_84 = arith.constant 0 : index
    %c0_85 = arith.constant 0 : index
    %361 = vector.load %arg16[%c0_83, %c0_84, %c0_85] : memref<2x32x128xf32, #tpu.memory_space<vmem>>, vector<1x32x128xf32>
    %362 = vector.shape_cast %361 : vector<1x32x128xf32> to vector<32x128xf32>
    %cst_86 = arith.constant dense<0.000000e+00> : vector<16x128xf32>
    %363 = tpu.matmul %360, %362, %cst_86 {dimension_numbers = #tpu.dot_dimension_numbers<[1], [0], [0], [1], [0, 0, 1, 1], [], []>} : vector<16x32xf32>, vector<32x128xf32>, vector<16x128xf32> -> vector<16x128xf32>
    %c0_87 = arith.constant 0 : index
    %c0_88 = arith.constant 0 : index
    %c0_89 = arith.constant 0 : index
    %364 = vector.load %arg17[%c0_87, %c0_88, %c0_89] : memref<2x1x128xf32, #tpu.memory_space<vmem>>, vector<1x1x128xf32>
    %365 = vector.shape_cast %364 : vector<1x1x128xf32> to vector<1x128xf32>
    %366 = vector.broadcast %365 : vector<1x128xf32> to vector<16x128xf32>
    %367 = arith.addf %363, %366 : vector<16x128xf32>
    %cst_90 = arith.constant 5.000000e-01 : f32
    %368 = vector.broadcast %cst_90 : f32 to vector<16x128xf32>
    %369 = arith.mulf %368, %367 : vector<16x128xf32>
    %cst_91 = arith.constant 4.471500e-02 : f32
    %370 = vector.broadcast %cst_91 : f32 to vector<16x128xf32>
    %371 = arith.mulf %370, %367 : vector<16x128xf32>
    %372 = arith.mulf %371, %367 : vector<16x128xf32>
    %373 = arith.mulf %372, %367 : vector<16x128xf32>
    %374 = arith.addf %367, %373 : vector<16x128xf32>
    %cst_92 = arith.constant 0.797884583 : f32
    %375 = vector.broadcast %cst_92 : f32 to vector<16x128xf32>
    %376 = arith.mulf %375, %374 : vector<16x128xf32>
    %377 = math.tanh %376 : vector<16x128xf32>
    %cst_93 = arith.constant 1.000000e+00 : f32
    %378 = vector.broadcast %cst_93 : f32 to vector<16x128xf32>
    %379 = arith.addf %378, %377 : vector<16x128xf32>
    %380 = arith.mulf %369, %379 : vector<16x128xf32>
    %c0_94 = arith.constant 0 : index
    %c0_95 = arith.constant 0 : index
    %c0_96 = arith.constant 0 : index
    %381 = vector.load %arg18[%c0_94, %c0_95, %c0_96] : memref<2x128x32xf32, #tpu.memory_space<vmem>>, vector<1x128x32xf32>
    %382 = vector.shape_cast %381 : vector<1x128x32xf32> to vector<128x32xf32>
    %cst_97 = arith.constant dense<0.000000e+00> : vector<16x32xf32>
    %383 = tpu.matmul %380, %382, %cst_97 {dimension_numbers = #tpu.dot_dimension_numbers<[1], [0], [0], [1], [0, 0, 1, 1], [], []>} : vector<16x128xf32>, vector<128x32xf32>, vector<16x32xf32> -> vector<16x32xf32>
    %c0_98 = arith.constant 0 : index
    %c0_99 = arith.constant 0 : index
    %c0_100 = arith.constant 0 : index
    %384 = vector.load %arg19[%c0_98, %c0_99, %c0_100] : memref<2x1x32xf32, #tpu.memory_space<vmem>>, vector<1x1x32xf32>
    %385 = vector.shape_cast %384 : vector<1x1x32xf32> to vector<1x32xf32>
    %386 = vector.broadcast %385 : vector<1x32xf32> to vector<16x32xf32>
    %387 = arith.addf %383, %386 : vector<16x32xf32>
    %388 = arith.addf %360, %387 : vector<16x32xf32>
    %c0_101 = arith.constant 0 : index
    %c0_102 = arith.constant 0 : index
    %c0_103 = arith.constant 0 : index
    %389 = vector.load %arg20[%c0_101, %c0_102, %c0_103] : memref<2x1x32xf32, #tpu.memory_space<vmem>>, vector<1x1x32xf32>
    %390 = vector.shape_cast %389 : vector<1x1x32xf32> to vector<1x32xf32>
    %c0_104 = arith.constant 0 : index
    %c0_105 = arith.constant 0 : index
    %c0_106 = arith.constant 0 : index
    %391 = vector.load %arg21[%c0_104, %c0_105, %c0_106] : memref<2x1x32xf32, #tpu.memory_space<vmem>>, vector<1x1x32xf32>
    %392 = vector.shape_cast %391 : vector<1x1x32xf32> to vector<1x32xf32>
    %cst_107 = arith.constant dense<0.000000e+00> : vector<16xf32>
    %393 = vector.multi_reduction <add>, %388, %cst_107 [1] : vector<16x32xf32> to vector<16xf32>
    %394 = vector.shape_cast %393 : vector<16xf32> to vector<16x1xf32>
    %cst_108 = arith.constant 3.200000e+01 : f32
    %395 = vector.broadcast %cst_108 : f32 to vector<16x1xf32>
    %396 = arith.divf %394, %395 : vector<16x1xf32>
    %397 = vector.broadcast %396 : vector<16x1xf32> to vector<16x32xf32>
    %398 = arith.subf %388, %397 : vector<16x32xf32>
    %399 = arith.mulf %398, %398 : vector<16x32xf32>
    %cst_109 = arith.constant dense<0.000000e+00> : vector<16xf32>
    %400 = vector.multi_reduction <add>, %399, %cst_109 [1] : vector<16x32xf32> to vector<16xf32>
    %401 = vector.shape_cast %400 : vector<16xf32> to vector<16x1xf32>
    %cst_110 = arith.constant 3.200000e+01 : f32
    %402 = vector.broadcast %cst_110 : f32 to vector<16x1xf32>
    %403 = arith.divf %401, %402 : vector<16x1xf32>
    %404 = vector.broadcast %396 : vector<16x1xf32> to vector<16x32xf32>
    %405 = arith.subf %388, %404 : vector<16x32xf32>
    %cst_111 = arith.constant 9.99999974E-6 : f32
    %406 = vector.broadcast %cst_111 : f32 to vector<16x1xf32>
    %407 = arith.addf %403, %406 : vector<16x1xf32>
    %408 = math.rsqrt %407 : vector<16x1xf32>
    %409 = vector.broadcast %408 : vector<16x1xf32> to vector<16x32xf32>
    %410 = arith.mulf %405, %409 : vector<16x32xf32>
    %411 = vector.broadcast %390 : vector<1x32xf32> to vector<16x32xf32>
    %412 = arith.mulf %410, %411 : vector<16x32xf32>
    %413 = vector.broadcast %392 : vector<1x32xf32> to vector<16x32xf32>
    %414 = arith.addf %412, %413 : vector<16x32xf32>
    %c1 = arith.constant 1 : index
    %c0_112 = arith.constant 0 : index
    %c0_113 = arith.constant 0 : index
    %415 = vector.load %arg2[%c1, %c0_112, %c0_113] : memref<2x32x96xf32, #tpu.memory_space<vmem>>, vector<1x32x96xf32>
    %416 = vector.shape_cast %415 : vector<1x32x96xf32> to vector<32x96xf32>
    %cst_114 = arith.constant dense<0.000000e+00> : vector<16x96xf32>
    %417 = tpu.matmul %414, %416, %cst_114 {dimension_numbers = #tpu.dot_dimension_numbers<[1], [0], [0], [1], [0, 0, 1, 1], [], []>} : vector<16x32xf32>, vector<32x96xf32>, vector<16x96xf32> -> vector<16x96xf32>
    %c1_115 = arith.constant 1 : index
    %c0_116 = arith.constant 0 : index
    %c0_117 = arith.constant 0 : index
    %418 = vector.load %arg3[%c1_115, %c0_116, %c0_117] : memref<2x1x96xf32, #tpu.memory_space<vmem>>, vector<1x1x96xf32>
    %419 = vector.shape_cast %418 : vector<1x1x96xf32> to vector<1x96xf32>
    %420 = vector.broadcast %419 : vector<1x96xf32> to vector<16x96xf32>
    %421 = arith.addf %417, %420 : vector<16x96xf32>
    %422 = vector.extract_strided_slice %421 {offsets = [0, 0], sizes = [16, 32], strides = [1, 1]} : vector<16x96xf32> to vector<16x32xf32>
    %423 = vector.extract_strided_slice %421 {offsets = [0, 32], sizes = [16, 32], strides = [1, 1]} : vector<16x96xf32> to vector<16x32xf32>
    %424 = vector.extract_strided_slice %421 {offsets = [0, 64], sizes = [16, 32], strides = [1, 1]} : vector<16x96xf32> to vector<16x32xf32>
    %425 = vector.shape_cast %422 : vector<16x32xf32> to vector<2x8x32xf32>
    %426 = vector.shape_cast %423 : vector<16x32xf32> to vector<2x8x32xf32>
    %427 = vector.shape_cast %424 : vector<16x32xf32> to vector<2x8x32xf32>
    %428 = vector.extract_strided_slice %425 {offsets = [0, 0, 0], sizes = [1, 8, 8], strides = [1, 1, 1]} : vector<2x8x32xf32> to vector<1x8x8xf32>
    %429 = vector.shape_cast %428 : vector<1x8x8xf32> to vector<8x8xf32>
    %430 = vector.extract_strided_slice %425 {offsets = [0, 0, 8], sizes = [1, 8, 8], strides = [1, 1, 1]} : vector<2x8x32xf32> to vector<1x8x8xf32>
    %431 = vector.shape_cast %430 : vector<1x8x8xf32> to vector<8x8xf32>
    %432 = vector.extract_strided_slice %425 {offsets = [0, 0, 16], sizes = [1, 8, 8], strides = [1, 1, 1]} : vector<2x8x32xf32> to vector<1x8x8xf32>
    %433 = vector.shape_cast %432 : vector<1x8x8xf32> to vector<8x8xf32>
    %434 = vector.extract_strided_slice %425 {offsets = [0, 0, 24], sizes = [1, 8, 8], strides = [1, 1, 1]} : vector<2x8x32xf32> to vector<1x8x8xf32>
    %435 = vector.shape_cast %434 : vector<1x8x8xf32> to vector<8x8xf32>
    %436 = vector.shape_cast %429 : vector<8x8xf32> to vector<1x8x8xf32>
    %437 = vector.shape_cast %431 : vector<8x8xf32> to vector<1x8x8xf32>
    %438 = vector.shape_cast %433 : vector<8x8xf32> to vector<1x8x8xf32>
    %439 = vector.shape_cast %435 : vector<8x8xf32> to vector<1x8x8xf32>
    %440 = tpu.concatenate %436, %437, %438, %439 in 0 : vector<1x8x8xf32>, vector<1x8x8xf32>, vector<1x8x8xf32>, vector<1x8x8xf32> -> vector<4x8x8xf32>
    %441 = vector.extract_strided_slice %426 {offsets = [0, 0, 0], sizes = [1, 8, 8], strides = [1, 1, 1]} : vector<2x8x32xf32> to vector<1x8x8xf32>
    %442 = vector.shape_cast %441 : vector<1x8x8xf32> to vector<8x8xf32>
    %443 = vector.extract_strided_slice %426 {offsets = [0, 0, 8], sizes = [1, 8, 8], strides = [1, 1, 1]} : vector<2x8x32xf32> to vector<1x8x8xf32>
    %444 = vector.shape_cast %443 : vector<1x8x8xf32> to vector<8x8xf32>
    %445 = vector.extract_strided_slice %426 {offsets = [0, 0, 16], sizes = [1, 8, 8], strides = [1, 1, 1]} : vector<2x8x32xf32> to vector<1x8x8xf32>
    %446 = vector.shape_cast %445 : vector<1x8x8xf32> to vector<8x8xf32>
    %447 = vector.extract_strided_slice %426 {offsets = [0, 0, 24], sizes = [1, 8, 8], strides = [1, 1, 1]} : vector<2x8x32xf32> to vector<1x8x8xf32>
    %448 = vector.shape_cast %447 : vector<1x8x8xf32> to vector<8x8xf32>
    %449 = vector.shape_cast %442 : vector<8x8xf32> to vector<1x8x8xf32>
    %450 = vector.shape_cast %444 : vector<8x8xf32> to vector<1x8x8xf32>
    %451 = vector.shape_cast %446 : vector<8x8xf32> to vector<1x8x8xf32>
    %452 = vector.shape_cast %448 : vector<8x8xf32> to vector<1x8x8xf32>
    %453 = tpu.concatenate %449, %450, %451, %452 in 0 : vector<1x8x8xf32>, vector<1x8x8xf32>, vector<1x8x8xf32>, vector<1x8x8xf32> -> vector<4x8x8xf32>
    %454 = vector.extract_strided_slice %427 {offsets = [0, 0, 0], sizes = [1, 8, 8], strides = [1, 1, 1]} : vector<2x8x32xf32> to vector<1x8x8xf32>
    %455 = vector.shape_cast %454 : vector<1x8x8xf32> to vector<8x8xf32>
    %456 = vector.extract_strided_slice %427 {offsets = [0, 0, 8], sizes = [1, 8, 8], strides = [1, 1, 1]} : vector<2x8x32xf32> to vector<1x8x8xf32>
    %457 = vector.shape_cast %456 : vector<1x8x8xf32> to vector<8x8xf32>
    %458 = vector.extract_strided_slice %427 {offsets = [0, 0, 16], sizes = [1, 8, 8], strides = [1, 1, 1]} : vector<2x8x32xf32> to vector<1x8x8xf32>
    %459 = vector.shape_cast %458 : vector<1x8x8xf32> to vector<8x8xf32>
    %460 = vector.extract_strided_slice %427 {offsets = [0, 0, 24], sizes = [1, 8, 8], strides = [1, 1, 1]} : vector<2x8x32xf32> to vector<1x8x8xf32>
    %461 = vector.shape_cast %460 : vector<1x8x8xf32> to vector<8x8xf32>
    %462 = vector.shape_cast %455 : vector<8x8xf32> to vector<1x8x8xf32>
    %463 = vector.shape_cast %457 : vector<8x8xf32> to vector<1x8x8xf32>
    %464 = vector.shape_cast %459 : vector<8x8xf32> to vector<1x8x8xf32>
    %465 = vector.shape_cast %461 : vector<8x8xf32> to vector<1x8x8xf32>
    %466 = tpu.concatenate %462, %463, %464, %465 in 0 : vector<1x8x8xf32>, vector<1x8x8xf32>, vector<1x8x8xf32>, vector<1x8x8xf32> -> vector<4x8x8xf32>
    %cst_118 = arith.constant dense<0.000000e+00> : vector<4x8x8xf32>
    %467 = tpu.matmul %440, %453, %cst_118 {dimension_numbers = #tpu.dot_dimension_numbers<[2], [2], [1], [1], [0, 0, 0, 1, 1, 1], [0], [0]>} : vector<4x8x8xf32>, vector<4x8x8xf32>, vector<4x8x8xf32> -> vector<4x8x8xf32>
    %cst_119 = arith.constant 0.353553385 : f32
    %468 = vector.broadcast %cst_119 : f32 to vector<4x8x8xf32>
    %469 = arith.mulf %467, %468 : vector<4x8x8xf32>
    %cst_120 = arith.constant -1.000000e+30 : f32
    %470 = vector.shape_cast %6 : vector<8x8xi1> to vector<1x8x8xi1>
    %471 = vector.broadcast %470 : vector<1x8x8xi1> to vector<4x8x8xi1>
    %472 = vector.broadcast %cst_120 : f32 to vector<4x8x8xf32>
    %473 = arith.select %471, %469, %472 : vector<4x8x8xi1>, vector<4x8x8xf32>
    %cst_121 = arith.constant dense<0xFF800000> : vector<4x8xf32>
    %474 = vector.multi_reduction <maximumf>, %473, %cst_121 [2] : vector<4x8x8xf32> to vector<4x8xf32>
    %475 = vector.shape_cast %474 : vector<4x8xf32> to vector<4x8x1xf32>
    %476 = vector.broadcast %475 : vector<4x8x1xf32> to vector<4x8x8xf32>
    %477 = arith.subf %473, %476 : vector<4x8x8xf32>
    %478 = math.exp %477 : vector<4x8x8xf32>
    %cst_122 = arith.constant dense<0.000000e+00> : vector<4x8xf32>
    %479 = vector.multi_reduction <add>, %478, %cst_122 [2] : vector<4x8x8xf32> to vector<4x8xf32>
    %480 = vector.shape_cast %479 : vector<4x8xf32> to vector<4x8x1xf32>
    %481 = vector.broadcast %480 : vector<4x8x1xf32> to vector<4x8x8xf32>
    %482 = arith.divf %478, %481 : vector<4x8x8xf32>
    %cst_123 = arith.constant dense<0.000000e+00> : vector<4x8x8xf32>
    %483 = tpu.matmul %482, %466, %cst_123 {dimension_numbers = #tpu.dot_dimension_numbers<[2], [1], [1], [2], [0, 0, 0, 1, 1, 2], [0], [0]>} : vector<4x8x8xf32>, vector<4x8x8xf32>, vector<4x8x8xf32> -> vector<4x8x8xf32>
    %484 = vector.extract_strided_slice %483 {offsets = [0, 0, 0], sizes = [1, 8, 8], strides = [1, 1, 1]} : vector<4x8x8xf32> to vector<1x8x8xf32>
    %485 = vector.shape_cast %484 : vector<1x8x8xf32> to vector<8x8xf32>
    %486 = vector.extract_strided_slice %483 {offsets = [1, 0, 0], sizes = [1, 8, 8], strides = [1, 1, 1]} : vector<4x8x8xf32> to vector<1x8x8xf32>
    %487 = vector.shape_cast %486 : vector<1x8x8xf32> to vector<8x8xf32>
    %488 = vector.extract_strided_slice %483 {offsets = [2, 0, 0], sizes = [1, 8, 8], strides = [1, 1, 1]} : vector<4x8x8xf32> to vector<1x8x8xf32>
    %489 = vector.shape_cast %488 : vector<1x8x8xf32> to vector<8x8xf32>
    %490 = vector.extract_strided_slice %483 {offsets = [3, 0, 0], sizes = [1, 8, 8], strides = [1, 1, 1]} : vector<4x8x8xf32> to vector<1x8x8xf32>
    %491 = vector.shape_cast %490 : vector<1x8x8xf32> to vector<8x8xf32>
    %492 = tpu.concatenate %485, %487, %489, %491 in 1 : vector<8x8xf32>, vector<8x8xf32>, vector<8x8xf32>, vector<8x8xf32> -> vector<8x32xf32>
    %493 = vector.extract_strided_slice %425 {offsets = [1, 0, 0], sizes = [1, 8, 8], strides = [1, 1, 1]} : vector<2x8x32xf32> to vector<1x8x8xf32>
    %494 = vector.shape_cast %493 : vector<1x8x8xf32> to vector<8x8xf32>
    %495 = vector.extract_strided_slice %425 {offsets = [1, 0, 8], sizes = [1, 8, 8], strides = [1, 1, 1]} : vector<2x8x32xf32> to vector<1x8x8xf32>
    %496 = vector.shape_cast %495 : vector<1x8x8xf32> to vector<8x8xf32>
    %497 = vector.extract_strided_slice %425 {offsets = [1, 0, 16], sizes = [1, 8, 8], strides = [1, 1, 1]} : vector<2x8x32xf32> to vector<1x8x8xf32>
    %498 = vector.shape_cast %497 : vector<1x8x8xf32> to vector<8x8xf32>
    %499 = vector.extract_strided_slice %425 {offsets = [1, 0, 24], sizes = [1, 8, 8], strides = [1, 1, 1]} : vector<2x8x32xf32> to vector<1x8x8xf32>
    %500 = vector.shape_cast %499 : vector<1x8x8xf32> to vector<8x8xf32>
    %501 = vector.shape_cast %494 : vector<8x8xf32> to vector<1x8x8xf32>
    %502 = vector.shape_cast %496 : vector<8x8xf32> to vector<1x8x8xf32>
    %503 = vector.shape_cast %498 : vector<8x8xf32> to vector<1x8x8xf32>
    %504 = vector.shape_cast %500 : vector<8x8xf32> to vector<1x8x8xf32>
    %505 = tpu.concatenate %501, %502, %503, %504 in 0 : vector<1x8x8xf32>, vector<1x8x8xf32>, vector<1x8x8xf32>, vector<1x8x8xf32> -> vector<4x8x8xf32>
    %506 = vector.extract_strided_slice %426 {offsets = [1, 0, 0], sizes = [1, 8, 8], strides = [1, 1, 1]} : vector<2x8x32xf32> to vector<1x8x8xf32>
    %507 = vector.shape_cast %506 : vector<1x8x8xf32> to vector<8x8xf32>
    %508 = vector.extract_strided_slice %426 {offsets = [1, 0, 8], sizes = [1, 8, 8], strides = [1, 1, 1]} : vector<2x8x32xf32> to vector<1x8x8xf32>
    %509 = vector.shape_cast %508 : vector<1x8x8xf32> to vector<8x8xf32>
    %510 = vector.extract_strided_slice %426 {offsets = [1, 0, 16], sizes = [1, 8, 8], strides = [1, 1, 1]} : vector<2x8x32xf32> to vector<1x8x8xf32>
    %511 = vector.shape_cast %510 : vector<1x8x8xf32> to vector<8x8xf32>
    %512 = vector.extract_strided_slice %426 {offsets = [1, 0, 24], sizes = [1, 8, 8], strides = [1, 1, 1]} : vector<2x8x32xf32> to vector<1x8x8xf32>
    %513 = vector.shape_cast %512 : vector<1x8x8xf32> to vector<8x8xf32>
    %514 = vector.shape_cast %507 : vector<8x8xf32> to vector<1x8x8xf32>
    %515 = vector.shape_cast %509 : vector<8x8xf32> to vector<1x8x8xf32>
    %516 = vector.shape_cast %511 : vector<8x8xf32> to vector<1x8x8xf32>
    %517 = vector.shape_cast %513 : vector<8x8xf32> to vector<1x8x8xf32>
    %518 = tpu.concatenate %514, %515, %516, %517 in 0 : vector<1x8x8xf32>, vector<1x8x8xf32>, vector<1x8x8xf32>, vector<1x8x8xf32> -> vector<4x8x8xf32>
    %519 = vector.extract_strided_slice %427 {offsets = [1, 0, 0], sizes = [1, 8, 8], strides = [1, 1, 1]} : vector<2x8x32xf32> to vector<1x8x8xf32>
    %520 = vector.shape_cast %519 : vector<1x8x8xf32> to vector<8x8xf32>
    %521 = vector.extract_strided_slice %427 {offsets = [1, 0, 8], sizes = [1, 8, 8], strides = [1, 1, 1]} : vector<2x8x32xf32> to vector<1x8x8xf32>
    %522 = vector.shape_cast %521 : vector<1x8x8xf32> to vector<8x8xf32>
    %523 = vector.extract_strided_slice %427 {offsets = [1, 0, 16], sizes = [1, 8, 8], strides = [1, 1, 1]} : vector<2x8x32xf32> to vector<1x8x8xf32>
    %524 = vector.shape_cast %523 : vector<1x8x8xf32> to vector<8x8xf32>
    %525 = vector.extract_strided_slice %427 {offsets = [1, 0, 24], sizes = [1, 8, 8], strides = [1, 1, 1]} : vector<2x8x32xf32> to vector<1x8x8xf32>
    %526 = vector.shape_cast %525 : vector<1x8x8xf32> to vector<8x8xf32>
    %527 = vector.shape_cast %520 : vector<8x8xf32> to vector<1x8x8xf32>
    %528 = vector.shape_cast %522 : vector<8x8xf32> to vector<1x8x8xf32>
    %529 = vector.shape_cast %524 : vector<8x8xf32> to vector<1x8x8xf32>
    %530 = vector.shape_cast %526 : vector<8x8xf32> to vector<1x8x8xf32>
    %531 = tpu.concatenate %527, %528, %529, %530 in 0 : vector<1x8x8xf32>, vector<1x8x8xf32>, vector<1x8x8xf32>, vector<1x8x8xf32> -> vector<4x8x8xf32>
    %cst_124 = arith.constant dense<0.000000e+00> : vector<4x8x8xf32>
    %532 = tpu.matmul %505, %518, %cst_124 {dimension_numbers = #tpu.dot_dimension_numbers<[2], [2], [1], [1], [0, 0, 0, 1, 1, 1], [0], [0]>} : vector<4x8x8xf32>, vector<4x8x8xf32>, vector<4x8x8xf32> -> vector<4x8x8xf32>
    %cst_125 = arith.constant 0.353553385 : f32
    %533 = vector.broadcast %cst_125 : f32 to vector<4x8x8xf32>
    %534 = arith.mulf %532, %533 : vector<4x8x8xf32>
    %cst_126 = arith.constant -1.000000e+30 : f32
    %535 = vector.shape_cast %6 : vector<8x8xi1> to vector<1x8x8xi1>
    %536 = vector.broadcast %535 : vector<1x8x8xi1> to vector<4x8x8xi1>
    %537 = vector.broadcast %cst_126 : f32 to vector<4x8x8xf32>
    %538 = arith.select %536, %534, %537 : vector<4x8x8xi1>, vector<4x8x8xf32>
    %cst_127 = arith.constant dense<0xFF800000> : vector<4x8xf32>
    %539 = vector.multi_reduction <maximumf>, %538, %cst_127 [2] : vector<4x8x8xf32> to vector<4x8xf32>
    %540 = vector.shape_cast %539 : vector<4x8xf32> to vector<4x8x1xf32>
    %541 = vector.broadcast %540 : vector<4x8x1xf32> to vector<4x8x8xf32>
    %542 = arith.subf %538, %541 : vector<4x8x8xf32>
    %543 = math.exp %542 : vector<4x8x8xf32>
    %cst_128 = arith.constant dense<0.000000e+00> : vector<4x8xf32>
    %544 = vector.multi_reduction <add>, %543, %cst_128 [2] : vector<4x8x8xf32> to vector<4x8xf32>
    %545 = vector.shape_cast %544 : vector<4x8xf32> to vector<4x8x1xf32>
    %546 = vector.broadcast %545 : vector<4x8x1xf32> to vector<4x8x8xf32>
    %547 = arith.divf %543, %546 : vector<4x8x8xf32>
    %cst_129 = arith.constant dense<0.000000e+00> : vector<4x8x8xf32>
    %548 = tpu.matmul %547, %531, %cst_129 {dimension_numbers = #tpu.dot_dimension_numbers<[2], [1], [1], [2], [0, 0, 0, 1, 1, 2], [0], [0]>} : vector<4x8x8xf32>, vector<4x8x8xf32>, vector<4x8x8xf32> -> vector<4x8x8xf32>
    %549 = vector.extract_strided_slice %548 {offsets = [0, 0, 0], sizes = [1, 8, 8], strides = [1, 1, 1]} : vector<4x8x8xf32> to vector<1x8x8xf32>
    %550 = vector.shape_cast %549 : vector<1x8x8xf32> to vector<8x8xf32>
    %551 = vector.extract_strided_slice %548 {offsets = [1, 0, 0], sizes = [1, 8, 8], strides = [1, 1, 1]} : vector<4x8x8xf32> to vector<1x8x8xf32>
    %552 = vector.shape_cast %551 : vector<1x8x8xf32> to vector<8x8xf32>
    %553 = vector.extract_strided_slice %548 {offsets = [2, 0, 0], sizes = [1, 8, 8], strides = [1, 1, 1]} : vector<4x8x8xf32> to vector<1x8x8xf32>
    %554 = vector.shape_cast %553 : vector<1x8x8xf32> to vector<8x8xf32>
    %555 = vector.extract_strided_slice %548 {offsets = [3, 0, 0], sizes = [1, 8, 8], strides = [1, 1, 1]} : vector<4x8x8xf32> to vector<1x8x8xf32>
    %556 = vector.shape_cast %555 : vector<1x8x8xf32> to vector<8x8xf32>
    %557 = tpu.concatenate %550, %552, %554, %556 in 1 : vector<8x8xf32>, vector<8x8xf32>, vector<8x8xf32>, vector<8x8xf32> -> vector<8x32xf32>
    %558 = tpu.concatenate %492, %557 in 0 : vector<8x32xf32>, vector<8x32xf32> -> vector<16x32xf32>
    %c1_130 = arith.constant 1 : index
    %c0_131 = arith.constant 0 : index
    %c0_132 = arith.constant 0 : index
    %559 = vector.load %arg4[%c1_130, %c0_131, %c0_132] : memref<2x32x32xf32, #tpu.memory_space<vmem>>, vector<1x32x32xf32>
    %560 = vector.shape_cast %559 : vector<1x32x32xf32> to vector<32x32xf32>
    %cst_133 = arith.constant dense<0.000000e+00> : vector<16x32xf32>
    %561 = tpu.matmul %558, %560, %cst_133 {dimension_numbers = #tpu.dot_dimension_numbers<[1], [0], [0], [1], [0, 0, 1, 1], [], []>} : vector<16x32xf32>, vector<32x32xf32>, vector<16x32xf32> -> vector<16x32xf32>
    %c1_134 = arith.constant 1 : index
    %c0_135 = arith.constant 0 : index
    %c0_136 = arith.constant 0 : index
    %562 = vector.load %arg5[%c1_134, %c0_135, %c0_136] : memref<2x1x32xf32, #tpu.memory_space<vmem>>, vector<1x1x32xf32>
    %563 = vector.shape_cast %562 : vector<1x1x32xf32> to vector<1x32xf32>
    %564 = vector.broadcast %563 : vector<1x32xf32> to vector<16x32xf32>
    %565 = arith.addf %561, %564 : vector<16x32xf32>
    %566 = arith.addf %414, %565 : vector<16x32xf32>
    %c1_137 = arith.constant 1 : index
    %c0_138 = arith.constant 0 : index
    %c0_139 = arith.constant 0 : index
    %567 = vector.load %arg6[%c1_137, %c0_138, %c0_139] : memref<2x1x32xf32, #tpu.memory_space<vmem>>, vector<1x1x32xf32>
    %568 = vector.shape_cast %567 : vector<1x1x32xf32> to vector<1x32xf32>
    %c1_140 = arith.constant 1 : index
    %c0_141 = arith.constant 0 : index
    %c0_142 = arith.constant 0 : index
    %569 = vector.load %arg7[%c1_140, %c0_141, %c0_142] : memref<2x1x32xf32, #tpu.memory_space<vmem>>, vector<1x1x32xf32>
    %570 = vector.shape_cast %569 : vector<1x1x32xf32> to vector<1x32xf32>
    %cst_143 = arith.constant dense<0.000000e+00> : vector<16xf32>
    %571 = vector.multi_reduction <add>, %566, %cst_143 [1] : vector<16x32xf32> to vector<16xf32>
    %572 = vector.shape_cast %571 : vector<16xf32> to vector<16x1xf32>
    %cst_144 = arith.constant 3.200000e+01 : f32
    %573 = vector.broadcast %cst_144 : f32 to vector<16x1xf32>
    %574 = arith.divf %572, %573 : vector<16x1xf32>
    %575 = vector.broadcast %574 : vector<16x1xf32> to vector<16x32xf32>
    %576 = arith.subf %566, %575 : vector<16x32xf32>
    %577 = arith.mulf %576, %576 : vector<16x32xf32>
    %cst_145 = arith.constant dense<0.000000e+00> : vector<16xf32>
    %578 = vector.multi_reduction <add>, %577, %cst_145 [1] : vector<16x32xf32> to vector<16xf32>
    %579 = vector.shape_cast %578 : vector<16xf32> to vector<16x1xf32>
    %cst_146 = arith.constant 3.200000e+01 : f32
    %580 = vector.broadcast %cst_146 : f32 to vector<16x1xf32>
    %581 = arith.divf %579, %580 : vector<16x1xf32>
    %582 = vector.broadcast %574 : vector<16x1xf32> to vector<16x32xf32>
    %583 = arith.subf %566, %582 : vector<16x32xf32>
    %cst_147 = arith.constant 9.99999974E-6 : f32
    %584 = vector.broadcast %cst_147 : f32 to vector<16x1xf32>
    %585 = arith.addf %581, %584 : vector<16x1xf32>
    %586 = math.rsqrt %585 : vector<16x1xf32>
    %587 = vector.broadcast %586 : vector<16x1xf32> to vector<16x32xf32>
    %588 = arith.mulf %583, %587 : vector<16x32xf32>
    %589 = vector.broadcast %568 : vector<1x32xf32> to vector<16x32xf32>
    %590 = arith.mulf %588, %589 : vector<16x32xf32>
    %591 = vector.broadcast %570 : vector<1x32xf32> to vector<16x32xf32>
    %592 = arith.addf %590, %591 : vector<16x32xf32>
    %c1_148 = arith.constant 1 : index
    %c0_149 = arith.constant 0 : index
    %c0_150 = arith.constant 0 : index
    %593 = vector.load %arg8[%c1_148, %c0_149, %c0_150] : memref<2x32x32xf32, #tpu.memory_space<vmem>>, vector<1x32x32xf32>
    %594 = vector.shape_cast %593 : vector<1x32x32xf32> to vector<32x32xf32>
    %cst_151 = arith.constant dense<0.000000e+00> : vector<16x32xf32>
    %595 = tpu.matmul %592, %594, %cst_151 {dimension_numbers = #tpu.dot_dimension_numbers<[1], [0], [0], [1], [0, 0, 1, 1], [], []>} : vector<16x32xf32>, vector<32x32xf32>, vector<16x32xf32> -> vector<16x32xf32>
    %c1_152 = arith.constant 1 : index
    %c0_153 = arith.constant 0 : index
    %c0_154 = arith.constant 0 : index
    %596 = vector.load %arg9[%c1_152, %c0_153, %c0_154] : memref<2x1x32xf32, #tpu.memory_space<vmem>>, vector<1x1x32xf32>
    %597 = vector.shape_cast %596 : vector<1x1x32xf32> to vector<1x32xf32>
    %598 = vector.broadcast %597 : vector<1x32xf32> to vector<16x32xf32>
    %599 = arith.addf %595, %598 : vector<16x32xf32>
    %c1_155 = arith.constant 1 : index
    %c0_156 = arith.constant 0 : index
    %c0_157 = arith.constant 0 : index
    %600 = vector.load %arg10[%c1_155, %c0_156, %c0_157] : memref<2x32x64xf32, #tpu.memory_space<vmem>>, vector<1x32x64xf32>
    %601 = vector.shape_cast %600 : vector<1x32x64xf32> to vector<32x64xf32>
    %cst_158 = arith.constant dense<0.000000e+00> : vector<16x64xf32>
    %602 = tpu.matmul %3, %601, %cst_158 {dimension_numbers = #tpu.dot_dimension_numbers<[1], [0], [0], [1], [0, 0, 1, 1], [], []>} : vector<16x32xf32>, vector<32x64xf32>, vector<16x64xf32> -> vector<16x64xf32>
    %c1_159 = arith.constant 1 : index
    %c0_160 = arith.constant 0 : index
    %c0_161 = arith.constant 0 : index
    %603 = vector.load %arg11[%c1_159, %c0_160, %c0_161] : memref<2x1x64xf32, #tpu.memory_space<vmem>>, vector<1x1x64xf32>
    %604 = vector.shape_cast %603 : vector<1x1x64xf32> to vector<1x64xf32>
    %605 = vector.broadcast %604 : vector<1x64xf32> to vector<16x64xf32>
    %606 = arith.addf %602, %605 : vector<16x64xf32>
    %607 = vector.extract_strided_slice %606 {offsets = [0, 0], sizes = [16, 32], strides = [1, 1]} : vector<16x64xf32> to vector<16x32xf32>
    %608 = vector.extract_strided_slice %606 {offsets = [0, 32], sizes = [16, 32], strides = [1, 1]} : vector<16x64xf32> to vector<16x32xf32>
    %609 = vector.shape_cast %599 : vector<16x32xf32> to vector<2x8x32xf32>
    %610 = vector.shape_cast %607 : vector<16x32xf32> to vector<2x8x32xf32>
    %611 = vector.shape_cast %608 : vector<16x32xf32> to vector<2x8x32xf32>
    %612 = vector.extract_strided_slice %609 {offsets = [0, 0, 0], sizes = [1, 8, 8], strides = [1, 1, 1]} : vector<2x8x32xf32> to vector<1x8x8xf32>
    %613 = vector.shape_cast %612 : vector<1x8x8xf32> to vector<8x8xf32>
    %614 = vector.extract_strided_slice %609 {offsets = [0, 0, 8], sizes = [1, 8, 8], strides = [1, 1, 1]} : vector<2x8x32xf32> to vector<1x8x8xf32>
    %615 = vector.shape_cast %614 : vector<1x8x8xf32> to vector<8x8xf32>
    %616 = vector.extract_strided_slice %609 {offsets = [0, 0, 16], sizes = [1, 8, 8], strides = [1, 1, 1]} : vector<2x8x32xf32> to vector<1x8x8xf32>
    %617 = vector.shape_cast %616 : vector<1x8x8xf32> to vector<8x8xf32>
    %618 = vector.extract_strided_slice %609 {offsets = [0, 0, 24], sizes = [1, 8, 8], strides = [1, 1, 1]} : vector<2x8x32xf32> to vector<1x8x8xf32>
    %619 = vector.shape_cast %618 : vector<1x8x8xf32> to vector<8x8xf32>
    %620 = vector.shape_cast %613 : vector<8x8xf32> to vector<1x8x8xf32>
    %621 = vector.shape_cast %615 : vector<8x8xf32> to vector<1x8x8xf32>
    %622 = vector.shape_cast %617 : vector<8x8xf32> to vector<1x8x8xf32>
    %623 = vector.shape_cast %619 : vector<8x8xf32> to vector<1x8x8xf32>
    %624 = tpu.concatenate %620, %621, %622, %623 in 0 : vector<1x8x8xf32>, vector<1x8x8xf32>, vector<1x8x8xf32>, vector<1x8x8xf32> -> vector<4x8x8xf32>
    %625 = vector.extract_strided_slice %610 {offsets = [0, 0, 0], sizes = [1, 8, 8], strides = [1, 1, 1]} : vector<2x8x32xf32> to vector<1x8x8xf32>
    %626 = vector.shape_cast %625 : vector<1x8x8xf32> to vector<8x8xf32>
    %627 = vector.extract_strided_slice %610 {offsets = [0, 0, 8], sizes = [1, 8, 8], strides = [1, 1, 1]} : vector<2x8x32xf32> to vector<1x8x8xf32>
    %628 = vector.shape_cast %627 : vector<1x8x8xf32> to vector<8x8xf32>
    %629 = vector.extract_strided_slice %610 {offsets = [0, 0, 16], sizes = [1, 8, 8], strides = [1, 1, 1]} : vector<2x8x32xf32> to vector<1x8x8xf32>
    %630 = vector.shape_cast %629 : vector<1x8x8xf32> to vector<8x8xf32>
    %631 = vector.extract_strided_slice %610 {offsets = [0, 0, 24], sizes = [1, 8, 8], strides = [1, 1, 1]} : vector<2x8x32xf32> to vector<1x8x8xf32>
    %632 = vector.shape_cast %631 : vector<1x8x8xf32> to vector<8x8xf32>
    %633 = vector.shape_cast %626 : vector<8x8xf32> to vector<1x8x8xf32>
    %634 = vector.shape_cast %628 : vector<8x8xf32> to vector<1x8x8xf32>
    %635 = vector.shape_cast %630 : vector<8x8xf32> to vector<1x8x8xf32>
    %636 = vector.shape_cast %632 : vector<8x8xf32> to vector<1x8x8xf32>
    %637 = tpu.concatenate %633, %634, %635, %636 in 0 : vector<1x8x8xf32>, vector<1x8x8xf32>, vector<1x8x8xf32>, vector<1x8x8xf32> -> vector<4x8x8xf32>
    %638 = vector.extract_strided_slice %611 {offsets = [0, 0, 0], sizes = [1, 8, 8], strides = [1, 1, 1]} : vector<2x8x32xf32> to vector<1x8x8xf32>
    %639 = vector.shape_cast %638 : vector<1x8x8xf32> to vector<8x8xf32>
    %640 = vector.extract_strided_slice %611 {offsets = [0, 0, 8], sizes = [1, 8, 8], strides = [1, 1, 1]} : vector<2x8x32xf32> to vector<1x8x8xf32>
    %641 = vector.shape_cast %640 : vector<1x8x8xf32> to vector<8x8xf32>
    %642 = vector.extract_strided_slice %611 {offsets = [0, 0, 16], sizes = [1, 8, 8], strides = [1, 1, 1]} : vector<2x8x32xf32> to vector<1x8x8xf32>
    %643 = vector.shape_cast %642 : vector<1x8x8xf32> to vector<8x8xf32>
    %644 = vector.extract_strided_slice %611 {offsets = [0, 0, 24], sizes = [1, 8, 8], strides = [1, 1, 1]} : vector<2x8x32xf32> to vector<1x8x8xf32>
    %645 = vector.shape_cast %644 : vector<1x8x8xf32> to vector<8x8xf32>
    %646 = vector.shape_cast %639 : vector<8x8xf32> to vector<1x8x8xf32>
    %647 = vector.shape_cast %641 : vector<8x8xf32> to vector<1x8x8xf32>
    %648 = vector.shape_cast %643 : vector<8x8xf32> to vector<1x8x8xf32>
    %649 = vector.shape_cast %645 : vector<8x8xf32> to vector<1x8x8xf32>
    %650 = tpu.concatenate %646, %647, %648, %649 in 0 : vector<1x8x8xf32>, vector<1x8x8xf32>, vector<1x8x8xf32>, vector<1x8x8xf32> -> vector<4x8x8xf32>
    %cst_162 = arith.constant dense<0.000000e+00> : vector<4x8x8xf32>
    %651 = tpu.matmul %624, %637, %cst_162 {dimension_numbers = #tpu.dot_dimension_numbers<[2], [2], [1], [1], [0, 0, 0, 1, 1, 1], [0], [0]>} : vector<4x8x8xf32>, vector<4x8x8xf32>, vector<4x8x8xf32> -> vector<4x8x8xf32>
    %cst_163 = arith.constant 0.353553385 : f32
    %652 = vector.broadcast %cst_163 : f32 to vector<4x8x8xf32>
    %653 = arith.mulf %651, %652 : vector<4x8x8xf32>
    %cst_164 = arith.constant dense<0xFF800000> : vector<4x8xf32>
    %654 = vector.multi_reduction <maximumf>, %653, %cst_164 [2] : vector<4x8x8xf32> to vector<4x8xf32>
    %655 = vector.shape_cast %654 : vector<4x8xf32> to vector<4x8x1xf32>
    %656 = vector.broadcast %655 : vector<4x8x1xf32> to vector<4x8x8xf32>
    %657 = arith.subf %653, %656 : vector<4x8x8xf32>
    %658 = math.exp %657 : vector<4x8x8xf32>
    %cst_165 = arith.constant dense<0.000000e+00> : vector<4x8xf32>
    %659 = vector.multi_reduction <add>, %658, %cst_165 [2] : vector<4x8x8xf32> to vector<4x8xf32>
    %660 = vector.shape_cast %659 : vector<4x8xf32> to vector<4x8x1xf32>
    %661 = vector.broadcast %660 : vector<4x8x1xf32> to vector<4x8x8xf32>
    %662 = arith.divf %658, %661 : vector<4x8x8xf32>
    %cst_166 = arith.constant dense<0.000000e+00> : vector<4x8x8xf32>
    %663 = tpu.matmul %662, %650, %cst_166 {dimension_numbers = #tpu.dot_dimension_numbers<[2], [1], [1], [2], [0, 0, 0, 1, 1, 2], [0], [0]>} : vector<4x8x8xf32>, vector<4x8x8xf32>, vector<4x8x8xf32> -> vector<4x8x8xf32>
    %664 = vector.extract_strided_slice %663 {offsets = [0, 0, 0], sizes = [1, 8, 8], strides = [1, 1, 1]} : vector<4x8x8xf32> to vector<1x8x8xf32>
    %665 = vector.shape_cast %664 : vector<1x8x8xf32> to vector<8x8xf32>
    %666 = vector.extract_strided_slice %663 {offsets = [1, 0, 0], sizes = [1, 8, 8], strides = [1, 1, 1]} : vector<4x8x8xf32> to vector<1x8x8xf32>
    %667 = vector.shape_cast %666 : vector<1x8x8xf32> to vector<8x8xf32>
    %668 = vector.extract_strided_slice %663 {offsets = [2, 0, 0], sizes = [1, 8, 8], strides = [1, 1, 1]} : vector<4x8x8xf32> to vector<1x8x8xf32>
    %669 = vector.shape_cast %668 : vector<1x8x8xf32> to vector<8x8xf32>
    %670 = vector.extract_strided_slice %663 {offsets = [3, 0, 0], sizes = [1, 8, 8], strides = [1, 1, 1]} : vector<4x8x8xf32> to vector<1x8x8xf32>
    %671 = vector.shape_cast %670 : vector<1x8x8xf32> to vector<8x8xf32>
    %672 = tpu.concatenate %665, %667, %669, %671 in 1 : vector<8x8xf32>, vector<8x8xf32>, vector<8x8xf32>, vector<8x8xf32> -> vector<8x32xf32>
    %673 = vector.extract_strided_slice %609 {offsets = [1, 0, 0], sizes = [1, 8, 8], strides = [1, 1, 1]} : vector<2x8x32xf32> to vector<1x8x8xf32>
    %674 = vector.shape_cast %673 : vector<1x8x8xf32> to vector<8x8xf32>
    %675 = vector.extract_strided_slice %609 {offsets = [1, 0, 8], sizes = [1, 8, 8], strides = [1, 1, 1]} : vector<2x8x32xf32> to vector<1x8x8xf32>
    %676 = vector.shape_cast %675 : vector<1x8x8xf32> to vector<8x8xf32>
    %677 = vector.extract_strided_slice %609 {offsets = [1, 0, 16], sizes = [1, 8, 8], strides = [1, 1, 1]} : vector<2x8x32xf32> to vector<1x8x8xf32>
    %678 = vector.shape_cast %677 : vector<1x8x8xf32> to vector<8x8xf32>
    %679 = vector.extract_strided_slice %609 {offsets = [1, 0, 24], sizes = [1, 8, 8], strides = [1, 1, 1]} : vector<2x8x32xf32> to vector<1x8x8xf32>
    %680 = vector.shape_cast %679 : vector<1x8x8xf32> to vector<8x8xf32>
    %681 = vector.shape_cast %674 : vector<8x8xf32> to vector<1x8x8xf32>
    %682 = vector.shape_cast %676 : vector<8x8xf32> to vector<1x8x8xf32>
    %683 = vector.shape_cast %678 : vector<8x8xf32> to vector<1x8x8xf32>
    %684 = vector.shape_cast %680 : vector<8x8xf32> to vector<1x8x8xf32>
    %685 = tpu.concatenate %681, %682, %683, %684 in 0 : vector<1x8x8xf32>, vector<1x8x8xf32>, vector<1x8x8xf32>, vector<1x8x8xf32> -> vector<4x8x8xf32>
    %686 = vector.extract_strided_slice %610 {offsets = [1, 0, 0], sizes = [1, 8, 8], strides = [1, 1, 1]} : vector<2x8x32xf32> to vector<1x8x8xf32>
    %687 = vector.shape_cast %686 : vector<1x8x8xf32> to vector<8x8xf32>
    %688 = vector.extract_strided_slice %610 {offsets = [1, 0, 8], sizes = [1, 8, 8], strides = [1, 1, 1]} : vector<2x8x32xf32> to vector<1x8x8xf32>
    %689 = vector.shape_cast %688 : vector<1x8x8xf32> to vector<8x8xf32>
    %690 = vector.extract_strided_slice %610 {offsets = [1, 0, 16], sizes = [1, 8, 8], strides = [1, 1, 1]} : vector<2x8x32xf32> to vector<1x8x8xf32>
    %691 = vector.shape_cast %690 : vector<1x8x8xf32> to vector<8x8xf32>
    %692 = vector.extract_strided_slice %610 {offsets = [1, 0, 24], sizes = [1, 8, 8], strides = [1, 1, 1]} : vector<2x8x32xf32> to vector<1x8x8xf32>
    %693 = vector.shape_cast %692 : vector<1x8x8xf32> to vector<8x8xf32>
    %694 = vector.shape_cast %687 : vector<8x8xf32> to vector<1x8x8xf32>
    %695 = vector.shape_cast %689 : vector<8x8xf32> to vector<1x8x8xf32>
    %696 = vector.shape_cast %691 : vector<8x8xf32> to vector<1x8x8xf32>
    %697 = vector.shape_cast %693 : vector<8x8xf32> to vector<1x8x8xf32>
    %698 = tpu.concatenate %694, %695, %696, %697 in 0 : vector<1x8x8xf32>, vector<1x8x8xf32>, vector<1x8x8xf32>, vector<1x8x8xf32> -> vector<4x8x8xf32>
    %699 = vector.extract_strided_slice %611 {offsets = [1, 0, 0], sizes = [1, 8, 8], strides = [1, 1, 1]} : vector<2x8x32xf32> to vector<1x8x8xf32>
    %700 = vector.shape_cast %699 : vector<1x8x8xf32> to vector<8x8xf32>
    %701 = vector.extract_strided_slice %611 {offsets = [1, 0, 8], sizes = [1, 8, 8], strides = [1, 1, 1]} : vector<2x8x32xf32> to vector<1x8x8xf32>
    %702 = vector.shape_cast %701 : vector<1x8x8xf32> to vector<8x8xf32>
    %703 = vector.extract_strided_slice %611 {offsets = [1, 0, 16], sizes = [1, 8, 8], strides = [1, 1, 1]} : vector<2x8x32xf32> to vector<1x8x8xf32>
    %704 = vector.shape_cast %703 : vector<1x8x8xf32> to vector<8x8xf32>
    %705 = vector.extract_strided_slice %611 {offsets = [1, 0, 24], sizes = [1, 8, 8], strides = [1, 1, 1]} : vector<2x8x32xf32> to vector<1x8x8xf32>
    %706 = vector.shape_cast %705 : vector<1x8x8xf32> to vector<8x8xf32>
    %707 = vector.shape_cast %700 : vector<8x8xf32> to vector<1x8x8xf32>
    %708 = vector.shape_cast %702 : vector<8x8xf32> to vector<1x8x8xf32>
    %709 = vector.shape_cast %704 : vector<8x8xf32> to vector<1x8x8xf32>
    %710 = vector.shape_cast %706 : vector<8x8xf32> to vector<1x8x8xf32>
    %711 = tpu.concatenate %707, %708, %709, %710 in 0 : vector<1x8x8xf32>, vector<1x8x8xf32>, vector<1x8x8xf32>, vector<1x8x8xf32> -> vector<4x8x8xf32>
    %cst_167 = arith.constant dense<0.000000e+00> : vector<4x8x8xf32>
    %712 = tpu.matmul %685, %698, %cst_167 {dimension_numbers = #tpu.dot_dimension_numbers<[2], [2], [1], [1], [0, 0, 0, 1, 1, 1], [0], [0]>} : vector<4x8x8xf32>, vector<4x8x8xf32>, vector<4x8x8xf32> -> vector<4x8x8xf32>
    %cst_168 = arith.constant 0.353553385 : f32
    %713 = vector.broadcast %cst_168 : f32 to vector<4x8x8xf32>
    %714 = arith.mulf %712, %713 : vector<4x8x8xf32>
    %cst_169 = arith.constant dense<0xFF800000> : vector<4x8xf32>
    %715 = vector.multi_reduction <maximumf>, %714, %cst_169 [2] : vector<4x8x8xf32> to vector<4x8xf32>
    %716 = vector.shape_cast %715 : vector<4x8xf32> to vector<4x8x1xf32>
    %717 = vector.broadcast %716 : vector<4x8x1xf32> to vector<4x8x8xf32>
    %718 = arith.subf %714, %717 : vector<4x8x8xf32>
    %719 = math.exp %718 : vector<4x8x8xf32>
    %cst_170 = arith.constant dense<0.000000e+00> : vector<4x8xf32>
    %720 = vector.multi_reduction <add>, %719, %cst_170 [2] : vector<4x8x8xf32> to vector<4x8xf32>
    %721 = vector.shape_cast %720 : vector<4x8xf32> to vector<4x8x1xf32>
    %722 = vector.broadcast %721 : vector<4x8x1xf32> to vector<4x8x8xf32>
    %723 = arith.divf %719, %722 : vector<4x8x8xf32>
    %cst_171 = arith.constant dense<0.000000e+00> : vector<4x8x8xf32>
    %724 = tpu.matmul %723, %711, %cst_171 {dimension_numbers = #tpu.dot_dimension_numbers<[2], [1], [1], [2], [0, 0, 0, 1, 1, 2], [0], [0]>} : vector<4x8x8xf32>, vector<4x8x8xf32>, vector<4x8x8xf32> -> vector<4x8x8xf32>
    %725 = vector.extract_strided_slice %724 {offsets = [0, 0, 0], sizes = [1, 8, 8], strides = [1, 1, 1]} : vector<4x8x8xf32> to vector<1x8x8xf32>
    %726 = vector.shape_cast %725 : vector<1x8x8xf32> to vector<8x8xf32>
    %727 = vector.extract_strided_slice %724 {offsets = [1, 0, 0], sizes = [1, 8, 8], strides = [1, 1, 1]} : vector<4x8x8xf32> to vector<1x8x8xf32>
    %728 = vector.shape_cast %727 : vector<1x8x8xf32> to vector<8x8xf32>
    %729 = vector.extract_strided_slice %724 {offsets = [2, 0, 0], sizes = [1, 8, 8], strides = [1, 1, 1]} : vector<4x8x8xf32> to vector<1x8x8xf32>
    %730 = vector.shape_cast %729 : vector<1x8x8xf32> to vector<8x8xf32>
    %731 = vector.extract_strided_slice %724 {offsets = [3, 0, 0], sizes = [1, 8, 8], strides = [1, 1, 1]} : vector<4x8x8xf32> to vector<1x8x8xf32>
    %732 = vector.shape_cast %731 : vector<1x8x8xf32> to vector<8x8xf32>
    %733 = tpu.concatenate %726, %728, %730, %732 in 1 : vector<8x8xf32>, vector<8x8xf32>, vector<8x8xf32>, vector<8x8xf32> -> vector<8x32xf32>
    %734 = tpu.concatenate %672, %733 in 0 : vector<8x32xf32>, vector<8x32xf32> -> vector<16x32xf32>
    %c1_172 = arith.constant 1 : index
    %c0_173 = arith.constant 0 : index
    %c0_174 = arith.constant 0 : index
    %735 = vector.load %arg12[%c1_172, %c0_173, %c0_174] : memref<2x32x32xf32, #tpu.memory_space<vmem>>, vector<1x32x32xf32>
    %736 = vector.shape_cast %735 : vector<1x32x32xf32> to vector<32x32xf32>
    %cst_175 = arith.constant dense<0.000000e+00> : vector<16x32xf32>
    %737 = tpu.matmul %734, %736, %cst_175 {dimension_numbers = #tpu.dot_dimension_numbers<[1], [0], [0], [1], [0, 0, 1, 1], [], []>} : vector<16x32xf32>, vector<32x32xf32>, vector<16x32xf32> -> vector<16x32xf32>
    %c1_176 = arith.constant 1 : index
    %c0_177 = arith.constant 0 : index
    %c0_178 = arith.constant 0 : index
    %738 = vector.load %arg13[%c1_176, %c0_177, %c0_178] : memref<2x1x32xf32, #tpu.memory_space<vmem>>, vector<1x1x32xf32>
    %739 = vector.shape_cast %738 : vector<1x1x32xf32> to vector<1x32xf32>
    %740 = vector.broadcast %739 : vector<1x32xf32> to vector<16x32xf32>
    %741 = arith.addf %737, %740 : vector<16x32xf32>
    %742 = arith.addf %592, %741 : vector<16x32xf32>
    %c1_179 = arith.constant 1 : index
    %c0_180 = arith.constant 0 : index
    %c0_181 = arith.constant 0 : index
    %743 = vector.load %arg14[%c1_179, %c0_180, %c0_181] : memref<2x1x32xf32, #tpu.memory_space<vmem>>, vector<1x1x32xf32>
    %744 = vector.shape_cast %743 : vector<1x1x32xf32> to vector<1x32xf32>
    %c1_182 = arith.constant 1 : index
    %c0_183 = arith.constant 0 : index
    %c0_184 = arith.constant 0 : index
    %745 = vector.load %arg15[%c1_182, %c0_183, %c0_184] : memref<2x1x32xf32, #tpu.memory_space<vmem>>, vector<1x1x32xf32>
    %746 = vector.shape_cast %745 : vector<1x1x32xf32> to vector<1x32xf32>
    %cst_185 = arith.constant dense<0.000000e+00> : vector<16xf32>
    %747 = vector.multi_reduction <add>, %742, %cst_185 [1] : vector<16x32xf32> to vector<16xf32>
    %748 = vector.shape_cast %747 : vector<16xf32> to vector<16x1xf32>
    %cst_186 = arith.constant 3.200000e+01 : f32
    %749 = vector.broadcast %cst_186 : f32 to vector<16x1xf32>
    %750 = arith.divf %748, %749 : vector<16x1xf32>
    %751 = vector.broadcast %750 : vector<16x1xf32> to vector<16x32xf32>
    %752 = arith.subf %742, %751 : vector<16x32xf32>
    %753 = arith.mulf %752, %752 : vector<16x32xf32>
    %cst_187 = arith.constant dense<0.000000e+00> : vector<16xf32>
    %754 = vector.multi_reduction <add>, %753, %cst_187 [1] : vector<16x32xf32> to vector<16xf32>
    %755 = vector.shape_cast %754 : vector<16xf32> to vector<16x1xf32>
    %cst_188 = arith.constant 3.200000e+01 : f32
    %756 = vector.broadcast %cst_188 : f32 to vector<16x1xf32>
    %757 = arith.divf %755, %756 : vector<16x1xf32>
    %758 = vector.broadcast %750 : vector<16x1xf32> to vector<16x32xf32>
    %759 = arith.subf %742, %758 : vector<16x32xf32>
    %cst_189 = arith.constant 9.99999974E-6 : f32
    %760 = vector.broadcast %cst_189 : f32 to vector<16x1xf32>
    %761 = arith.addf %757, %760 : vector<16x1xf32>
    %762 = math.rsqrt %761 : vector<16x1xf32>
    %763 = vector.broadcast %762 : vector<16x1xf32> to vector<16x32xf32>
    %764 = arith.mulf %759, %763 : vector<16x32xf32>
    %765 = vector.broadcast %744 : vector<1x32xf32> to vector<16x32xf32>
    %766 = arith.mulf %764, %765 : vector<16x32xf32>
    %767 = vector.broadcast %746 : vector<1x32xf32> to vector<16x32xf32>
    %768 = arith.addf %766, %767 : vector<16x32xf32>
    %c1_190 = arith.constant 1 : index
    %c0_191 = arith.constant 0 : index
    %c0_192 = arith.constant 0 : index
    %769 = vector.load %arg16[%c1_190, %c0_191, %c0_192] : memref<2x32x128xf32, #tpu.memory_space<vmem>>, vector<1x32x128xf32>
    %770 = vector.shape_cast %769 : vector<1x32x128xf32> to vector<32x128xf32>
    %cst_193 = arith.constant dense<0.000000e+00> : vector<16x128xf32>
    %771 = tpu.matmul %768, %770, %cst_193 {dimension_numbers = #tpu.dot_dimension_numbers<[1], [0], [0], [1], [0, 0, 1, 1], [], []>} : vector<16x32xf32>, vector<32x128xf32>, vector<16x128xf32> -> vector<16x128xf32>
    %c1_194 = arith.constant 1 : index
    %c0_195 = arith.constant 0 : index
    %c0_196 = arith.constant 0 : index
    %772 = vector.load %arg17[%c1_194, %c0_195, %c0_196] : memref<2x1x128xf32, #tpu.memory_space<vmem>>, vector<1x1x128xf32>
    %773 = vector.shape_cast %772 : vector<1x1x128xf32> to vector<1x128xf32>
    %774 = vector.broadcast %773 : vector<1x128xf32> to vector<16x128xf32>
    %775 = arith.addf %771, %774 : vector<16x128xf32>
    %cst_197 = arith.constant 5.000000e-01 : f32
    %776 = vector.broadcast %cst_197 : f32 to vector<16x128xf32>
    %777 = arith.mulf %776, %775 : vector<16x128xf32>
    %cst_198 = arith.constant 4.471500e-02 : f32
    %778 = vector.broadcast %cst_198 : f32 to vector<16x128xf32>
    %779 = arith.mulf %778, %775 : vector<16x128xf32>
    %780 = arith.mulf %779, %775 : vector<16x128xf32>
    %781 = arith.mulf %780, %775 : vector<16x128xf32>
    %782 = arith.addf %775, %781 : vector<16x128xf32>
    %cst_199 = arith.constant 0.797884583 : f32
    %783 = vector.broadcast %cst_199 : f32 to vector<16x128xf32>
    %784 = arith.mulf %783, %782 : vector<16x128xf32>
    %785 = math.tanh %784 : vector<16x128xf32>
    %cst_200 = arith.constant 1.000000e+00 : f32
    %786 = vector.broadcast %cst_200 : f32 to vector<16x128xf32>
    %787 = arith.addf %786, %785 : vector<16x128xf32>
    %788 = arith.mulf %777, %787 : vector<16x128xf32>
    %c1_201 = arith.constant 1 : index
    %c0_202 = arith.constant 0 : index
    %c0_203 = arith.constant 0 : index
    %789 = vector.load %arg18[%c1_201, %c0_202, %c0_203] : memref<2x128x32xf32, #tpu.memory_space<vmem>>, vector<1x128x32xf32>
    %790 = vector.shape_cast %789 : vector<1x128x32xf32> to vector<128x32xf32>
    %cst_204 = arith.constant dense<0.000000e+00> : vector<16x32xf32>
    %791 = tpu.matmul %788, %790, %cst_204 {dimension_numbers = #tpu.dot_dimension_numbers<[1], [0], [0], [1], [0, 0, 1, 1], [], []>} : vector<16x128xf32>, vector<128x32xf32>, vector<16x32xf32> -> vector<16x32xf32>
    %c1_205 = arith.constant 1 : index
    %c0_206 = arith.constant 0 : index
    %c0_207 = arith.constant 0 : index
    %792 = vector.load %arg19[%c1_205, %c0_206, %c0_207] : memref<2x1x32xf32, #tpu.memory_space<vmem>>, vector<1x1x32xf32>
    %793 = vector.shape_cast %792 : vector<1x1x32xf32> to vector<1x32xf32>
    %794 = vector.broadcast %793 : vector<1x32xf32> to vector<16x32xf32>
    %795 = arith.addf %791, %794 : vector<16x32xf32>
    %796 = arith.addf %768, %795 : vector<16x32xf32>
    %c1_208 = arith.constant 1 : index
    %c0_209 = arith.constant 0 : index
    %c0_210 = arith.constant 0 : index
    %797 = vector.load %arg20[%c1_208, %c0_209, %c0_210] : memref<2x1x32xf32, #tpu.memory_space<vmem>>, vector<1x1x32xf32>
    %798 = vector.shape_cast %797 : vector<1x1x32xf32> to vector<1x32xf32>
    %c1_211 = arith.constant 1 : index
    %c0_212 = arith.constant 0 : index
    %c0_213 = arith.constant 0 : index
    %799 = vector.load %arg21[%c1_211, %c0_212, %c0_213] : memref<2x1x32xf32, #tpu.memory_space<vmem>>, vector<1x1x32xf32>
    %800 = vector.shape_cast %799 : vector<1x1x32xf32> to vector<1x32xf32>
    %cst_214 = arith.constant dense<0.000000e+00> : vector<16xf32>
    %801 = vector.multi_reduction <add>, %796, %cst_214 [1] : vector<16x32xf32> to vector<16xf32>
    %802 = vector.shape_cast %801 : vector<16xf32> to vector<16x1xf32>
    %cst_215 = arith.constant 3.200000e+01 : f32
    %803 = vector.broadcast %cst_215 : f32 to vector<16x1xf32>
    %804 = arith.divf %802, %803 : vector<16x1xf32>
    %805 = vector.broadcast %804 : vector<16x1xf32> to vector<16x32xf32>
    %806 = arith.subf %796, %805 : vector<16x32xf32>
    %807 = arith.mulf %806, %806 : vector<16x32xf32>
    %cst_216 = arith.constant dense<0.000000e+00> : vector<16xf32>
    %808 = vector.multi_reduction <add>, %807, %cst_216 [1] : vector<16x32xf32> to vector<16xf32>
    %809 = vector.shape_cast %808 : vector<16xf32> to vector<16x1xf32>
    %cst_217 = arith.constant 3.200000e+01 : f32
    %810 = vector.broadcast %cst_217 : f32 to vector<16x1xf32>
    %811 = arith.divf %809, %810 : vector<16x1xf32>
    %812 = vector.broadcast %804 : vector<16x1xf32> to vector<16x32xf32>
    %813 = arith.subf %796, %812 : vector<16x32xf32>
    %cst_218 = arith.constant 9.99999974E-6 : f32
    %814 = vector.broadcast %cst_218 : f32 to vector<16x1xf32>
    %815 = arith.addf %811, %814 : vector<16x1xf32>
    %816 = math.rsqrt %815 : vector<16x1xf32>
    %817 = vector.broadcast %816 : vector<16x1xf32> to vector<16x32xf32>
    %818 = arith.mulf %813, %817 : vector<16x32xf32>
    %819 = vector.broadcast %798 : vector<1x32xf32> to vector<16x32xf32>
    %820 = arith.mulf %818, %819 : vector<16x32xf32>
    %821 = vector.broadcast %800 : vector<1x32xf32> to vector<16x32xf32>
    %822 = arith.addf %820, %821 : vector<16x32xf32>
    %823 = vector.shape_cast %822 : vector<16x32xf32> to vector<2x8x32xf32>
    %c0_219 = arith.constant 0 : index
    %c0_220 = arith.constant 0 : index
    %c0_221 = arith.constant 0 : index
    %824 = vector.load %arg22[%c0_219, %c0_220, %c0_221] : memref<2x8x32xf32, #tpu.memory_space<vmem>>, vector<2x8x32xf32>
    tpu.vector_store %arg22[%c0_219, %c0_220, %c0_221], %823 {strides = array<i32>} : memref<2x8x32xf32, #tpu.memory_space<vmem>>, vector<2x8x32xf32>,
    return
  }
}

</mosaic_0001>

<bundles_post_ra>
// kernel: transformer_decoder.1
= control target key start
LH: loop header
LB: loop body
LE: loop exit
PB: predicated region body
PF: predicated region fallthrough
CT: control target
= control target key end

     0   :  { %s10103_s0 = inlined_call_operand.hbm [shape: f32[2,8,32], index: 0, kind: input, shape index: {}]   ;;  %s10104_s1 = inlined_call_operand.hbm [shape: f32[2,8,32], index: 1, kind: input, shape index: {}]   ;;  %s10105_s2 = inlined_call_operand.vmem [shape: f32[2,32,96], index: 2, kind: input, shape index: {}]   ;;  %s10106_s3 = inlined_call_operand.vmem [shape: f32[2,1,96], index: 3, kind: input, shape index: {}]   ;;  %s10107_s4 = inlined_call_operand.vmem [shape: f32[2,32,32], index: 4, kind: input, shape index: {}]   ;;  %s10108_s5 = inlined_call_operand.vmem [shape: f32[2,1,32], index: 5, kind: input, shape index: {}]   ;;  %s10109_s6 = inlined_call_operand.vmem [shape: f32[2,1,32], index: 6, kind: input, shape index: {}]   ;;  %s10110_s7 = inlined_call_operand.vmem [shape: f32[2,1,32], index: 7, kind: input, shape index: {}]   ;;  %s10111_s8 = inlined_call_operand.vmem [shape: f32[2,32,32], index: 8, kind: input, shape index: {}]   ;;  %s10112_s9 = inlined_call_operand.vmem [shape: f32[2,1,32], index: 9, kind: input, shape index: {}]   ;;  %s10113_s10 = inlined_call_operand.vmem [shape: f32[2,32,64], index: 10, kind: input, shape index: {}]   ;;  %s10114_s11 = inlined_call_operand.vmem [shape: f32[2,1,64], index: 11, kind: input, shape index: {}]   ;;  %s10115_s12 = inlined_call_operand.vmem [shape: f32[2,32,32], index: 12, kind: input, shape index: {}]   ;;  %s10116_s13 = inlined_call_operand.vmem [shape: f32[2,1,32], index: 13, kind: input, shape index: {}]   ;;  %s10117_s14 = inlined_call_operand.hbm [shape: f32[2,1,32], index: 14, kind: input, shape index: {}]   ;;  %s10118_s15 = inlined_call_operand.hbm [shape: f32[2,1,32], index: 15, kind: input, shape index: {}]   ;;  %s10119_s16 = inlined_call_operand.hbm [shape: f32[2,32,128], index: 16, kind: input, shape index: {}]   ;;  %s10120_s17 = inlined_call_operand.hbm [shape: f32[2,1,128], index: 17, kind: input, shape index: {}]   ;;  %s10121_s18 = inlined_call_operand.vmem [shape: f32[2,128,32], index: 18, kind: input, shape index: {}]   ;;  %s10122_s19 = inlined_call_operand.hbm [shape: f32[2,1,32], index: 19, kind: input, shape index: {}]   ;;  %s10123_s20 = inlined_call_operand.hbm [shape: f32[2,1,32], index: 20, kind: input, shape index: {}]   ;;  %s10124_s21 = inlined_call_operand.hbm [shape: f32[2,1,32], index: 21, kind: input, shape index: {}]   ;;  %s10125_s22 = inlined_call_operand.hbm [shape: f32[2,8,32], index: 22, kind: output, shape index: {}]  }
   0x1   :  { %10136 = sst [smem:[#allocation24_spill]] %s10103_s0 }
   0x2   :  { %10137 = sst [smem:[#allocation25_spill]] %s10104_s1 }
   0x3   :  { %10138 = sst [smem:[#allocation26_spill]] %s10105_s2 }
   0x4   :  { %10139 = sst [smem:[#allocation27_spill]] %s10106_s3 }
   0x5   :  { %10140 = sst [smem:[#allocation28_spill]] %s10107_s4 }
   0x6   :  { %10141 = sst [smem:[#allocation29_spill]] %s10108_s5 }
   0x7   :  { %10142 = sst [smem:[#allocation30_spill]] %s10109_s6 }
   0x8   :  { %10143 = sst [smem:[#allocation31_spill]] %s10121_s18 }
   0x9   :  { %10144 = sst [smem:[#allocation32_spill]] %s10125_s22 }
   0xa   :  { %27 = vsyncpa [#allocation3], 0 }
   0xb   :  { %28 = vsyncpa [#allocation6], 0 }
   0xc   :  { %29 = vsyncpa [#allocation9], 0 }
   0xd   :  { %30 = vsyncpa [#allocation12], 0 }
   0xe   :  { %31 = vsyncpa [#allocation15], 0 }
   0xf   :  { %32 = vsyncpa [#allocation4], 0  ;;  %s8818_s3 = smov [#allocation5]   ;;  %s10145_s4 = sld [smem:[#allocation25_spill]] }
  0x10   :  { %s50_s28 = sshll.u32 %s8818_s3, 4  ;;  %s51_s28 = int_to_ptr.vmem [resolvable:$true] %s50_s28 }
  0x15   :  { %s8586_s0 = scalar_lea.hbm %s10145_s4, 256 }
  0x16   :  { %p8587_p0 = scmp.ne.s32.totalorder %s10145_s4, %s8586_s0  ;;  %p8590_p1 = scmp.lt.u32.totalorder %s8586_s0, %s10145_s4 }
  0x18   :  { %p8592_p2 = pnand %p8590_p1, %p8587_p0 }
  0x1a   :  { %8595 = shalt.err (!%p8592_p2)
}
  0x1b   :  { %s8596_s6 = scalar_lea.vmem %s51_s28, 256  ;;  %p8601_p4 = scmp.lt.s32.totalorder %s51_s28, %s51_s28 }
  0x1c   :  { %p8597_p3 = scmp.ne.s32.totalorder %s51_s28, %s8596_s6  ;;  %p8602_p5 = scmp.lt.s32.totalorder %s8596_s6, %s8596_s6 }
  0x1e   :  { %p8603_p6 = por %p8602_p5, %p8601_p4 }
  0x20   :  { %p8604_p7 = pnand %p8603_p6, %p8597_p3 }
  0x22   :  { %8607 = shalt.err (!%p8604_p7)
}
  0x23   :  { %s10135_s25 = smov 128   ;;  %s8820_s26 = smov 8  }
  0x24   :  { %56 = dma.hbm_to_vmem [thread:$0]  %s10145_s4, 256, %s51_s28, [#allocation6], %s10135_s25, %s10135_s25, %s8820_s26  }
  0x25   :  { %s8821_s3 = smov [#allocation8]   ;;  %s8822_s30 = smov [#allocation11]  }
  0x26   :  { %s98_s29 = sshll.u32 %s8821_s3, 4  ;;  %s122_s0 = sshll.u32 %s8822_s30, 4  ;;  %s99_s29 = int_to_ptr.vmem [resolvable:$true] %s98_s29  ;;  %s123_s0 = int_to_ptr.vmem [resolvable:$true] %s122_s0 }
  0x27   :  { %s8608_s5 = scalar_lea.hbm %s10118_s15, 32 }
  0x28   :  { %p8609_p8 = scmp.ne.s32.totalorder %s10118_s15, %s8608_s5  ;;  %p8612_p9 = scmp.lt.u32.totalorder %s8608_s5, %s10118_s15 }
  0x2a   :  { %p8614_p10 = pnand %p8612_p9, %p8609_p8 }
  0x2c   :  { %8617 = shalt.err (!%p8614_p10)
}
  0x2d   :  { %s8618_s28 = scalar_lea.vmem %s99_s29, 32  ;;  %p8623_p12 = scmp.lt.s32.totalorder %s99_s29, %s99_s29 }
  0x2e   :  { %p8619_p11 = scmp.ne.s32.totalorder %s99_s29, %s8618_s28  ;;  %p8624_p13 = scmp.lt.s32.totalorder %s8618_s28, %s8618_s28 }
  0x30   :  { %p8625_p0 = por %p8624_p13, %p8623_p12 }
  0x32   :  { %p8626_p1 = pnand %p8625_p0, %p8619_p11 }
  0x34   :  { %8629 = shalt.err (!%p8626_p1)
}
  0x35   :  { %s8823_s4 = smov 16   ;;  %s8824_s2 = smov 1  }
  0x36   :  { %104 = dma.hbm_to_vmem [thread:$0]  %s10118_s15, 32, %s99_s29, [#allocation9], %s8823_s4, %s8823_s4, %s8824_s2  }
  0x37   :  { %s8630_s30 = scalar_lea.hbm %s10120_s17, 32 }
  0x38   :  { %p8631_p2 = scmp.ne.s32.totalorder %s10120_s17, %s8630_s30  ;;  %p8634_p3 = scmp.lt.u32.totalorder %s8630_s30, %s10120_s17 }
  0x3a   :  { %p8636_p4 = pnand %p8634_p3, %p8631_p2 }
  0x3c   :  { %8639 = shalt.err (!%p8636_p4)
}
  0x3d   :  { %s8640_s6 = scalar_lea.vmem %s123_s0, 32  ;;  %p8645_p6 = scmp.lt.s32.totalorder %s123_s0, %s123_s0 }
  0x3e   :  { %p8641_p5 = scmp.ne.s32.totalorder %s123_s0, %s8640_s6  ;;  %p8646_p7 = scmp.lt.s32.totalorder %s8640_s6, %s8640_s6 }
  0x40   :  { %p8647_p8 = por %p8646_p7, %p8645_p6 }
  0x42   :  { %p8648_p9 = pnand %p8647_p8, %p8641_p5 }
  0x44   :  { %8651 = shalt.err (!%p8648_p9)
}
  0x45   :  { %128 = dma.hbm_to_vmem [thread:$0]  %s10120_s17, 32, %s123_s0, [#allocation12], %s8823_s4, %s8823_s4, %s8824_s2  }
  0x46   :  { %s8825_s28 = smov [#allocation14]   ;;  %s8826_s3 = smov [#allocation2]  }
  0x47   :  { %s148_s27 = sshll.u32 %s8825_s28, 4  ;;  %s38_s18 = sshll.u32 %s8826_s3, 4  ;;  %s149_s27 = int_to_ptr.vmem [resolvable:$true] %s148_s27  ;;  %s39_s18 = int_to_ptr.vmem [resolvable:$true] %s38_s18 }
  0x48   :  { %s8652_s23 = scalar_lea.hbm %s10123_s20, 32 }
  0x49   :  { %p8653_p10 = scmp.ne.s32.totalorder %s10123_s20, %s8652_s23  ;;  %p8656_p11 = scmp.lt.u32.totalorder %s8652_s23, %s10123_s20 }
  0x4b   :  { %p8658_p12 = pnand %p8656_p11, %p8653_p10 }
  0x4d   :  { %8661 = shalt.err (!%p8658_p12)
}
  0x4e   :  { %s8662_s17 = scalar_lea.vmem %s149_s27, 32  ;;  %p8667_p0 = scmp.lt.s32.totalorder %s149_s27, %s149_s27 }
  0x4f   :  { %p8663_p13 = scmp.ne.s32.totalorder %s149_s27, %s8662_s17  ;;  %p8668_p1 = scmp.lt.s32.totalorder %s8662_s17, %s8662_s17 }
  0x51   :  { %p8669_p2 = por %p8668_p1, %p8667_p0 }
  0x53   :  { %p8670_p3 = pnand %p8669_p2, %p8663_p13 }
  0x55   :  { %8673 = shalt.err (!%p8670_p3)
}
  0x56   :  { %154 = dma.hbm_to_vmem [thread:$0]  %s10123_s20, 32, %s149_s27, [#allocation15], %s8823_s4, %s8823_s4, %s8824_s2  }
  0x57   :  { %s10146_s3 = sld [smem:[#allocation24_spill]] }
  0x5d   :  { %s8674_s22 = scalar_lea.hbm %s10146_s3, 256 }
  0x5e   :  { %p8675_p4 = scmp.ne.s32.totalorder %s10146_s3, %s8674_s22  ;;  %p8678_p5 = scmp.lt.u32.totalorder %s8674_s22, %s10146_s3 }
  0x60   :  { %p8680_p6 = pnand %p8678_p5, %p8675_p4 }
  0x62   :  { %8683 = shalt.err (!%p8680_p6)
}
  0x63   :  { %s8684_s24 = scalar_lea.vmem %s39_s18, 256  ;;  %p8689_p8 = scmp.lt.s32.totalorder %s39_s18, %s39_s18 }
  0x64   :  { %p8685_p7 = scmp.ne.s32.totalorder %s39_s18, %s8684_s24  ;;  %p8690_p9 = scmp.lt.s32.totalorder %s8684_s24, %s8684_s24 }
  0x66   :  { %p8691_p10 = por %p8690_p9, %p8689_p8 }
  0x68   :  { %p8692_p11 = pnand %p8691_p10, %p8685_p7 }
  0x6a   :  { %8695 = shalt.err (!%p8692_p11)
}
  0x6b   :  { %44 = dma.hbm_to_vmem [thread:$0]  %s10146_s3, 256, %s39_s18, [#allocation3], %s10135_s25, %s10135_s25, %s8820_s26  }
  0x6c   :  { %s8827_s6 = smov [#allocation7]   ;;  %s8828_s0 = smov [#allocation10]  }
  0x6d   :  { %s86_s17 = sshll.u32 %s8827_s6, 4  ;;  %s110_s15 = sshll.u32 %s8828_s0, 4  ;;  %s87_s17 = int_to_ptr.vmem [resolvable:$true] %s86_s17  ;;  %s111_s15 = int_to_ptr.vmem [resolvable:$true] %s110_s15 }
  0x6e   :  { %s8696_s22 = scalar_lea.hbm %s10117_s14, 32 }
  0x6f   :  { %p8697_p12 = scmp.ne.s32.totalorder %s10117_s14, %s8696_s22  ;;  %p8700_p13 = scmp.lt.u32.totalorder %s8696_s22, %s10117_s14 }
  0x71   :  { %p8702_p0 = pnand %p8700_p13, %p8697_p12 }
  0x73   :  { %8705 = shalt.err (!%p8702_p0)
}
  0x74   :  { %s8706_s18 = scalar_lea.vmem %s87_s17, 32  ;;  %p8711_p2 = scmp.lt.s32.totalorder %s87_s17, %s87_s17 }
  0x75   :  { %p8707_p1 = scmp.ne.s32.totalorder %s87_s17, %s8706_s18  ;;  %p8712_p3 = scmp.lt.s32.totalorder %s8706_s18, %s8706_s18 }
  0x77   :  { %p8713_p4 = por %p8712_p3, %p8711_p2 }
  0x79   :  { %p8714_p5 = pnand %p8713_p4, %p8707_p1 }
  0x7b   :  { %8717 = shalt.err (!%p8714_p5)
}
  0x7c   :  { %92 = dma.hbm_to_vmem [thread:$0]  %s10117_s14, 32, %s87_s17, [#allocation6], %s8823_s4, %s8823_s4, %s8824_s2  }
  0x7d   :  { %s8718_s6 = scalar_lea.hbm %s10119_s16, 1024 }
  0x7e   :  { %p8719_p6 = scmp.ne.s32.totalorder %s10119_s16, %s8718_s6  ;;  %p8722_p7 = scmp.lt.u32.totalorder %s8718_s6, %s10119_s16 }
  0x80   :  { %p8724_p8 = pnand %p8722_p7, %p8719_p6 }
  0x82   :  { %8727 = shalt.err (!%p8724_p8)
}
  0x83   :  { %s8728_s30 = scalar_lea.vmem %s111_s15, 1024  ;;  %p8733_p10 = scmp.lt.s32.totalorder %s111_s15, %s111_s15 }
  0x84   :  { %p8729_p9 = scmp.ne.s32.totalorder %s111_s15, %s8728_s30  ;;  %p8734_p11 = scmp.lt.s32.totalorder %s8728_s30, %s8728_s30 }
  0x86   :  { %p8735_p12 = por %p8734_p11, %p8733_p10 }
  0x88   :  { %p8736_p13 = pnand %p8735_p12, %p8729_p9 }
  0x8a   :  { %8739 = shalt.err (!%p8736_p13)
}
  0x8b   :  { %116 = dma.hbm_to_vmem [thread:$0]  %s10119_s16, 1024, %s111_s15, [#allocation9], %s10135_s25, %s10135_s25, %s8820_s26  }
  0x8c   :  { %s8829_s23 = smov [#allocation13]   ;;  %s8830_s5 = smov [#allocation16]  }
  0x8d   :  { %s136_s1 = sshll.u32 %s8829_s23, 4  ;;  %s160_s18 = sshll.u32 %s8830_s5, 4  ;;  %s137_s1 = int_to_ptr.vmem [resolvable:$true] %s136_s1  ;;  %s161_s18 = int_to_ptr.vmem [resolvable:$true] %s160_s18 }
  0x8e   :  { %s8740_s20 = scalar_lea.hbm %s10122_s19, 32 }
  0x8f   :  { %p8741_p0 = scmp.ne.s32.totalorder %s10122_s19, %s8740_s20  ;;  %p8744_p1 = scmp.lt.u32.totalorder %s8740_s20, %s10122_s19 }
  0x91   :  { %p8746_p2 = pnand %p8744_p1, %p8741_p0 }
  0x93   :  { %8749 = shalt.err (!%p8746_p2)
}
  0x94   :  { %s8750_s16 = scalar_lea.vmem %s137_s1, 32  ;;  %p8755_p4 = scmp.lt.s32.totalorder %s137_s1, %s137_s1 }
  0x95   :  { %p8751_p3 = scmp.ne.s32.totalorder %s137_s1, %s8750_s16  ;;  %p8756_p5 = scmp.lt.s32.totalorder %s8750_s16, %s8750_s16 }
  0x97   :  { %p8757_p6 = por %p8756_p5, %p8755_p4 }
  0x99   :  { %p8758_p7 = pnand %p8757_p6, %p8751_p3 }
  0x9b   :  { %8761 = shalt.err (!%p8758_p7)
}
  0x9c   :  { %142 = dma.hbm_to_vmem [thread:$0]  %s10122_s19, 32, %s137_s1, [#allocation12], %s8823_s4, %s8823_s4, %s8824_s2  }
  0x9d   :  { %s8762_s14 = scalar_lea.hbm %s10124_s21, 32 }
  0x9e   :  { %p8763_p8 = scmp.ne.s32.totalorder %s10124_s21, %s8762_s14  ;;  %p8766_p9 = scmp.lt.u32.totalorder %s8762_s14, %s10124_s21 }
  0xa0   :  { %p8768_p10 = pnand %p8766_p9, %p8763_p8 }
  0xa2   :  { %8771 = shalt.err (!%p8768_p10)
}
  0xa3   :  { %s8772_s24 = scalar_lea.vmem %s161_s18, 32  ;;  %p8777_p12 = scmp.lt.s32.totalorder %s161_s18, %s161_s18 }
  0xa4   :  { %p8773_p11 = scmp.ne.s32.totalorder %s161_s18, %s8772_s24  ;;  %p8778_p13 = scmp.lt.s32.totalorder %s8772_s24, %s8772_s24 }
  0xa6   :  { %p8779_p0 = por %p8778_p13, %p8777_p12 }
  0xa8   :  { %p8780_p1 = pnand %p8779_p0, %p8773_p11 }
  0xaa   :  { %8783 = shalt.err (!%p8780_p1)
}
  0xab   :  { %166 = dma.hbm_to_vmem [thread:$0]  %s10124_s21, 32, %s161_s18, [#allocation15], %s8823_s4, %s8823_s4, %s8824_s2  }
  0xac   :  { %8806 = dma.done.wait [#allocation3], 256  }
  0xad   :  { %8807 = vsyncadd [#allocation3], 4294967040 }
  0xae   :  { %8808 = dma.done.wait [#allocation6], 288  }
  0xaf   :  { %8809 = vsyncadd [#allocation6], 4294967008 }
  0xb0   :  { %8810 = dma.done.wait [#allocation9], 1056  }
  0xb1   :  { %8811 = vsyncadd [#allocation9], 4294966240 }
  0xb2   :  { %8812 = dma.done.wait [#allocation12], 64  }
  0xb3   :  { %8813 = vsyncadd [#allocation12], 4294967232 }
  0xb4   :  { %8814 = dma.done.wait [#allocation15], 64  }
  0xb5   :  { %8815 = vsyncadd [#allocation15], 4294967232  ;;  %vm214_vm0 = vcmask 261120   ;;  %s10147_s6 = sld [smem:[#allocation26_spill]]  ;;  %v9102_v5 = vld [vmem:[#allocation2] sm:$0xff]  ;;  %v9106_v7 = vld [vmem:[#allocation2 + $0x8] sm:$0xff]  ;;  %v198_v21 = vlaneseq }
  0xb6   :  { %7728 = vmatprep.mubr.msk.f32.mxu1 %vm214_vm0, %v9102_v5  ;;  %v8831_v8 = vmov 0.0   ;;  %vm8832_vm1 = vmmov 0   ;;  %s10148_s22 = sld [smem:[#allocation27_spill]]  ;;  %s8833_s30 = smov 104   ;;  %vm305_vm2 = vcmask 64512   ;;  %vm979_vm4 = vcmask 130048  }
  0xb7   :  { %7741 = vmatprep.subr.mxu0 %v8831_v8  ;;  %7743 = vmatprep.mubr.msk.f32.mxu0 %vm8832_vm1, %v8831_v8  ;;  %s8834_s14 = smov 120   ;;  %s8835_s17 = smov 96   ;;  %v199_v22 = vshrl.u32 %v198_v21, 7  ;;  %v201_v23 = vand.u32 127, %v198_v21  ;;  %vm981_vm5 = vcmask 195584  }
  0xb8   :  { %s8836_s23 = smov 112   ;;  %s8837_s5 = smov 64  }
  0xb9   :  { %vm9155_vm3 = vcmp.le.s32.totalorder %v201_v23, %v199_v22  ;;  %s8838_s3 = smov 24   ;;  %s10151_s1 = sld [smem:[#allocation28_spill]] }
  0xba   :  { %s10152_s15 = sld [smem:[#allocation29_spill]]  ;;  %s10153_s21 = sld [smem:[#allocation30_spill]] }
  0xbb   :  { %v203_v0 = vld [vmem:[%s10147_s6] sm:$0xff]  ;;  %v204_v1 = vld [vmem:[%s10147_s6 + $0x8] sm:$0xff]  ;;  %v205_v2 = vld [vmem:[%s10147_s6 + $0x10] sm:$0xff]  ;;  %s10154_s0 = sld [smem:[#allocation31_spill]] }
  0xbc   :  { %v8242_v3 = vpack.c.bf16 %v204_v1, %v203_v0  ;;  %v206_v4 = vld [vmem:[%s10147_s6 + $0x18] sm:$0xff]  ;;  %v7295_v9 = vld [vmem:[%s10148_s22] ss:$0 sm:$0xff] }
  0xbd   :  { %v8246_v6 = vpack.c.bf16 %v206_v4, %v205_v2 }
  0xbe   :  { %8243 = vmatprep.subr.bf16.mxu1 %v8242_v3 }
  0xbf   :  { %8245 = vmatpush3.bf16.msra.mxu1 %v8242_v3 }
  0xc0   :  { %8247 = vmatprep.subr.bf16.mxu1 %v8246_v6 }
  0xc3   :  { %8249 = vmatpush3.bf16.msra.mxu1 %v8246_v6 }
  0xc4   :  { %7731 = vmatprep.subr.mxu1 %v8831_v8 }
  0xc6   :  { %7729 = vmatmul.mubr.msk.f32.vlgmr.msra.gmra.mrb[0].mxu1 %vm214_vm0, %v9106_v7 }
  0xc7   :  { %7733 = vmatprep.mubr.msk.f32.mxu1 %vm8832_vm1, %v8831_v8 }
 0x199   :  { %v7730_v10 = vpop.f32.mrb[0].mxu1 }
 0x19a   :  { %v9119_v11 = vadd.f32 %v7730_v10, %v7295_v9  ;;  %v287_v12 = vpop.f32.mrb[1].mxu1 }
 0x19b   :  { %v9121_v13 = vadd.f32 %v7295_v9, %v287_v12 }
 0x19d   :  { %301 = vrot.lane.b32.xlu1 %v9121_v13, %s8833_s30  ;;  %297 = vrot.lane.b32.xlu0 %v9121_v13, %s8834_s14 }
 0x1a1   :  { %303 = vrot.lane.b32.xlu1 %v9121_v13, %s8835_s17  ;;  %299 = vrot.lane.b32.xlu0 %v9121_v13, %s8836_s23 }
 0x20f   :  { %v302_v14 = vpop.permute.xlu1 %301  ;;  %v298_v15 = vpop.permute.xlu0 %297 }
 0x210   :  { %380 = vrot.lane.b32.xlu0 %v298_v15, %s8835_s17 }
 0x213   :  { %v304_v16 = vpop.permute.xlu1 %303  ;;  %v300_v17 = vpop.permute.xlu0 %299 }
 0x214   :  { %7732 = vmatpush3.xpose.msk.msra.mxu1 %vm305_vm2, %v304_v16  ;;  %532 = vrot.lane.b32.xlu0 %v302_v14, %s8835_s17 }
 0x215   :  { %456 = vrot.lane.b32.xlu1 %v300_v17, %s8835_s17  ;;  %7736 = vmatprep.subr.mxu1 %v8831_v8 }
 0x217   :  { %7734 = vmatmul.mubr.msk.f32.vlgmr.msra.gmra.mrb[2].mxu1 %vm305_vm2, %v9121_v13 }
 0x218   :  { %7738 = vmatprep.mubr.msk.f32.mxu1 %vm8832_vm1, %v8831_v8 }
 0x282   :  { %v381_v18 = vpop.permute.xlu0 %380 }
 0x283   :  { %7737 = vmatpush3.xpose.msk.msra.mxu1 %vm305_vm2, %v381_v18 }
 0x284   :  { %7746 = vmatprep.subr.mxu1 %v8831_v8 }
 0x286   :  { %7739 = vmatmul.mubr.msk.f32.vlgmr.msra.gmra.mrb[4].mxu1 %vm305_vm2, %v298_v15  ;;  %v533_v19 = vpop.permute.xlu0 %532 }
 0x287   :  { %v457_v20 = vpop.permute.xlu1 %456  ;;  %7747 = vmatpush3.xpose.msk.msra.mxu1 %vm305_vm2, %v533_v19  ;;  %7748 = vmatprep.mubr.msk.f32.mxu1 %vm8832_vm1, %v8831_v8 }
 0x288   :  { %7742 = vmatpush3.xpose.msk.msra.mxu0 %vm305_vm2, %v457_v20  ;;  %7756 = vmatprep.subr.mxu1 %v8831_v8 }
 0x289   :  { %7751 = vmatprep.subr.mxu0 %v8831_v8 }
 0x28a   :  { %7749 = vmatmul.mubr.msk.f32.vlgmr.msra.gmra.mrb[6].mxu1 %vm305_vm2, %v302_v14 }
 0x28b   :  { %7744 = vmatmul.mubr.msk.f32.vlgmr.msra.gmra.mrb[0].mxu0 %vm305_vm2, %v300_v17  ;;  %7758 = vmatprep.mubr.msk.f32.mxu1 %vm8832_vm1, %v8831_v8 }
 0x28c   :  { %7753 = vmatprep.mubr.msk.f32.mxu0 %vm8832_vm1, %v8831_v8 }
 0x2ea   :  { %v376_v24 = vpop.f32.mrb[2].mxu1 }
 0x2eb   :  { %v608_v26 = vmul.f32 0.35355338, %v376_v24  ;;  %v7735_v27 = vpop.f32.mrb[3].mxu1 }
 0x2ed   :  { %v614_v28 = vsel %vm9155_vm3, %v608_v26, -1e+30 }
 0x2ee   :  { %v618_v29 = vsel %vm305_vm2, %v614_v28, -inf }
 0x2ef   :  { %619 = vmax.xlane.f32.xlu1 %v618_v29 }
 0x359   :  { %v452_v30 = vpop.f32.mrb[4].mxu1 }
 0x35a   :  { %v609_v31 = vmul.f32 0.35355338, %v452_v30  ;;  %v7740_v32 = vpop.f32.mrb[5].mxu1 }
 0x35c   :  { %v615_v33 = vsel %vm9155_vm3, %v609_v31, -1e+30 }
 0x35d   :  { %v604_v34 = vpop.f32.mrb[6].mxu1  ;;  %v621_v35 = vsel %vm305_vm2, %v615_v33, -inf }
 0x35e   :  { %v528_v36 = vpop.f32.mrb[0].mxu0  ;;  %v611_v37 = vmul.f32 0.35355338, %v604_v34  ;;  %622 = vmax.xlane.f32.xlu0 %v621_v35  ;;  %v7750_v38 = vpop.f32.mrb[7].mxu1 }
 0x35f   :  { %v610_v39 = vmul.f32 0.35355338, %v528_v36  ;;  %v7745_v40 = vpop.f32.mrb[1].mxu0 }
 0x360   :  { %v617_v41 = vsel %vm9155_vm3, %v611_v37, -1e+30 }
 0x361   :  { %v616_v42 = vsel %vm9155_vm3, %v610_v39, -1e+30  ;;  %v627_v43 = vsel %vm305_vm2, %v617_v41, -inf }
 0x362   :  { %v624_v44 = vsel %vm305_vm2, %v616_v42, -inf  ;;  %628 = vmax.xlane.f32.xlu1 %v627_v43 }
 0x363   :  { %625 = vmax.xlane.f32.xlu0 %v624_v44 }
 0x373   :  { %986 = vrot.lane.b32.xlu1 %v9119_v11, %s8836_s23 }
 0x377   :  { %988 = vrot.lane.b32.xlu1 %v9119_v11, %s8833_s30 }
 0x379   :  { %984 = vrot.lane.b32.xlu0 %v9119_v11, %s8834_s14 }
 0x37b   :  { %662 = vrot.lane.b32.xlu1 %v9121_v13, %s8837_s5 }
 0x37c   :  { %v620_v45 = vpop.xlane.xlu1 %619 }
 0x37d   :  { %738 = vrot.lane.b32.xlu0 %v298_v15, %s8837_s5  ;;  %v630_v46 = vsub.f32 %v614_v28, %v620_v45 }
 0x37f   :  { %814 = vrot.lane.b32.xlu1 %v300_v17, %s8837_s5  ;;  %v634_v47 = vmul.f32 1.442695, %v630_v46 }
 0x381   :  { %990 = vrot.lane.b32.xlu0 %v9119_v11, %s8835_s17  ;;  %8424 = vpow2.f32 %v634_v47 }
 0x383   :  { %890 = vrot.lane.b32.xlu1 %v302_v14, %s8837_s5 }
 0x38b   :  { %v8425_v48 = vpop.eup %8424 }
 0x38c   :  { %v642_v49 = vsel %vm305_vm2, %v8425_v48, 0.0 }
 0x3a0   :  { %643 = vadd.xlane.f32.xlu0 %v642_v49 }
 0x3eb   :  { %v623_v50 = vpop.xlane.xlu0 %622 }
 0x3ec   :  { %v631_v51 = vsub.f32 %v615_v33, %v623_v50 }
 0x3ee   :  { %v636_v52 = vmul.f32 1.442695, %v631_v51 }
 0x3ef   :  { %v629_v53 = vpop.xlane.xlu1 %628 }
 0x3f0   :  { %8426 = vpow2.f32 %v636_v52  ;;  %v633_v54 = vsub.f32 %v617_v41, %v629_v53  ;;  %v626_v55 = vpop.xlane.xlu0 %625 }
 0x3f1   :  { %v632_v56 = vsub.f32 %v616_v42, %v626_v55 }
 0x3f2   :  { %v640_v57 = vmul.f32 1.442695, %v633_v54 }
 0x3f3   :  { %v638_v58 = vmul.f32 1.442695, %v632_v56  ;;  %v9185_v59 = vpop.permute.xlu1 %986 }
 0x3f4   :  { %v9187_v60 = vpop.permute.xlu0 %984 }
 0x3f5   :  { %8428 = vpow2.f32 %v638_v58 }
 0x3f6   :  { %8430 = vpow2.f32 %v640_v57 }
 0x3f7   :  { %v9189_v61 = vpop.permute.xlu1 %988 }
 0x3f8   :  { %v739_v62 = vpop.permute.xlu0 %738 }
 0x3f9   :  { %7757 = vmatpush3.msra.mxu1 %v739_v62 }
 0x3fa   :  { %v8427_v63 = vpop.eup %8426  ;;  %7766 = vmatprep.subr.mxu1 %v8831_v8 }
 0x3fb   :  { %v663_v0 = vpop.permute.xlu1 %662  ;;  %v645_v1 = vsel %vm305_vm2, %v8427_v63, 0.0 }
 0x3fc   :  { %7752 = vmatpush3.msra.mxu0 %v663_v0  ;;  %646 = vadd.xlane.f32.xlu1 %v645_v1  ;;  %v991_v9 = vpop.permute.xlu0 %990 }
 0x3fd   :  { %7761 = vmatprep.subr.mxu0 %v8831_v8 }
 0x3ff   :  { %v8429_v2 = vpop.eup %8428  ;;  %v815_v14 = vpop.permute.xlu1 %814 }
 0x400   :  { %v648_v3 = vsel %vm305_vm2, %v8429_v2, 0.0  ;;  %v8431_v4 = vpop.eup %8430 }
 0x401   :  { %649 = vadd.xlane.f32.xlu0 %v648_v3  ;;  %v651_v6 = vsel %vm305_vm2, %v8431_v4, 0.0 }
 0x403   :  { %v891_v15 = vpop.permute.xlu1 %890 }
 0x405   :  { %652 = vadd.xlane.f32.xlu0 %v651_v6 }
 0x40d   :  { %1066 = vrot.lane.b32.xlu1 %v9187_v60, %s8835_s17 }
 0x411   :  { %1218 = vrot.lane.b32.xlu1 %v9189_v61, %s8835_s17 }
 0x41b   :  { %1142 = vrot.lane.b32.xlu0 %v9185_v59, %s8835_s17 }
 0x42d   :  { %v644_v10 = vpop.xlane.xlu0 %643 }
 0x42e   :  { %8432 = vrcp.f32 %v644_v10 }
 0x438   :  { %v8433_v12 = vpop.eup %8432 }
 0x439   :  { %v655_v13 = vmul.f32 %v8433_v12, %v8425_v48 }
 0x43b   :  { %7754 = vmatmul.mubr.msk.f32.vlgmr.msra.gmra.mrb[2].mxu0 %vm305_vm2, %v655_v13 }
 0x43c   :  { %7762 = vmatpush3.msra.mxu0 %v815_v14  ;;  %7763 = vmatprep.mubr.msk.f32.mxu0 %vm8832_vm1, %v8831_v8 }
 0x43d   :  { %7771 = vmatprep.subr.mxu0 %v8831_v8 }
 0x489   :  { %v647_v16 = vpop.xlane.xlu1 %646 }
 0x48a   :  { %8434 = vrcp.f32 %v647_v16 }
 0x48d   :  { %v1067_v24 = vpop.permute.xlu1 %1066 }
 0x48e   :  { %v650_v17 = vpop.xlane.xlu0 %649 }
 0x48f   :  { %8436 = vrcp.f32 %v650_v17 }
 0x491   :  { %v1219_v28 = vpop.permute.xlu1 %1218 }
 0x492   :  { %v653_v18 = vpop.xlane.xlu0 %652 }
 0x493   :  { %8438 = vrcp.f32 %v653_v18 }
 0x494   :  { %v8435_v19 = vpop.eup %8434 }
 0x495   :  { %v657_v20 = vmul.f32 %v8435_v19, %v8427_v63 }
 0x496   :  { %v1143_v27 = vpop.permute.xlu0 %1142 }
 0x497   :  { %7759 = vmatmul.mubr.msk.f32.vlgmr.msra.gmra.mrb[8].mxu1 %vm305_vm2, %v657_v20 }
 0x498   :  { %7767 = vmatpush3.msra.mxu1 %v891_v15  ;;  %7768 = vmatprep.mubr.msk.f32.mxu1 %vm8832_vm1, %v8831_v8 }
 0x499   :  { %v8437_v21 = vpop.eup %8436  ;;  %7776 = vmatprep.subr.mxu1 %v8831_v8 }
 0x49a   :  { %v659_v22 = vmul.f32 %v8437_v21, %v8429_v2 }
 0x49c   :  { %7764 = vmatmul.mubr.msk.f32.vlgmr.msra.gmra.mrb[4].mxu0 %vm305_vm2, %v659_v22 }
 0x49d   :  { %v8439_v23 = vpop.eup %8438  ;;  %7772 = vmatpush3.xpose.msk.msra.mxu0 %vm305_vm2, %v991_v9  ;;  %7773 = vmatprep.mubr.msk.f32.mxu0 %vm8832_vm1, %v8831_v8 }
 0x49e   :  { %7781 = vmatprep.subr.mxu0 %v8831_v8  ;;  %v661_v26 = vmul.f32 %v8439_v23, %v8431_v4 }
 0x4a0   :  { %7769 = vmatmul.mubr.msk.f32.vlgmr.msra.gmra.mrb[10].mxu1 %vm305_vm2, %v661_v26  ;;  %7774 = vmatmul.mubr.msk.f32.vlgmr.msra.gmra.mrb[6].mxu0 %vm305_vm2, %v9119_v11 }
 0x4a1   :  { %7777 = vmatpush3.xpose.msk.msra.mxu1 %vm305_vm2, %v1067_v24  ;;  %7782 = vmatpush3.xpose.msk.msra.mxu0 %vm305_vm2, %v1143_v27 }
 0x4a2   :  { %7778 = vmatprep.mubr.msk.f32.mxu1 %vm8832_vm1, %v8831_v8  ;;  %7783 = vmatprep.mubr.msk.f32.mxu0 %vm8832_vm1, %v8831_v8 }
 0x4a3   :  { %7786 = vmatprep.subr.mxu1 %v8831_v8  ;;  %7791 = vmatprep.subr.mxu0 %v8831_v8 }
 0x4a4   :  { %7779 = vmatmul.mubr.msk.f32.vlgmr.msra.gmra.mrb[12].mxu1 %vm305_vm2, %v9187_v60  ;;  %7784 = vmatmul.mubr.msk.f32.vlgmr.msra.gmra.mrb[8].mxu0 %vm305_vm2, %v9185_v59 }
 0x4a5   :  { %7787 = vmatpush3.xpose.msk.msra.mxu1 %vm305_vm2, %v1219_v28  ;;  %7788 = vmatprep.mubr.msk.f32.mxu1 %vm8832_vm1, %v8831_v8 }
 0x4a6   :  { %7796 = vmatprep.subr.mxu1 %v8831_v8  ;;  %7793 = vmatprep.mubr.msk.f32.mxu0 %vm8832_vm1, %v8831_v8 }
 0x4a8   :  { %7789 = vmatmul.mubr.msk.f32.vlgmr.msra.gmra.mrb[14].mxu1 %vm305_vm2, %v9189_v61 }
 0x4a9   :  { %7798 = vmatprep.mubr.msk.f32.mxu1 %vm8832_vm1, %v8831_v8 }
 0x50e   :  { %v9240_v29 = vpop.f32.mrb[2].mxu0 }
 0x50f   :  { %v7755_v30 = vpop.f32.mrb[3].mxu0 }
 0x56a   :  { %v9242_v31 = vpop.f32.mrb[8].mxu1 }
 0x56b   :  { %v7760_v32 = vpop.f32.mrb[9].mxu1 }
 0x56f   :  { %v886_v33 = vpop.f32.mrb[4].mxu0 }
 0x570   :  { %v7765_v34 = vpop.f32.mrb[5].mxu0 }
 0x573   :  { %v962_v35 = vpop.f32.mrb[10].mxu1  ;;  %v1062_v36 = vpop.f32.mrb[6].mxu0 }
 0x574   :  { %v1294_v37 = vmul.f32 0.35355338, %v1062_v36  ;;  %v7770_v38 = vpop.f32.mrb[11].mxu1  ;;  %v7775_v39 = vpop.f32.mrb[7].mxu0 }
 0x576   :  { %v1298_v40 = vsel %vm9155_vm3, %v1294_v37, -1e+30 }
 0x577   :  { %v1138_v41 = vpop.f32.mrb[12].mxu1  ;;  %v1214_v42 = vpop.f32.mrb[8].mxu0  ;;  %v1302_v43 = vsel %vm305_vm2, %v1298_v40, -inf }
 0x578   :  { %v1295_v44 = vmul.f32 0.35355338, %v1138_v41  ;;  %v1296_v45 = vmul.f32 0.35355338, %v1214_v42  ;;  %1303 = vmax.xlane.f32.xlu0 %v1302_v43  ;;  %v7780_v46 = vpop.f32.mrb[13].mxu1  ;;  %v7785_v47 = vpop.f32.mrb[9].mxu0 }
 0x579   :  { %v1667_v42 = vld [vmem:[%s10151_s1 + $0x10] sm:$0xff]  ;;  %v1668_v43 = vld [vmem:[%s10151_s1 + $0x18] sm:$0xff] }
 0x57a   :  { %v1299_v48 = vsel %vm9155_vm3, %v1295_v44, -1e+30  ;;  %v1300_v49 = vsel %vm9155_vm3, %v1296_v45, -1e+30  ;;  %v8254_v44 = vpack.c.bf16 %v1668_v43, %v1667_v42 }
 0x57b   :  { %v1290_v50 = vpop.f32.mrb[14].mxu1  ;;  %v1305_v51 = vsel %vm305_vm2, %v1299_v48, -inf  ;;  %v1308_v52 = vsel %vm305_vm2, %v1300_v49, -inf }
 0x57c   :  { %v1297_v53 = vmul.f32 0.35355338, %v1290_v50  ;;  %1306 = vmax.xlane.f32.xlu1 %v1305_v51  ;;  %v7790_v54 = vpop.f32.mrb[15].mxu1  ;;  %1309 = vmax.xlane.f32.xlu0 %v1308_v52 }
 0x57e   :  { %v1301_v55 = vsel %vm9155_vm3, %v1297_v53, -1e+30 }
 0x57f   :  { %v1311_v56 = vsel %vm305_vm2, %v1301_v55, -inf }
 0x580   :  { %1312 = vmax.xlane.f32.xlu0 %v1311_v56 }
 0x58d   :  { %1346 = vrot.lane.b32.xlu1 %v9119_v11, %s8837_s5 }
 0x605   :  { %v1304_v57 = vpop.xlane.xlu0 %1303 }
 0x606   :  { %v1314_v58 = vsub.f32 %v1298_v40, %v1304_v57  ;;  %v1666_v40 = vld [vmem:[%s10151_s1 + $0x8] sm:$0xff] }
 0x608   :  { %v1318_v62 = vmul.f32 1.442695, %v1314_v58 }
 0x609   :  { %v1307_v63 = vpop.xlane.xlu1 %1306  ;;  %v1310_v0 = vpop.xlane.xlu0 %1309 }
 0x60a   :  { %8440 = vpow2.f32 %v1318_v62  ;;  %v1315_v1 = vsub.f32 %v1299_v48, %v1307_v63  ;;  %v1316_v2 = vsub.f32 %v1300_v49, %v1310_v0  ;;  %v7322_v62 = vld [vmem:[%s10152_s15] ss:$0 sm:$0xff] }
 0x60c   :  { %v1320_v3 = vmul.f32 1.442695, %v1315_v1  ;;  %v1322_v4 = vmul.f32 1.442695, %v1316_v2 }
 0x60d   :  { %v1347_v6 = vpop.permute.xlu1 %1346  ;;  %v1313_v9 = vpop.xlane.xlu0 %1312 }
 0x60e   :  { %8442 = vpow2.f32 %v1320_v3  ;;  %v1317_v10 = vsub.f32 %v1301_v55, %v1313_v9  ;;  %7792 = vmatpush3.msra.mxu0 %v1347_v6 }
 0x60f   :  { %8444 = vpow2.f32 %v1322_v4  ;;  %7801 = vmatprep.subr.mxu0 %v8831_v8 }
 0x610   :  { %v1324_v12 = vmul.f32 1.442695, %v1317_v10 }
 0x612   :  { %8446 = vpow2.f32 %v1324_v12 }
 0x614   :  { %v8441_v11 = vpop.eup %8440 }
 0x615   :  { %v1326_v13 = vsel %vm305_vm2, %v8441_v11, 0.0 }
 0x616   :  { %1327 = vadd.xlane.f32.xlu1 %v1326_v13 }
 0x618   :  { %v8443_v14 = vpop.eup %8442 }
 0x619   :  { %v8445_v15 = vpop.eup %8444  ;;  %v1329_v16 = vsel %vm305_vm2, %v8443_v14, 0.0 }
 0x61a   :  { %1330 = vadd.xlane.f32.xlu0 %v1329_v16  ;;  %v1332_v17 = vsel %vm305_vm2, %v8445_v15, 0.0 }
 0x61b   :  { %1333 = vadd.xlane.f32.xlu1 %v1332_v17 }
 0x61c   :  { %v8447_v18 = vpop.eup %8446 }
 0x61d   :  { %v1335_v19 = vsel %vm305_vm2, %v8447_v18, 0.0 }
 0x61e   :  { %1336 = vadd.xlane.f32.xlu0 %v1335_v19  ;;  %v1897_v19 = vld [vmem:[%s10113_s10 + $0x8] sm:$0xff] }
 0x62c   :  { %1498 = vrot.lane.b32.xlu1 %v9185_v59, %s8837_s5 }
 0x630   :  { %1574 = vrot.lane.b32.xlu1 %v9189_v61, %s8837_s5 }
 0x634   :  { %971 = vrot.lane.b32.xlu1 %v886_v33, %s8823_s4  ;;  %1422 = vrot.lane.b32.xlu0 %v9187_v60, %s8837_s5 }
 0x638   :  { %975 = vrot.lane.b32.xlu1 %v962_v35, %s8838_s3  ;;  %967 = vrot.lane.b32.xlu0 %v9242_v31, %s8820_s26 }
 0x6a3   :  { %v1328_v20 = vpop.xlane.xlu1 %1327 }
 0x6a4   :  { %8448 = vrcp.f32 %v1328_v20 }
 0x6a7   :  { %v1331_v21 = vpop.xlane.xlu0 %1330 }
 0x6a8   :  { %v1334_v22 = vpop.xlane.xlu1 %1333  ;;  %8450 = vrcp.f32 %v1331_v21  ;;  %v1898_v21 = vld [vmem:[%s10113_s10 + $0x10] sm:$0xff] }
 0x6a9   :  { %8452 = vrcp.f32 %v1334_v22  ;;  %v1899_v22 = vld [vmem:[%s10113_s10 + $0x18] sm:$0xff] }
 0x6ab   :  { %v1337_v59 = vpop.xlane.xlu0 %1336 }
 0x6ac   :  { %v1499_v23 = vpop.permute.xlu1 %1498  ;;  %8454 = vrcp.f32 %v1337_v59  ;;  %v8270_v59 = vpack.c.bf16 %v1899_v22, %v1898_v21 }
 0x6ae   :  { %v8449_v61 = vpop.eup %8448 }
 0x6af   :  { %v1423_v24 = vpop.permute.xlu0 %1422  ;;  %v1339_v26 = vmul.f32 %v8449_v61, %v8441_v11  ;;  %v1804_v61 = vld [vmem:[%s10111_s8] sm:$0xff] }
 0x6b0   :  { %v1575_v27 = vpop.permute.xlu1 %1574  ;;  %7797 = vmatpush3.msra.mxu1 %v1423_v24  ;;  %v1805_v24 = vld [vmem:[%s10111_s8 + $0x8] sm:$0xff] }
 0x6b1   :  { %7794 = vmatmul.mubr.msk.f32.vlgmr.msra.gmra.mrb[10].mxu0 %vm305_vm2, %v1339_v26  ;;  %7806 = vmatprep.subr.mxu1 %v8831_v8  ;;  %v1806_v26 = vld [vmem:[%s10111_s8 + $0x10] sm:$0xff] }
 0x6b2   :  { %v8451_v60 = vpop.eup %8450  ;;  %7802 = vmatpush3.msra.mxu0 %v1499_v23  ;;  %7803 = vmatprep.mubr.msk.f32.mxu0 %vm8832_vm1, %v8831_v8  ;;  %v196_v23 = vld [vmem:[#allocation5] sm:$0xff] }
 0x6b3   :  { %v8453_v28 = vpop.eup %8452  ;;  %v968_v30 = vpop.permute.xlu0 %967  ;;  %v1341_v31 = vmul.f32 %v8451_v60, %v8443_v14  ;;  %v8258_v60 = vpack.c.bf16 %v1805_v24, %v1804_v61 }
 0x6b4   :  { %v972_v32 = vpop.permute.xlu1 %971  ;;  %v1343_v33 = vmul.f32 %v8453_v28, %v8445_v15  ;;  %v978_v34 = vsel %vm305_vm2, %v9240_v29, %v968_v30  ;;  %v1665_v29 = vld [vmem:[%s10151_s1] sm:$0xff]  ;;  %v197_v30 = vld [vmem:[#allocation5 + $0x8] sm:$0xff] }
 0x6b5   :  { %7799 = vmatmul.mubr.msk.f32.vlgmr.msra.gmra.mrb[16].mxu1 %vm305_vm2, %v1341_v31  ;;  %v980_v38 = vsel %vm979_vm4, %v978_v34, %v972_v32  ;;  %v8250_v41 = vpack.c.bf16 %v1666_v40, %v1665_v29  ;;  %v7326_v29 = vld [vmem:[%s10110_s7] ss:$0 sm:$0xff] }
 0x6b6   :  { %v8455_v35 = vpop.eup %8454  ;;  %7804 = vmatmul.mubr.msk.f32.vlgmr.msra.gmra.mrb[12].mxu0 %vm305_vm2, %v1343_v33  ;;  %7807 = vmatpush3.msra.mxu1 %v1575_v27  ;;  %v1807_v27 = vld [vmem:[%s10111_s8 + $0x18] sm:$0xff] }
 0x6b7   :  { %7808 = vmatprep.mubr.msk.f32.mxu1 %vm8832_vm1, %v8831_v8  ;;  %v1345_v36 = vmul.f32 %v8455_v35, %v8447_v18  ;;  %8251 = vmatprep.subr.bf16.mxu1 %v8250_v41  ;;  %v8262_v28 = vpack.c.bf16 %v1807_v27, %v1806_v26 }
 0x6b8   :  { %v976_v37 = vpop.permute.xlu1 %975  ;;  %7841 = vmatprep.mubr.msk.f32.mxu0 %vm214_vm0, %v196_v23 }
 0x6b9   :  { %v982_v39 = vsel %vm981_vm5, %v980_v38, %v976_v37  ;;  %7809 = vmatmul.mubr.msk.f32.vlgmr.msra.gmra.mrb[18].mxu1 %vm305_vm2, %v1345_v36  ;;  %v7325_v38 = vld [vmem:[%s10153_s21] ss:$0 sm:$0xff] }
 0x6ba   :  { %7819 = vmatprep.mubr.msk.f32.mxu1 %vm214_vm0, %v982_v39  ;;  %8253 = vmatpush3.bf16.msra.mxu1 %v8250_v41 }
 0x6bb   :  { %8255 = vmatprep.subr.bf16.mxu1 %v8254_v44 }
 0x6be   :  { %8257 = vmatpush3.bf16.msra.mxu1 %v8254_v44 }
 0x6bf   :  { %8259 = vmatprep.subr.bf16.mxu1 %v8258_v60 }
 0x784   :  { %v1418_v45 = vpop.f32.mrb[10].mxu0 }
 0x785   :  { %v7795_v46 = vpop.f32.mrb[11].mxu0 }
 0x786   :  { %v7330_v46 = vld [vmem:[%s10114_s11] ss:$0 sm:$0xff] }
 0x788   :  { %v1494_v47 = vpop.f32.mrb[16].mxu1 }
 0x789   :  { %v1570_v48 = vpop.f32.mrb[12].mxu0  ;;  %1651 = vrot.lane.b32.xlu0 %v1494_v47, %s8820_s26  ;;  %v7800_v49 = vpop.f32.mrb[17].mxu1 }
 0x78a   :  { %v7805_v50 = vpop.f32.mrb[13].mxu0 }
 0x78c   :  { %v1646_v51 = vpop.f32.mrb[18].mxu1 }
 0x78d   :  { %1655 = vrot.lane.b32.xlu0 %v1570_v48, %s8823_s4  ;;  %1659 = vrot.lane.b32.xlu1 %v1646_v51, %s8838_s3  ;;  %v7810_v52 = vpop.f32.mrb[19].mxu1 }
 0x7fb   :  { %v1652_v53 = vpop.permute.xlu0 %1651 }
 0x7fc   :  { %v1662_v54 = vsel %vm305_vm2, %v1418_v45, %v1652_v53  ;;  %v7327_v53 = vld [vmem:[%s10112_s9] ss:$0 sm:$0xff] }
 0x7ff   :  { %v1660_v55 = vpop.permute.xlu1 %1659  ;;  %v1656_v56 = vpop.permute.xlu0 %1655 }
 0x800   :  { %v1663_v57 = vsel %vm979_vm4, %v1662_v54, %v1656_v56 }
 0x801   :  { %v1664_v58 = vsel %vm981_vm5, %v1663_v57, %v1660_v55 }
 0x802   :  { %7820 = vmatmul.mubr.msk.f32.vlgmr.msra.gmra.mrb[20].mxu1 %vm214_vm0, %v1664_v58 }
 0x803   :  { %8261 = vmatpush3.bf16.msra.mxu1 %v8258_v60 }
 0x804   :  { %8263 = vmatprep.subr.bf16.mxu1 %v8262_v28 }
 0x807   :  { %8265 = vmatpush3.bf16.msra.mxu1 %v8262_v28 }
 0x808   :  { %7844 = vmatprep.subr.mxu1 %v8831_v8 }
 0x8d5   :  { %v7821_v63 = vpop.f32.mrb[20].mxu1 }
 0x8d6   :  { %v1754_v0 = vadd.f32 %v7821_v63, %v7322_v62  ;;  %v1748_v1 = vpop.f32.mrb[21].mxu1 }
 0x8d7   :  { %v1749_v2 = vadd.f32 %v7322_v62, %v1748_v1 }
 0x8d8   :  { %v1758_v3 = vadd.f32 %v1754_v0, %v9106_v7 }
 0x8d9   :  { %v1757_v4 = vadd.f32 %v1749_v2, %v9102_v5  ;;  %v1896_v5 = vld [vmem:[%s10113_s10] sm:$0xff] }
 0x8da   :  { %v1764_v6 = vsel %vm214_vm0, %v1758_v3, 0.0  ;;  %v8266_v20 = vpack.c.bf16 %v1897_v19, %v1896_v5 }
 0x8db   :  { %1765 = vadd.xlane.f32.xlu1 %v1764_v6  ;;  %v1761_v9 = vsel %vm214_vm0, %v1757_v4, 0.0 }
 0x8dc   :  { %1762 = vadd.xlane.f32.xlu0 %v1761_v9  ;;  %8267 = vmatprep.subr.bf16.mxu0 %v8266_v20 }
 0x8dd   :  { %8269 = vmatpush3.bf16.msra.mxu0 %v8266_v20 }
 0x8de   :  { %8271 = vmatprep.subr.bf16.mxu0 %v8270_v59 }
 0x8e1   :  { %8273 = vmatpush3.bf16.msra.mxu0 %v8270_v59 }
 0x8e2   :  { %7854 = vmatprep.subr.mxu0 %v8831_v8 }
 0x8e4   :  { %7842 = vmatmul.mubr.msk.f32.vlgmr.msra.gmra.mrb[14].mxu0 %vm214_vm0, %v197_v30 }
 0x8e5   :  { %7856 = vmatprep.mubr.msk.f32.mxu0 %vm8832_vm1, %v8831_v8 }
 0x968   :  { %v1766_v10 = vpop.xlane.xlu1 %1765 }
 0x969   :  { %v1769_v12 = vmul.f32 0.03125, %v1766_v10  ;;  %v1763_v11 = vpop.xlane.xlu0 %1762 }
 0x96a   :  { %v1768_v13 = vmul.f32 0.03125, %v1763_v11 }
 0x96b   :  { %v1771_v14 = vsub.f32 %v1758_v3, %v1769_v12 }
 0x96c   :  { %v1770_v15 = vsub.f32 %v1757_v4, %v1768_v13 }
 0x96d   :  { %v1773_v18 = vmul.f32 %v1771_v14, %v1771_v14 }
 0x96e   :  { %v1772_v16 = vmul.f32 %v1770_v15, %v1770_v15 }
 0x96f   :  { %v1777_v7 = vsel %vm214_vm0, %v1773_v18, 0.0 }
 0x970   :  { %v1774_v17 = vsel %vm214_vm0, %v1772_v16, 0.0 }
 0x971   :  { %1775 = vadd.xlane.f32.xlu0 %v1774_v17 }
 0x975   :  { %1778 = vadd.xlane.f32.xlu0 %v1777_v7 }
 0x9b7   :  { %v7843_v47 = vpop.f32.mrb[14].mxu0 }
 0x9b8   :  { %v9364_v48 = vadd.f32 %v7843_v47, %v7330_v46  ;;  %v1979_v49 = vpop.f32.mrb[15].mxu0 }
 0x9b9   :  { %v1980_v50 = vadd.f32 %v7330_v46, %v1979_v49 }
 0x9bb   :  { %1996 = vrot.lane.b32.xlu1 %v1980_v50, %s8834_s14 }
 0x9bf   :  { %1998 = vrot.lane.b32.xlu1 %v1980_v50, %s8836_s23 }
 0x9c3   :  { %2000 = vrot.lane.b32.xlu1 %v1980_v50, %s8833_s30 }
 0x9fe   :  { %v1776_v31 = vpop.xlane.xlu0 %1775 }
 0x9ff   :  { %v1780_v32 = vmul.f32 0.03125, %v1776_v31 }
 0xa01   :  { %v1782_v33 = vadd.f32 1e-05, %v1780_v32 }
 0xa02   :  { %v1779_v34 = vpop.xlane.xlu0 %1778 }
 0xa03   :  { %8456 = vrsqrt.f32 %v1782_v33  ;;  %v1781_v35 = vmul.f32 0.03125, %v1779_v34 }
 0xa05   :  { %v1783_v36 = vadd.f32 1e-05, %v1781_v35 }
 0xa07   :  { %8458 = vrsqrt.f32 %v1783_v36 }
 0xa0d   :  { %v8457_v37 = vpop.eup %8456 }
 0xa0e   :  { %v1786_v39 = vmul.f32 %v8457_v37, %v1770_v15 }
 0xa10   :  { %v1794_v40 = vmul.f32 %v7325_v38, %v1786_v39 }
 0xa11   :  { %v8459_v41 = vpop.eup %8458 }
 0xa12   :  { %v1787_v42 = vmul.f32 %v8459_v41, %v1771_v14  ;;  %v9351_v43 = vadd.f32 %v7326_v29, %v1794_v40 }
 0xa14   :  { %v1795_v44 = vmul.f32 %v7325_v38, %v1787_v42  ;;  %7830 = vmatprep.mubr.msk.f32.mxu1 %vm214_vm0, %v9351_v43 }
 0xa16   :  { %v9355_v45 = vadd.f32 %v7326_v29, %v1795_v44 }
 0xa18   :  { %7831 = vmatmul.mubr.msk.f32.vlgmr.msra.gmra.mrb[22].mxu1 %vm214_vm0, %v9355_v45 }
 0xa19   :  { %7846 = vmatprep.mubr.msk.f32.mxu1 %vm8832_vm1, %v8831_v8  ;;  %7845 = vmatpush3.xpose.msk.msra.mxu1 %vm305_vm2, %v1980_v50 }
 0xa1a   :  { %7849 = vmatprep.subr.mxu1 %v8831_v8 }
 0xa2d   :  { %v1997_v51 = vpop.permute.xlu1 %1996 }
 0xa31   :  { %v1999_v52 = vpop.permute.xlu1 %1998 }
 0xa32   :  { %7855 = vmatpush3.xpose.msk.msra.mxu0 %vm305_vm2, %v1999_v52 }
 0xa33   :  { %7864 = vmatprep.subr.mxu0 %v8831_v8 }
 0xa35   :  { %v2001_v58 = vpop.permute.xlu1 %2000 }
 0xaeb   :  { %v7832_v54 = vpop.f32.mrb[22].mxu1 }
 0xaec   :  { %v9376_v55 = vadd.f32 %v7832_v54, %v7327_v53  ;;  %v1887_v56 = vpop.f32.mrb[23].mxu1 }
 0xaed   :  { %v1888_v57 = vadd.f32 %v7327_v53, %v1887_v56 }
 0xaef   :  { %1993 = vrot.lane.b32.xlu1 %v1888_v57, %s8833_s30  ;;  %1989 = vrot.lane.b32.xlu0 %v1888_v57, %s8834_s14 }
 0xaf0   :  { %7847 = vmatmul.mubr.msk.f32.vlgmr.msra.gmra.mrb[24].mxu1 %vm305_vm2, %v1888_v57 }
 0xaf1   :  { %7850 = vmatpush3.xpose.msk.msra.mxu1 %vm305_vm2, %v1997_v51  ;;  %7851 = vmatprep.mubr.msk.f32.mxu1 %vm8832_vm1, %v8831_v8 }
 0xaf2   :  { %7859 = vmatprep.subr.mxu1 %v8831_v8 }
 0xaf3   :  { %2346 = vrot.lane.b32.xlu1 %v1980_v50, %s8835_s17  ;;  %1991 = vrot.lane.b32.xlu0 %v1888_v57, %s8836_s23 }
 0xb61   :  { %v1994_v62 = vpop.permute.xlu1 %1993  ;;  %v1990_v63 = vpop.permute.xlu0 %1989 }
 0xb62   :  { %7852 = vmatmul.mubr.msk.f32.vlgmr.msra.gmra.mrb[26].mxu1 %vm305_vm2, %v1990_v63 }
 0xb63   :  { %7860 = vmatpush3.xpose.msk.msra.mxu1 %vm305_vm2, %v2001_v58  ;;  %7861 = vmatprep.mubr.msk.f32.mxu1 %vm8832_vm1, %v8831_v8 }
 0xb64   :  { %7869 = vmatprep.subr.mxu1 %v8831_v8 }
 0xb65   :  { %v2347_v0 = vpop.permute.xlu1 %2346  ;;  %v1992_v1 = vpop.permute.xlu0 %1991 }
 0xb66   :  { %7857 = vmatmul.mubr.msk.f32.vlgmr.msra.gmra.mrb[16].mxu0 %vm305_vm2, %v1992_v1  ;;  %7862 = vmatmul.mubr.msk.f32.vlgmr.msra.gmra.mrb[28].mxu1 %vm305_vm2, %v1994_v62 }
 0xb67   :  { %7865 = vmatpush3.msra.mxu0 %v2347_v0  ;;  %7866 = vmatprep.mubr.msk.f32.mxu0 %vm8832_vm1, %v8831_v8 }
 0xb68   :  { %7874 = vmatprep.subr.mxu0 %v8831_v8  ;;  %7871 = vmatprep.mubr.msk.f32.mxu1 %vm8832_vm1, %v8831_v8 }
 0xbc3   :  { %v2072_v2 = vpop.f32.mrb[24].mxu1 }
 0xbc4   :  { %v2298_v3 = vmul.f32 0.35355338, %v2072_v2  ;;  %v7848_v4 = vpop.f32.mrb[25].mxu1 }
 0xbc6   :  { %v2302_v6 = vsel %vm305_vm2, %v2298_v3, -inf }
 0xbc7   :  { %2303 = vmax.xlane.f32.xlu0 %v2302_v6 }
 0xc35   :  { %v2146_v9 = vpop.f32.mrb[26].mxu1 }
 0xc36   :  { %v2299_v10 = vmul.f32 0.35355338, %v2146_v9  ;;  %v7853_v12 = vpop.f32.mrb[27].mxu1 }
 0xc38   :  { %v2305_v11 = vsel %vm305_vm2, %v2299_v10, -inf }
 0xc39   :  { %v2220_v13 = vpop.f32.mrb[16].mxu0  ;;  %2306 = vmax.xlane.f32.xlu1 %v2305_v11  ;;  %v2294_v14 = vpop.f32.mrb[28].mxu1 }
 0xc3a   :  { %v2300_v15 = vmul.f32 0.35355338, %v2220_v13  ;;  %v7858_v16 = vpop.f32.mrb[17].mxu0  ;;  %v7863_v17 = vpop.f32.mrb[29].mxu1  ;;  %v2301_v18 = vmul.f32 0.35355338, %v2294_v14 }
 0xc3c   :  { %v2308_v7 = vsel %vm305_vm2, %v2300_v15, -inf  ;;  %v2311_v5 = vsel %vm305_vm2, %v2301_v18, -inf }
 0xc3d   :  { %2309 = vmax.xlane.f32.xlu0 %v2308_v7 }
 0xc41   :  { %2312 = vmax.xlane.f32.xlu0 %v2311_v5 }
 0xc4a   :  { %2498 = vrot.lane.b32.xlu1 %v1999_v52, %s8835_s17 }
 0xc4e   :  { %2574 = vrot.lane.b32.xlu1 %v2001_v58, %s8835_s17 }
 0xc54   :  { %v2304_v19 = vpop.xlane.xlu0 %2303 }
 0xc55   :  { %v2314_v20 = vsub.f32 %v2298_v3, %v2304_v19 }
 0xc57   :  { %2422 = vrot.lane.b32.xlu0 %v1997_v51, %s8835_s17  ;;  %v2318_v21 = vmul.f32 1.442695, %v2314_v20 }
 0xc59   :  { %8460 = vpow2.f32 %v2318_v21 }
 0xc63   :  { %v8461_v22 = vpop.eup %8460 }
 0xc64   :  { %v2326_v59 = vsel %vm305_vm2, %v8461_v22, 0.0 }
 0xc72   :  { %2327 = vadd.xlane.f32.xlu1 %v2326_v59 }
 0xc83   :  { %2666 = vrot.lane.b32.xlu1 %v9376_v55, %s8834_s14 }
 0xcc6   :  { %v2307_v23 = vpop.xlane.xlu1 %2306 }
 0xcc7   :  { %v2315_v61 = vsub.f32 %v2299_v10, %v2307_v23 }
 0xcc9   :  { %v2320_v24 = vmul.f32 1.442695, %v2315_v61 }
 0xcca   :  { %v2310_v26 = vpop.xlane.xlu0 %2309  ;;  %v2499_v35 = vpop.permute.xlu1 %2498 }
 0xccb   :  { %8462 = vpow2.f32 %v2320_v24  ;;  %v2316_v27 = vsub.f32 %v2300_v15, %v2310_v26 }
 0xccd   :  { %v2322_v60 = vmul.f32 1.442695, %v2316_v27 }
 0xcce   :  { %v2313_v28 = vpop.xlane.xlu0 %2312  ;;  %v2575_v38 = vpop.permute.xlu1 %2574 }
 0xccf   :  { %8464 = vpow2.f32 %v2322_v60  ;;  %v2317_v36 = vsub.f32 %v2301_v18, %v2313_v28 }
 0xcd1   :  { %v2324_v37 = vmul.f32 1.442695, %v2317_v36 }
 0xcd2   :  { %v2423_v30 = vpop.permute.xlu0 %2422 }
 0xcd3   :  { %7870 = vmatpush3.msra.mxu1 %v2423_v30  ;;  %8466 = vpow2.f32 %v2324_v37 }
 0xcd4   :  { %7879 = vmatprep.subr.mxu1 %v8831_v8 }
 0xcd5   :  { %v8463_v31 = vpop.eup %8462 }
 0xcd6   :  { %v2329_v32 = vsel %vm305_vm2, %v8463_v31, 0.0 }
 0xcd7   :  { %2330 = vadd.xlane.f32.xlu0 %v2329_v32 }
 0xcd9   :  { %v8465_v33 = vpop.eup %8464 }
 0xcda   :  { %v2332_v34 = vsel %vm305_vm2, %v8465_v33, 0.0 }
 0xcdb   :  { %2333 = vadd.xlane.f32.xlu1 %v2332_v34 }
 0xcdd   :  { %v8467_v29 = vpop.eup %8466 }
 0xcde   :  { %v2335_v41 = vsel %vm305_vm2, %v8467_v29, 0.0 }
 0xcec   :  { %2677 = vrot.lane.b32.xlu1 %v9364_v48, %s8833_s30 }
 0xced   :  { %2673 = vrot.lane.b32.xlu0 %v9364_v48, %s8834_s14 }
 0xcf0   :  { %2670 = vrot.lane.b32.xlu1 %v9376_v55, %s8833_s30 }
 0xcff   :  { %v2328_v39 = vpop.xlane.xlu1 %2327 }
 0xd00   :  { %8468 = vrcp.f32 %v2328_v39 }
 0xd03   :  { %v2667_v44 = vpop.permute.xlu1 %2666 }
 0xd0a   :  { %v8469_v40 = vpop.eup %8468 }
 0xd0b   :  { %v2339_v42 = vmul.f32 %v8469_v40, %v8461_v22 }
 0xd0c   :  { %2336 = vadd.xlane.f32.xlu0 %v2335_v41 }
 0xd0d   :  { %7867 = vmatmul.mubr.msk.f32.vlgmr.msra.gmra.mrb[18].mxu0 %vm305_vm2, %v2339_v42 }
 0xd0e   :  { %7875 = vmatpush3.msra.mxu0 %v2499_v35  ;;  %7876 = vmatprep.mubr.msk.f32.mxu0 %vm8832_vm1, %v8831_v8 }
 0xd0f   :  { %7884 = vmatprep.subr.mxu0 %v8831_v8 }
 0xd22   :  { %2675 = vrot.lane.b32.xlu0 %v9364_v48, %s8836_s23 }
 0xd26   :  { %2668 = vrot.lane.b32.xlu0 %v9376_v55, %s8836_s23 }
 0xd64   :  { %v2331_v46 = vpop.xlane.xlu0 %2330 }
 0xd65   :  { %8470 = vrcp.f32 %v2331_v46 }
 0xd68   :  { %v2334_v47 = vpop.xlane.xlu1 %2333  ;;  %v9441_v53 = vpop.permute.xlu0 %2673 }
 0xd69   :  { %8472 = vrcp.f32 %v2334_v47 }
 0xd6c   :  { %v9452_v62 = vpop.permute.xlu1 %2677 }
 0xd6f   :  { %v8471_v49 = vpop.eup %8470 }
 0xd70   :  { %v2341_v50 = vmul.f32 %v8471_v49, %v8463_v31  ;;  %v2671_v63 = vpop.permute.xlu1 %2670 }
 0xd72   :  { %7872 = vmatmul.mubr.msk.f32.vlgmr.msra.gmra.mrb[30].mxu1 %vm305_vm2, %v2341_v50 }
 0xd73   :  { %v8473_v51 = vpop.eup %8472  ;;  %7880 = vmatpush3.msra.mxu1 %v2575_v38  ;;  %7881 = vmatprep.mubr.msk.f32.mxu1 %vm8832_vm1, %v8831_v8 }
 0xd74   :  { %v2343_v52 = vmul.f32 %v8473_v51, %v8465_v33  ;;  %7889 = vmatprep.subr.mxu1 %v8831_v8 }
 0xd76   :  { %7877 = vmatmul.mubr.msk.f32.vlgmr.msra.gmra.mrb[20].mxu0 %vm305_vm2, %v2343_v52 }
 0xd77   :  { %7885 = vmatpush3.xpose.msk.msra.mxu0 %vm305_vm2, %v9364_v48  ;;  %7886 = vmatprep.mubr.msk.f32.mxu0 %vm8832_vm1, %v8831_v8 }
 0xd78   :  { %7894 = vmatprep.subr.mxu0 %v8831_v8 }
 0xd7a   :  { %7887 = vmatmul.mubr.msk.f32.vlgmr.msra.gmra.mrb[22].mxu0 %vm305_vm2, %v9376_v55 }
 0xd7b   :  { %7896 = vmatprep.mubr.msk.f32.mxu0 %vm8832_vm1, %v8831_v8 }
 0xd99   :  { %v2337_v54 = vpop.xlane.xlu0 %2336 }
 0xd9a   :  { %8474 = vrcp.f32 %v2337_v54 }
 0xd9d   :  { %v9443_v56 = vpop.permute.xlu0 %2675 }
 0xd9e   :  { %7895 = vmatpush3.xpose.msk.msra.mxu0 %vm305_vm2, %v9443_v56 }
 0xd9f   :  { %7904 = vmatprep.subr.mxu0 %v8831_v8 }
 0xda1   :  { %v2669_v57 = vpop.permute.xlu0 %2668 }
 0xda2   :  { %7897 = vmatmul.mubr.msk.f32.vlgmr.msra.gmra.mrb[24].mxu0 %vm305_vm2, %v2669_v57 }
 0xda3   :  { %7906 = vmatprep.mubr.msk.f32.mxu0 %vm8832_vm1, %v8831_v8 }
 0xda4   :  { %v8475_v55 = vpop.eup %8474 }
 0xda5   :  { %v2345_v58 = vmul.f32 %v8475_v55, %v8467_v29 }
 0xda7   :  { %7882 = vmatmul.mubr.msk.f32.vlgmr.msra.gmra.mrb[32].mxu1 %vm305_vm2, %v2345_v58 }
 0xda8   :  { %7890 = vmatpush3.xpose.msk.msra.mxu1 %vm305_vm2, %v9441_v53  ;;  %7891 = vmatprep.mubr.msk.f32.mxu1 %vm8832_vm1, %v8831_v8 }
 0xda9   :  { %7899 = vmatprep.subr.mxu1 %v8831_v8 }
 0xdab   :  { %7892 = vmatmul.mubr.msk.f32.vlgmr.msra.gmra.mrb[34].mxu1 %vm305_vm2, %v2667_v44 }
 0xdac   :  { %7900 = vmatpush3.xpose.msk.msra.mxu1 %vm305_vm2, %v9452_v62  ;;  %7901 = vmatprep.mubr.msk.f32.mxu1 %vm8832_vm1, %v8831_v8 }
 0xdad   :  { %7909 = vmatprep.subr.mxu1 %v8831_v8 }
 0xdaf   :  { %7902 = vmatmul.mubr.msk.f32.vlgmr.msra.gmra.mrb[36].mxu1 %vm305_vm2, %v2671_v63 }
 0xdb0   :  { %7911 = vmatprep.mubr.msk.f32.mxu1 %vm8832_vm1, %v8831_v8 }
 0xde0   :  { %v9468_v0 = vpop.f32.mrb[18].mxu0 }
 0xde1   :  { %v7868_v1 = vpop.f32.mrb[19].mxu0 }
 0xe45   :  { %v2494_v2 = vpop.f32.mrb[30].mxu1 }
 0xe46   :  { %v7873_v3 = vpop.f32.mrb[31].mxu1 }
 0xe49   :  { %v2570_v4 = vpop.f32.mrb[20].mxu0 }
 0xe4a   :  { %v7878_v6 = vpop.f32.mrb[21].mxu0 }
 0xe4d   :  { %v2749_v9 = vpop.f32.mrb[22].mxu0 }
 0xe4e   :  { %v2975_v10 = vmul.f32 0.35355338, %v2749_v9  ;;  %v7888_v12 = vpop.f32.mrb[23].mxu0 }
 0xe50   :  { %v2979_v11 = vsel %vm305_vm2, %v2975_v10, -inf }
 0xe51   :  { %2980 = vmax.xlane.f32.xlu0 %v2979_v11 }
 0xe75   :  { %v2897_v13 = vpop.f32.mrb[24].mxu0 }
 0xe76   :  { %v2977_v14 = vmul.f32 0.35355338, %v2897_v13  ;;  %v7898_v15 = vpop.f32.mrb[25].mxu0 }
 0xe77   :  { %v3345_v15 = vld [vmem:[%s10115_s12 + $0x18] sm:$0xff] }
 0xe78   :  { %v2985_v16 = vsel %vm305_vm2, %v2977_v14, -inf }
 0xe79   :  { %2986 = vmax.xlane.f32.xlu0 %v2985_v16 }
 0xe7a   :  { %v2646_v17 = vpop.f32.mrb[32].mxu1 }
 0xe7b   :  { %v7883_v18 = vpop.f32.mrb[33].mxu1 }
 0xe7e   :  { %v2823_v7 = vpop.f32.mrb[34].mxu1 }
 0xe7f   :  { %v2976_v5 = vmul.f32 0.35355338, %v2823_v7  ;;  %v7893_v19 = vpop.f32.mrb[35].mxu1 }
 0xe81   :  { %v2982_v20 = vsel %vm305_vm2, %v2976_v5, -inf }
 0xe82   :  { %2983 = vmax.xlane.f32.xlu1 %v2982_v20  ;;  %v2971_v21 = vpop.f32.mrb[36].mxu1 }
 0xe83   :  { %v2978_v22 = vmul.f32 0.35355338, %v2971_v21  ;;  %v7903_v59 = vpop.f32.mrb[37].mxu1 }
 0xe85   :  { %v2988_v23 = vsel %vm305_vm2, %v2978_v22, -inf }
 0xe86   :  { %2989 = vmax.xlane.f32.xlu0 %v2988_v23 }
 0xe93   :  { %3023 = vrot.lane.b32.xlu1 %v9364_v48, %s8835_s17 }
 0xede   :  { %v2981_v61 = vpop.xlane.xlu0 %2980 }
 0xedf   :  { %v2991_v24 = vsub.f32 %v2975_v10, %v2981_v61  ;;  %v3343_v10 = vld [vmem:[%s10115_s12 + $0x8] sm:$0xff] }
 0xee1   :  { %v2995_v26 = vmul.f32 1.442695, %v2991_v24 }
 0xee3   :  { %8476 = vpow2.f32 %v2995_v26  ;;  %v7357_v26 = vld [vmem:[%s10116_s13] ss:$0 sm:$0xff] }
 0xeed   :  { %v8477_v27 = vpop.eup %8476 }
 0xeee   :  { %v3003_v60 = vsel %vm305_vm2, %v8477_v27, 0.0 }
 0xeef   :  { %3004 = vadd.xlane.f32.xlu1 %v3003_v60 }
 0xf06   :  { %v2987_v28 = vpop.xlane.xlu0 %2986 }
 0xf07   :  { %v2993_v30 = vsub.f32 %v2977_v14, %v2987_v28  ;;  %v3344_v14 = vld [vmem:[%s10115_s12 + $0x10] sm:$0xff] }
 0xf08   :  { %v8278_v16 = vpack.c.bf16 %v3345_v15, %v3344_v14  ;;  %v3594_v14 = vld [vmem:[%s10154_s0 + $0x20] sm:$0xff]  ;;  %v3595_v15 = vld [vmem:[%s10154_s0 + $0x28] sm:$0xff] }
 0xf09   :  { %v2999_v31 = vmul.f32 1.442695, %v2993_v30 }
 0xf0b   :  { %8478 = vpow2.f32 %v2999_v31 }
 0xf0f   :  { %v2984_v32 = vpop.xlane.xlu1 %2983 }
 0xf10   :  { %v2992_v33 = vsub.f32 %v2976_v5, %v2984_v32 }
 0xf12   :  { %v2997_v34 = vmul.f32 1.442695, %v2992_v33 }
 0xf13   :  { %v3024_v35 = vpop.permute.xlu1 %3023  ;;  %v2990_v36 = vpop.xlane.xlu0 %2989 }
 0xf14   :  { %8480 = vpow2.f32 %v2997_v34  ;;  %v2994_v37 = vsub.f32 %v2978_v22, %v2990_v36  ;;  %7905 = vmatpush3.msra.mxu0 %v3024_v35 }
 0xf15   :  { %v8479_v48 = vpop.eup %8478  ;;  %7914 = vmatprep.subr.mxu0 %v8831_v8 }
 0xf16   :  { %v3001_v38 = vmul.f32 1.442695, %v2994_v37  ;;  %v3009_v39 = vsel %vm305_vm2, %v8479_v48, 0.0 }
 0xf17   :  { %3010 = vadd.xlane.f32.xlu1 %v3009_v39 }
 0xf18   :  { %8482 = vpow2.f32 %v3001_v38 }
 0xf1e   :  { %v8481_v29 = vpop.eup %8480 }
 0xf1f   :  { %v3006_v40 = vsel %vm305_vm2, %v8481_v29, 0.0 }
 0xf20   :  { %3007 = vadd.xlane.f32.xlu0 %v3006_v40 }
 0xf22   :  { %v8483_v41 = vpop.eup %8482 }
 0xf23   :  { %v3012_v42 = vsel %vm305_vm2, %v8483_v41, 0.0 }
 0xf24   :  { %3013 = vadd.xlane.f32.xlu0 %v3012_v42  ;;  %v3481_v42 = vld [vmem:[#allocation10 + $0x8] sm:$0xff] }
 0xf28   :  { %3175 = vrot.lane.b32.xlu1 %v9443_v56, %s8835_s17 }
 0xf2c   :  { %3251 = vrot.lane.b32.xlu1 %v9452_v62, %s8835_s17 }
 0xf30   :  { %2655 = vrot.lane.b32.xlu1 %v2570_v4, %s8823_s4 }
 0xf34   :  { %2659 = vrot.lane.b32.xlu1 %v2646_v17, %s8838_s3 }
 0xf3a   :  { %3099 = vrot.lane.b32.xlu0 %v9441_v53, %s8835_s17 }
 0xf3e   :  { %2651 = vrot.lane.b32.xlu0 %v2494_v2, %s8820_s26 }
 0xf7c   :  { %v3005_v44 = vpop.xlane.xlu1 %3004 }
 0xf7d   :  { %8484 = vrcp.f32 %v3005_v44  ;;  %v3482_v44 = vld [vmem:[#allocation10 + $0x10] sm:$0xff] }
 0xf87   :  { %v8485_v46 = vpop.eup %8484 }
 0xf88   :  { %v3016_v47 = vmul.f32 %v8485_v46, %v8477_v27 }
 0xf8a   :  { %7907 = vmatmul.mubr.msk.f32.vlgmr.msra.gmra.mrb[26].mxu0 %vm305_vm2, %v3016_v47  ;;  %v3483_v47 = vld [vmem:[#allocation10 + $0x18] sm:$0xff] }
 0xf8b   :  { %7916 = vmatprep.mubr.msk.f32.mxu0 %vm8832_vm1, %v8831_v8 }
 0xfa4   :  { %v3011_v49 = vpop.xlane.xlu1 %3010 }
 0xfa5   :  { %8486 = vrcp.f32 %v3011_v49  ;;  %v8286_v49 = vpack.c.bf16 %v3483_v47, %v3482_v44 }
 0xfa8   :  { %v3176_v50 = vpop.permute.xlu1 %3175 }
 0xfa9   :  { %7915 = vmatpush3.msra.mxu0 %v3176_v50  ;;  %v3590_v50 = vld [vmem:[%s10154_s0] sm:$0xff] }
 0xfac   :  { %v3252_v54 = vpop.permute.xlu1 %3251 }
 0xfad   :  { %v3008_v51 = vpop.xlane.xlu0 %3007 }
 0xfae   :  { %8488 = vrcp.f32 %v3008_v51  ;;  %v3591_v51 = vld [vmem:[%s10154_s0 + $0x8] sm:$0xff] }
 0xfaf   :  { %v8487_v52 = vpop.eup %8486 }
 0xfb0   :  { %v3020_v53 = vmul.f32 %v8487_v52, %v8479_v48  ;;  %v2656_v57 = vpop.permute.xlu1 %2655  ;;  %v8290_v52 = vpack.c.bf16 %v3591_v51, %v3590_v50  ;;  %v7365_v51 = vld [vmem:[#allocation13] ss:$0 sm:$0xff] }
 0xfb1   :  { %v3014_v56 = vpop.xlane.xlu0 %3013 }
 0xfb2   :  { %8490 = vrcp.f32 %v3014_v56  ;;  %7917 = vmatmul.mubr.msk.f32.vlgmr.msra.gmra.mrb[28].mxu0 %vm305_vm2, %v3020_v53 }
 0xfb4   :  { %v2660_v2 = vpop.permute.xlu1 %2659 }
 0xfb5   :  { %v3100_v55 = vpop.permute.xlu0 %3099 }
 0xfb6   :  { %7910 = vmatpush3.msra.mxu1 %v3100_v55 }
 0xfb7   :  { %7919 = vmatprep.subr.mxu1 %v8831_v8 }
 0xfb8   :  { %v8489_v58 = vpop.eup %8488 }
 0xfb9   :  { %v2652_v62 = vpop.permute.xlu0 %2651  ;;  %v3018_v63 = vmul.f32 %v8489_v58, %v8481_v29 }
 0xfba   :  { %v2662_v1 = vsel %vm305_vm2, %v9468_v0, %v2652_v62  ;;  %v3342_v0 = vld [vmem:[%s10115_s12] sm:$0xff] }
 0xfbb   :  { %v2663_v3 = vsel %vm979_vm4, %v2662_v1, %v2656_v57  ;;  %7912 = vmatmul.mubr.msk.f32.vlgmr.msra.gmra.mrb[38].mxu1 %vm305_vm2, %v3018_v63  ;;  %v8274_v12 = vpack.c.bf16 %v3343_v10, %v3342_v0  ;;  %v7360_v63 = vld [vmem:[#allocation7] ss:$0 sm:$0xff] }
 0xfbc   :  { %v8491_v4 = vpop.eup %8490  ;;  %7920 = vmatpush3.msra.mxu1 %v3252_v54  ;;  %v2664_v6 = vsel %vm981_vm5, %v2663_v3, %v2660_v2  ;;  %7921 = vmatprep.mubr.msk.f32.mxu1 %vm8832_vm1, %v8831_v8  ;;  %v7361_v2 = vld [vmem:[#allocation8] ss:$0 sm:$0xff] }
 0xfbd   :  { %7932 = vmatprep.mubr.msk.f32.mxu0 %vm214_vm0, %v2664_v6  ;;  %v3022_v9 = vmul.f32 %v8491_v4, %v8483_v41  ;;  %8275 = vmatprep.subr.bf16.mxu0 %v8274_v12 }
 0xfbe   :  { %8277 = vmatpush3.bf16.msra.mxu0 %v8274_v12  ;;  %v3592_v12 = vld [vmem:[%s10154_s0 + $0x10] sm:$0xff] }
 0xfbf   :  { %7922 = vmatmul.mubr.msk.f32.vlgmr.msra.gmra.mrb[40].mxu1 %vm305_vm2, %v3022_v9  ;;  %8279 = vmatprep.subr.bf16.mxu0 %v8278_v16 }
 0xfc2   :  { %8281 = vmatpush3.bf16.msra.mxu0 %v8278_v16  ;;  %v8298_v16 = vpack.c.bf16 %v3595_v15, %v3594_v14  ;;  %v7370_v14 = vld [vmem:[%s10147_s6 + $0x30] sm:$0xff] }
 0xfc3   :  { %8291 = vmatprep.subr.bf16.mxu0 %v8290_v52 }
0x105d   :  { %v3095_v11 = vpop.f32.mrb[26].mxu0 }
0x105e   :  { %v7908_v13 = vpop.f32.mrb[27].mxu0 }
0x1085   :  { %v3247_v17 = vpop.f32.mrb[28].mxu0 }
0x1086   :  { %v7918_v18 = vpop.f32.mrb[29].mxu0 }
0x1087   :  { %v3597_v18 = vld [vmem:[%s10154_s0 + $0x38] sm:$0xff] }
0x108e   :  { %v3171_v7 = vpop.f32.mrb[38].mxu1 }
0x108f   :  { %3328 = vrot.lane.b32.xlu0 %v3171_v7, %s8820_s26  ;;  %v7913_v5 = vpop.f32.mrb[39].mxu1 }
0x1090   :  { %v3598_v5 = vld [vmem:[%s10154_s0 + $0x40] sm:$0xff] }
0x1092   :  { %v3323_v19 = vpop.f32.mrb[40].mxu1 }
0x1093   :  { %3332 = vrot.lane.b32.xlu0 %v3247_v17, %s8823_s4  ;;  %3336 = vrot.lane.b32.xlu1 %v3323_v19, %s8838_s3  ;;  %v7923_v20 = vpop.f32.mrb[41].mxu1  ;;  %v3596_v17 = vld [vmem:[%s10154_s0 + $0x30] sm:$0xff]  ;;  %v3599_v19 = vld [vmem:[%s10154_s0 + $0x48] sm:$0xff] }
0x1094   :  { %v8302_v7 = vpack.c.bf16 %v3597_v18, %v3596_v17  ;;  %v8306_v20 = vpack.c.bf16 %v3599_v19, %v3598_v5 }
0x1101   :  { %v3329_v21 = vpop.permute.xlu0 %3328 }
0x1102   :  { %v3339_v22 = vsel %vm305_vm2, %v3095_v11, %v3329_v21  ;;  %v3593_v11 = vld [vmem:[%s10154_s0 + $0x18] sm:$0xff]  ;;  %v3600_v21 = vld [vmem:[%s10154_s0 + $0x50] sm:$0xff] }
0x1103   :  { %v8294_v13 = vpack.c.bf16 %v3593_v11, %v3592_v12 }
0x1105   :  { %v3333_v59 = vpop.permute.xlu0 %3332  ;;  %v3337_v23 = vpop.permute.xlu1 %3336 }
0x1106   :  { %v3340_v61 = vsel %vm979_vm4, %v3339_v22, %v3333_v59  ;;  %v3601_v22 = vld [vmem:[%s10154_s0 + $0x58] sm:$0xff] }
0x1107   :  { %v3341_v24 = vsel %vm981_vm5, %v3340_v61, %v3337_v23  ;;  %v8310_v59 = vpack.c.bf16 %v3601_v22, %v3600_v21  ;;  %v3602_v23 = vld [vmem:[%s10154_s0 + $0x60] sm:$0xff]  ;;  %v3603_v61 = vld [vmem:[%s10154_s0 + $0x68] sm:$0xff] }
0x1108   :  { %7933 = vmatmul.mubr.msk.f32.vlgmr.msra.gmra.mrb[30].mxu0 %vm214_vm0, %v3341_v24  ;;  %v8314_v24 = vpack.c.bf16 %v3603_v61, %v3602_v23 }
0x1109   :  { %8293 = vmatpush3.bf16.msra.mxu0 %v8290_v52 }
0x110a   :  { %8295 = vmatprep.subr.bf16.mxu0 %v8294_v13 }
0x110d   :  { %8297 = vmatpush3.bf16.msra.mxu0 %v8294_v13  ;;  %v7369_v13 = vld [vmem:[%s10147_s6 + $0x28] sm:$0xff] }
0x110e   :  { %8299 = vmatprep.subr.bf16.mxu0 %v8298_v16 }
0x1111   :  { %8301 = vmatpush3.bf16.msra.mxu0 %v8298_v16  ;;  %v7371_v16 = vld [vmem:[%s10147_s6 + $0x38] sm:$0xff] }
0x1112   :  { %8303 = vmatprep.subr.bf16.mxu0 %v8302_v7  ;;  %v8326_v17 = vpack.c.bf16 %v7371_v16, %v7370_v14 }
0x1115   :  { %8305 = vmatpush3.bf16.msra.mxu0 %v8302_v7 }
0x1116   :  { %8307 = vmatprep.subr.bf16.mxu0 %v8306_v20 }
0x1119   :  { %8309 = vmatpush3.bf16.msra.mxu0 %v8306_v20 }
0x111a   :  { %8311 = vmatprep.subr.bf16.mxu0 %v8310_v59 }
0x111d   :  { %8313 = vmatpush3.bf16.msra.mxu0 %v8310_v59  ;;  %v7366_v59 = vld [vmem:[#allocation14] ss:$0 sm:$0xff] }
0x111e   :  { %8315 = vmatprep.subr.bf16.mxu0 %v8314_v24 }
0x1121   :  { %8317 = vmatpush3.bf16.msra.mxu0 %v8314_v24 }
0x11db   :  { %v7934_v27 = vpop.f32.mrb[30].mxu0 }
0x11dc   :  { %v3431_v60 = vadd.f32 %v7934_v27, %v7357_v26  ;;  %v3425_v28 = vpop.f32.mrb[31].mxu0  ;;  %v3605_v27 = vld [vmem:[%s10154_s0 + $0x78] sm:$0xff] }
0x11dd   :  { %v3426_v30 = vadd.f32 %v7357_v26, %v3425_v28  ;;  %v3604_v26 = vld [vmem:[%s10154_s0 + $0x70] sm:$0xff]  ;;  %v7362_v28 = vld [vmem:[#allocation11] ss:$0 sm:$0xff] }
0x11de   :  { %v3435_v31 = vadd.f32 %v3431_v60, %v9355_v45  ;;  %v8318_v60 = vpack.c.bf16 %v3605_v27, %v3604_v26  ;;  %v7367_v26 = vld [vmem:[#allocation16] ss:$0 sm:$0xff] }
0x11df   :  { %v3434_v32 = vadd.f32 %v3426_v30, %v9351_v43  ;;  %v3480_v43 = vld [vmem:[#allocation10] sm:$0xff] }
0x11e0   :  { %v3441_v33 = vsel %vm214_vm0, %v3435_v31, 0.0  ;;  %v8282_v46 = vpack.c.bf16 %v3481_v42, %v3480_v43  ;;  %8319 = vmatprep.subr.bf16.mxu0 %v8318_v60 }
0x11e1   :  { %3442 = vadd.xlane.f32.xlu1 %v3441_v33  ;;  %v3438_v34 = vsel %vm214_vm0, %v3434_v32, 0.0  ;;  %8321 = vmatpush3.bf16.msra.mxu0 %v8318_v60 }
0x11e2   :  { %3439 = vadd.xlane.f32.xlu0 %v3438_v34  ;;  %8283 = vmatprep.subr.bf16.mxu1 %v8282_v46 }
0x11e3   :  { %8285 = vmatpush3.bf16.msra.mxu1 %v8282_v46  ;;  %8022 = vmatprep.subr.mxu0 %v8831_v8 }
0x11e4   :  { %8287 = vmatprep.subr.bf16.mxu1 %v8286_v49 }
0x11e7   :  { %8289 = vmatpush3.bf16.msra.mxu1 %v8286_v49 }
0x126e   :  { %v3443_v35 = vpop.xlane.xlu1 %3442 }
0x126f   :  { %v3445_v36 = vmul.f32 0.03125, %v3443_v35  ;;  %v3440_v37 = vpop.xlane.xlu0 %3439 }
0x1270   :  { %v3444_v48 = vmul.f32 0.03125, %v3440_v37 }
0x1271   :  { %v3447_v38 = vsub.f32 %v3435_v31, %v3445_v36 }
0x1272   :  { %v3446_v39 = vsub.f32 %v3434_v32, %v3444_v48 }
0x1273   :  { %v3449_v41 = vmul.f32 %v3447_v38, %v3447_v38 }
0x1274   :  { %v3448_v29 = vmul.f32 %v3446_v39, %v3446_v39 }
0x1275   :  { %v3453_v45 = vsel %vm214_vm0, %v3449_v41, 0.0 }
0x1276   :  { %v3450_v40 = vsel %vm214_vm0, %v3448_v29, 0.0 }
0x1277   :  { %3451 = vadd.xlane.f32.xlu0 %v3450_v40 }
0x127b   :  { %3454 = vadd.xlane.f32.xlu0 %v3453_v45 }
0x1304   :  { %v3452_v54 = vpop.xlane.xlu0 %3451 }
0x1305   :  { %v3456_v53 = vmul.f32 0.03125, %v3452_v54 }
0x1307   :  { %v3458_v56 = vadd.f32 1e-05, %v3456_v53 }
0x1308   :  { %v3455_v57 = vpop.xlane.xlu0 %3454 }
0x1309   :  { %8492 = vrsqrt.f32 %v3458_v56  ;;  %v3457_v55 = vmul.f32 0.03125, %v3455_v57 }
0x130b   :  { %v3459_v58 = vadd.f32 1e-05, %v3457_v55 }
0x130d   :  { %8494 = vrsqrt.f32 %v3459_v58 }
0x1313   :  { %v8493_v62 = vpop.eup %8492 }
0x1314   :  { %v3462_v1 = vmul.f32 %v8493_v62, %v3446_v39 }
0x1316   :  { %v3470_v3 = vmul.f32 %v7360_v63, %v3462_v1 }
0x1317   :  { %v8495_v4 = vpop.eup %8494 }
0x1318   :  { %v3463_v6 = vmul.f32 %v8495_v4, %v3447_v38  ;;  %v9538_v9 = vadd.f32 %v7361_v2, %v3470_v3 }
0x131a   :  { %v3471_v0 = vmul.f32 %v7360_v63, %v3463_v6  ;;  %7943 = vmatprep.mubr.msk.f32.mxu1 %vm214_vm0, %v9538_v9 }
0x131c   :  { %v9542_v10 = vadd.f32 %v7361_v2, %v3471_v0 }
0x131e   :  { %7944 = vmatmul.mubr.msk.f32.vlgmr.msra.gmra.mrb[42].mxu1 %vm214_vm0, %v9542_v10 }
0x13f1   :  { %v7945_v30 = vpop.f32.mrb[42].mxu1 }
0x13f2   :  { %v3569_v31 = vadd.f32 %v7945_v30, %v7362_v28  ;;  %v3563_v32 = vpop.f32.mrb[43].mxu1 }
0x13f3   :  { %v3564_v33 = vadd.f32 %v7362_v28, %v3563_v32 }
0x13f4   :  { %v3575_v34 = vmul.f32 0.044715, %v3569_v31  ;;  %v3573_v47 = vmul.f32 0.5, %v3569_v31 }
0x13f5   :  { %v3574_v35 = vmul.f32 0.044715, %v3564_v33  ;;  %v3572_v44 = vmul.f32 0.5, %v3564_v33 }
0x13f6   :  { %v3577_v36 = vmul.f32 %v3575_v34, %v3569_v31 }
0x13f7   :  { %v3576_v37 = vmul.f32 %v3574_v35, %v3564_v33 }
0x13f8   :  { %v3579_v48 = vmul.f32 %v3577_v36, %v3569_v31 }
0x13f9   :  { %v3578_v38 = vmul.f32 %v3576_v37, %v3564_v33 }
0x13fa   :  { %v3581_v39 = vadd.f32 %v3579_v48, %v3569_v31  ;;  %v7373_v31 = vld [vmem:[%s10148_s22 + $0x1] ss:$0 sm:$0xff] }
0x13fb   :  { %v3580_v29 = vadd.f32 %v3578_v38, %v3564_v33 }
0x13fc   :  { %v3583_v40 = vmul.f32 0.7978846, %v3581_v39 }
0x13fd   :  { %v3582_v41 = vmul.f32 0.7978846, %v3580_v29 }
0x13fe   :  { %8496 = vtanh.f32 %v3583_v40 }
0x13ff   :  { %8498 = vtanh.f32 %v3582_v41 }
0x1408   :  { %v8497_v45 = vpop.eup %8496 }
0x1409   :  { %v8499_v43 = vpop.eup %8498  ;;  %v3587_v42 = vadd.f32 1.0, %v8497_v45 }
0x140a   :  { %v3586_v46 = vadd.f32 1.0, %v8499_v43 }
0x140b   :  { %v3589_v50 = vmul.f32 %v3587_v42, %v3573_v47 }
0x140c   :  { %v3588_v49 = vmul.f32 %v3586_v46, %v3572_v44 }
0x140e   :  { %7978 = vmatprep.mubr.f32.mxu0 %v3588_v49 }
0x140f   :  { %7979 = vmatmul.mubr.f32.vlgmr.msra.gmra.mrb[32].mxu0 %v3589_v50 }
0x1410   :  { %8024 = vmatprep.mubr.msk.f32.mxu0 %vm8832_vm1, %v8831_v8 }
0x14e2   :  { %v7980_v52 = vpop.f32.mrb[32].mxu0 }
0x14e3   :  { %v3685_v54 = vadd.f32 %v7980_v52, %v7365_v51  ;;  %v3679_v53 = vpop.f32.mrb[33].mxu0 }
0x14e4   :  { %v3680_v56 = vadd.f32 %v7365_v51, %v3679_v53 }
0x14e5   :  { %v3689_v57 = vadd.f32 %v3685_v54, %v9542_v10 }
0x14e6   :  { %v3688_v55 = vadd.f32 %v3680_v56, %v9538_v9  ;;  %v7368_v9 = vld [vmem:[%s10147_s6 + $0x20] sm:$0xff] }
0x14e7   :  { %v3695_v58 = vsel %vm214_vm0, %v3689_v57, 0.0  ;;  %v8322_v15 = vpack.c.bf16 %v7369_v13, %v7368_v9 }
0x14e8   :  { %3696 = vadd.xlane.f32.xlu0 %v3695_v58  ;;  %v3692_v62 = vsel %vm214_vm0, %v3688_v55, 0.0 }
0x14e9   :  { %3693 = vadd.xlane.f32.xlu1 %v3692_v62  ;;  %8323 = vmatprep.subr.bf16.mxu1 %v8322_v15 }
0x14ea   :  { %8325 = vmatpush3.bf16.msra.mxu1 %v8322_v15 }
0x14eb   :  { %8327 = vmatprep.subr.bf16.mxu1 %v8326_v17 }
0x14ee   :  { %8329 = vmatpush3.bf16.msra.mxu1 %v8326_v17 }
0x14ef   :  { %7992 = vmatprep.subr.mxu1 %v8831_v8 }
0x1575   :  { %v3697_v63 = vpop.xlane.xlu0 %3696 }
0x1576   :  { %v3699_v1 = vmul.f32 0.03125, %v3697_v63  ;;  %v3694_v2 = vpop.xlane.xlu1 %3693 }
0x1577   :  { %v3698_v3 = vmul.f32 0.03125, %v3694_v2 }
0x1578   :  { %v3701_v4 = vsub.f32 %v3689_v57, %v3699_v1 }
0x1579   :  { %v3700_v6 = vsub.f32 %v3688_v55, %v3698_v3 }
0x157a   :  { %v3703_v0 = vmul.f32 %v3701_v4, %v3701_v4 }
0x157b   :  { %v3702_v12 = vmul.f32 %v3700_v6, %v3700_v6 }
0x157c   :  { %v3707_v11 = vsel %vm214_vm0, %v3703_v0, 0.0 }
0x157d   :  { %3708 = vadd.xlane.f32.xlu0 %v3707_v11  ;;  %v3704_v10 = vsel %vm214_vm0, %v3702_v12, 0.0 }
0x157e   :  { %3705 = vadd.xlane.f32.xlu1 %v3704_v10 }
0x160a   :  { %v3709_v18 = vpop.xlane.xlu0 %3708 }
0x160b   :  { %v3711_v7 = vmul.f32 0.03125, %v3709_v18  ;;  %v3706_v5 = vpop.xlane.xlu1 %3705 }
0x160c   :  { %v3710_v19 = vmul.f32 0.03125, %v3706_v5 }
0x160d   :  { %v3713_v20 = vadd.f32 1e-05, %v3711_v7 }
0x160e   :  { %v3712_v21 = vadd.f32 1e-05, %v3710_v19 }
0x160f   :  { %8500 = vrsqrt.f32 %v3713_v20 }
0x1610   :  { %8502 = vrsqrt.f32 %v3712_v21 }
0x1619   :  { %v8501_v22 = vpop.eup %8500 }
0x161a   :  { %v8503_v23 = vpop.eup %8502  ;;  %v3717_v61 = vmul.f32 %v8501_v22, %v3701_v4 }
0x161b   :  { %v3716_v24 = vmul.f32 %v8503_v23, %v3700_v6 }
0x161c   :  { %v3725_v27 = vmul.f32 %v7366_v59, %v3717_v61 }
0x161d   :  { %v3724_v60 = vmul.f32 %v7366_v59, %v3716_v24 }
0x161e   :  { %v9612_v30 = vadd.f32 %v7367_v26, %v3725_v27 }
0x161f   :  { %v9610_v28 = vadd.f32 %v7367_v26, %v3724_v60 }
0x1621   :  { %7989 = vmatprep.mubr.msk.f32.mxu1 %vm214_vm0, %v9610_v28 }
0x1622   :  { %7990 = vmatmul.mubr.msk.f32.vlgmr.msra.gmra.mrb[44].mxu1 %vm214_vm0, %v9612_v30 }
0x1623   :  { %7994 = vmatprep.mubr.msk.f32.mxu1 %vm8832_vm1, %v8831_v8 }
0x16f5   :  { %v7991_v32 = vpop.f32.mrb[44].mxu1 }
0x16f6   :  { %v9623_v33 = vadd.f32 %v7991_v32, %v7373_v31  ;;  %v3819_v34 = vpop.f32.mrb[45].mxu1 }
0x16f7   :  { %v3820_v35 = vadd.f32 %v7373_v31, %v3819_v34 }
0x16f9   :  { %3831 = vrot.lane.b32.xlu0 %v3820_v35, %s8836_s23  ;;  %3829 = vrot.lane.b32.xlu1 %v3820_v35, %s8834_s14 }
0x16fd   :  { %3833 = vrot.lane.b32.xlu1 %v3820_v35, %s8833_s30 }
0x1701   :  { %3835 = vrot.lane.b32.xlu1 %v3820_v35, %s8835_s17 }
0x176b   :  { %v3832_v36 = vpop.permute.xlu0 %3831  ;;  %v3830_v37 = vpop.permute.xlu1 %3829 }
0x176c   :  { %3987 = vrot.lane.b32.xlu1 %v3832_v36, %s8835_s17  ;;  %3911 = vrot.lane.b32.xlu0 %v3830_v37, %s8835_s17 }
0x176f   :  { %v3834_v48 = vpop.permute.xlu1 %3833 }
0x1770   :  { %4063 = vrot.lane.b32.xlu0 %v3834_v48, %s8835_s17 }
0x1773   :  { %v3836_v38 = vpop.permute.xlu1 %3835 }
0x1774   :  { %7993 = vmatpush3.xpose.msk.msra.mxu1 %vm305_vm2, %v3836_v38 }
0x1775   :  { %7997 = vmatprep.subr.mxu1 %v8831_v8 }
0x1777   :  { %7995 = vmatmul.mubr.msk.f32.vlgmr.msra.gmra.mrb[46].mxu1 %vm305_vm2, %v3820_v35 }
0x1778   :  { %7999 = vmatprep.mubr.msk.f32.mxu1 %vm8832_vm1, %v8831_v8 }
0x17de   :  { %v3912_v39 = vpop.permute.xlu0 %3911  ;;  %v3988_v29 = vpop.permute.xlu1 %3987 }
0x17df   :  { %7998 = vmatpush3.xpose.msk.msra.mxu1 %vm305_vm2, %v3912_v39 }
0x17e0   :  { %8002 = vmatprep.subr.mxu1 %v8831_v8 }
0x17e2   :  { %8000 = vmatmul.mubr.msk.f32.vlgmr.msra.gmra.mrb[48].mxu1 %vm305_vm2, %v3830_v37  ;;  %v4064_v40 = vpop.permute.xlu0 %4063 }
0x17e3   :  { %8003 = vmatpush3.xpose.msk.msra.mxu1 %vm305_vm2, %v3988_v29  ;;  %8004 = vmatprep.mubr.msk.f32.mxu1 %vm8832_vm1, %v8831_v8 }
0x17e4   :  { %8007 = vmatprep.subr.mxu1 %v8831_v8 }
0x17e6   :  { %8005 = vmatmul.mubr.msk.f32.vlgmr.msra.gmra.mrb[50].mxu1 %vm305_vm2, %v3832_v36 }
0x17e7   :  { %8008 = vmatpush3.xpose.msk.msra.mxu1 %vm305_vm2, %v4064_v40  ;;  %8009 = vmatprep.mubr.msk.f32.mxu1 %vm8832_vm1, %v8831_v8 }
0x17e8   :  { %8012 = vmatprep.subr.mxu1 %v8831_v8 }
0x17ea   :  { %8010 = vmatmul.mubr.msk.f32.vlgmr.msra.gmra.mrb[52].mxu1 %vm305_vm2, %v3834_v48 }
0x17eb   :  { %8014 = vmatprep.mubr.msk.f32.mxu1 %vm8832_vm1, %v8831_v8 }
0x184a   :  { %v3907_v41 = vpop.f32.mrb[46].mxu1 }
0x184b   :  { %v4139_v45 = vmul.f32 0.35355338, %v3907_v41  ;;  %v7996_v43 = vpop.f32.mrb[47].mxu1 }
0x184d   :  { %v4143_v42 = vsel %vm9155_vm3, %v4139_v45, -1e+30 }
0x184e   :  { %v4147_v44 = vsel %vm305_vm2, %v4143_v42, -inf }
0x184f   :  { %4148 = vmax.xlane.f32.xlu1 %v4147_v44 }
0x18b5   :  { %v3983_v46 = vpop.f32.mrb[48].mxu1 }
0x18b6   :  { %v4140_v47 = vmul.f32 0.35355338, %v3983_v46  ;;  %v8001_v49 = vpop.f32.mrb[49].mxu1 }
0x18b8   :  { %v4144_v50 = vsel %vm9155_vm3, %v4140_v47, -1e+30 }
0x18b9   :  { %v4059_v51 = vpop.f32.mrb[50].mxu1  ;;  %v4150_v52 = vsel %vm305_vm2, %v4144_v50, -inf }
0x18ba   :  { %v4141_v54 = vmul.f32 0.35355338, %v4059_v51  ;;  %4151 = vmax.xlane.f32.xlu0 %v4150_v52  ;;  %v8006_v53 = vpop.f32.mrb[51].mxu1 }
0x18bc   :  { %v4145_v56 = vsel %vm9155_vm3, %v4141_v54, -1e+30 }
0x18bd   :  { %v4135_v57 = vpop.f32.mrb[52].mxu1  ;;  %v4153_v55 = vsel %vm305_vm2, %v4145_v56, -inf }
0x18be   :  { %v4142_v58 = vmul.f32 0.35355338, %v4135_v57  ;;  %4154 = vmax.xlane.f32.xlu0 %v4153_v55  ;;  %v8011_v62 = vpop.f32.mrb[53].mxu1 }
0x18c0   :  { %v4146_v63 = vsel %vm9155_vm3, %v4142_v58, -1e+30 }
0x18c1   :  { %v4156_v1 = vsel %vm305_vm2, %v4146_v63, -inf }
0x18c2   :  { %4157 = vmax.xlane.f32.xlu1 %v4156_v1 }
0x18d3   :  { %4513 = vrot.lane.b32.xlu1 %v9623_v33, %s8836_s23 }
0x18d4   :  { %4511 = vrot.lane.b32.xlu0 %v9623_v33, %s8834_s14 }
0x18d7   :  { %4515 = vrot.lane.b32.xlu1 %v9623_v33, %s8833_s30 }
0x18d8   :  { %4267 = vrot.lane.b32.xlu0 %v3830_v37, %s8837_s5 }
0x18db   :  { %4191 = vrot.lane.b32.xlu1 %v3820_v35, %s8837_s5 }
0x18dc   :  { %v4149_v2 = vpop.xlane.xlu1 %4148 }
0x18dd   :  { %v4159_v3 = vsub.f32 %v4143_v42, %v4149_v2 }
0x18df   :  { %4343 = vrot.lane.b32.xlu1 %v3832_v36, %s8837_s5  ;;  %v4163_v4 = vmul.f32 1.442695, %v4159_v3 }
0x18e1   :  { %8504 = vpow2.f32 %v4163_v4 }
0x18e3   :  { %4419 = vrot.lane.b32.xlu1 %v3834_v48, %s8837_s5 }
0x18eb   :  { %v8505_v6 = vpop.eup %8504 }
0x18ec   :  { %v4171_v0 = vsel %vm305_vm2, %v8505_v6, 0.0 }
0x18f7   :  { %4172 = vadd.xlane.f32.xlu0 %v4171_v0 }
0x190d   :  { %4517 = vrot.lane.b32.xlu0 %v9623_v33, %s8835_s17 }
0x1947   :  { %v4152_v12 = vpop.xlane.xlu0 %4151 }
0x1948   :  { %v4160_v11 = vsub.f32 %v4144_v50, %v4152_v12 }
0x194a   :  { %v4165_v10 = vmul.f32 1.442695, %v4160_v11 }
0x194b   :  { %v4155_v9 = vpop.xlane.xlu0 %4154 }
0x194c   :  { %8506 = vpow2.f32 %v4165_v10  ;;  %v4161_v13 = vsub.f32 %v4145_v56, %v4155_v9 }
0x194e   :  { %v4167_v14 = vmul.f32 1.442695, %v4161_v13 }
0x194f   :  { %v4158_v15 = vpop.xlane.xlu1 %4157  ;;  %v9686_v24 = vpop.permute.xlu0 %4511 }
0x1950   :  { %8508 = vpow2.f32 %v4167_v14  ;;  %v4162_v16 = vsub.f32 %v4146_v63, %v4158_v15 }
0x1952   :  { %v4169_v17 = vmul.f32 1.442695, %v4162_v16 }
0x1953   :  { %v9677_v18 = vpop.permute.xlu1 %4513  ;;  %v4268_v26 = vpop.permute.xlu0 %4267 }
0x1954   :  { %8510 = vpow2.f32 %v4169_v17 }
0x1956   :  { %v8507_v7 = vpop.eup %8506 }
0x1957   :  { %v9679_v5 = vpop.permute.xlu1 %4515  ;;  %v4174_v19 = vsel %vm305_vm2, %v8507_v7, 0.0 }
0x1958   :  { %4175 = vadd.xlane.f32.xlu1 %v4174_v19 }
0x195a   :  { %v8509_v20 = vpop.eup %8508 }
0x195b   :  { %v4192_v21 = vpop.permute.xlu1 %4191  ;;  %v4177_v22 = vsel %vm305_vm2, %v8509_v20, 0.0 }
0x195c   :  { %4178 = vadd.xlane.f32.xlu0 %v4177_v22  ;;  %8013 = vmatpush3.msra.mxu1 %v4192_v21 }
0x195d   :  { %8017 = vmatprep.subr.mxu1 %v8831_v8 }
0x195e   :  { %v8511_v59 = vpop.eup %8510 }
0x195f   :  { %v4344_v23 = vpop.permute.xlu1 %4343  ;;  %v4180_v61 = vsel %vm305_vm2, %v8511_v59, 0.0 }
0x1960   :  { %4181 = vadd.xlane.f32.xlu0 %v4180_v61  ;;  %8023 = vmatpush3.msra.mxu0 %v4344_v23 }
0x1961   :  { %8032 = vmatprep.subr.mxu0 %v8831_v8 }
0x1963   :  { %v4420_v32 = vpop.permute.xlu1 %4419 }
0x1969   :  { %4593 = vrot.lane.b32.xlu1 %v9686_v24, %s8835_s17 }
0x196d   :  { %4745 = vrot.lane.b32.xlu1 %v9679_v5, %s8835_s17 }
0x1976   :  { %4669 = vrot.lane.b32.xlu0 %v9677_v18, %s8835_s17 }
0x1984   :  { %v4173_v27 = vpop.xlane.xlu0 %4172 }
0x1985   :  { %8512 = vrcp.f32 %v4173_v27 }
0x1988   :  { %v4518_v34 = vpop.permute.xlu0 %4517 }
0x198f   :  { %v8513_v60 = vpop.eup %8512 }
0x1990   :  { %v4184_v31 = vmul.f32 %v8513_v60, %v8505_v6 }
0x1992   :  { %8015 = vmatmul.mubr.msk.f32.vlgmr.msra.gmra.mrb[54].mxu1 %vm305_vm2, %v4184_v31 }
0x1993   :  { %8018 = vmatpush3.msra.mxu1 %v4268_v26  ;;  %8019 = vmatprep.mubr.msk.f32.mxu1 %vm8832_vm1, %v8831_v8 }
0x1994   :  { %8027 = vmatprep.subr.mxu1 %v8831_v8 }
0x19e5   :  { %v4176_v35 = vpop.xlane.xlu1 %4175 }
0x19e6   :  { %8514 = vrcp.f32 %v4176_v35 }
0x19e9   :  { %v4179_v36 = vpop.xlane.xlu0 %4178  ;;  %v4594_v41 = vpop.permute.xlu1 %4593 }
0x19ea   :  { %8516 = vrcp.f32 %v4179_v36 }
0x19ed   :  { %v4182_v37 = vpop.xlane.xlu0 %4181  ;;  %v4746_v42 = vpop.permute.xlu1 %4745 }
0x19ee   :  { %8518 = vrcp.f32 %v4182_v37 }
0x19f0   :  { %v8515_v48 = vpop.eup %8514 }
0x19f1   :  { %v4186_v38 = vmul.f32 %v8515_v48, %v8507_v7  ;;  %v4670_v43 = vpop.permute.xlu0 %4669 }
0x19f3   :  { %8020 = vmatmul.mubr.msk.f32.vlgmr.msra.gmra.mrb[56].mxu1 %vm305_vm2, %v4186_v38 }
0x19f4   :  { %v8517_v39 = vpop.eup %8516  ;;  %8028 = vmatpush3.msra.mxu1 %v4420_v32  ;;  %8029 = vmatprep.mubr.msk.f32.mxu1 %vm8832_vm1, %v8831_v8 }
0x19f5   :  { %v4188_v29 = vmul.f32 %v8517_v39, %v8509_v20  ;;  %8037 = vmatprep.subr.mxu1 %v8831_v8 }
0x19f7   :  { %8025 = vmatmul.mubr.msk.f32.vlgmr.msra.gmra.mrb[34].mxu0 %vm305_vm2, %v4188_v29 }
0x19f8   :  { %v8519_v40 = vpop.eup %8518  ;;  %8033 = vmatpush3.xpose.msk.msra.mxu0 %vm305_vm2, %v4518_v34  ;;  %8034 = vmatprep.mubr.msk.f32.mxu0 %vm8832_vm1, %v8831_v8 }
0x19f9   :  { %v4190_v45 = vmul.f32 %v8519_v40, %v8511_v59  ;;  %8042 = vmatprep.subr.mxu0 %v8831_v8 }
0x19fb   :  { %8030 = vmatmul.mubr.msk.f32.vlgmr.msra.gmra.mrb[58].mxu1 %vm305_vm2, %v4190_v45  ;;  %8035 = vmatmul.mubr.msk.f32.vlgmr.msra.gmra.mrb[36].mxu0 %vm305_vm2, %v9623_v33 }
0x19fc   :  { %8038 = vmatpush3.xpose.msk.msra.mxu1 %vm305_vm2, %v4594_v41  ;;  %8043 = vmatpush3.xpose.msk.msra.mxu0 %vm305_vm2, %v4670_v43 }
0x19fd   :  { %8039 = vmatprep.mubr.msk.f32.mxu1 %vm8832_vm1, %v8831_v8  ;;  %8044 = vmatprep.mubr.msk.f32.mxu0 %vm8832_vm1, %v8831_v8 }
0x19fe   :  { %8047 = vmatprep.subr.mxu1 %v8831_v8  ;;  %8052 = vmatprep.subr.mxu0 %v8831_v8 }
0x19ff   :  { %8040 = vmatmul.mubr.msk.f32.vlgmr.msra.gmra.mrb[60].mxu1 %vm305_vm2, %v9686_v24  ;;  %8045 = vmatmul.mubr.msk.f32.vlgmr.msra.gmra.mrb[38].mxu0 %vm305_vm2, %v9677_v18 }
0x1a00   :  { %8048 = vmatpush3.xpose.msk.msra.mxu1 %vm305_vm2, %v4746_v42  ;;  %8049 = vmatprep.mubr.msk.f32.mxu1 %vm8832_vm1, %v8831_v8 }
0x1a01   :  { %8057 = vmatprep.subr.mxu1 %v8831_v8  ;;  %8054 = vmatprep.mubr.msk.f32.mxu0 %vm8832_vm1, %v8831_v8 }
0x1a03   :  { %8050 = vmatmul.mubr.msk.f32.vlgmr.msra.gmra.mrb[62].mxu1 %vm305_vm2, %v9679_v5 }
0x1a04   :  { %8059 = vmatprep.mubr.msk.f32.mxu1 %vm8832_vm1, %v8831_v8 }
0x1a65   :  { %v9732_v44 = vpop.f32.mrb[54].mxu1 }
0x1a66   :  { %v8016_v46 = vpop.f32.mrb[55].mxu1 }
0x1ac6   :  { %v9734_v47 = vpop.f32.mrb[56].mxu1 }
0x1ac7   :  { %v8021_v49 = vpop.f32.mrb[57].mxu1 }
0x1aca   :  { %v4415_v50 = vpop.f32.mrb[34].mxu0 }
0x1acb   :  { %v8026_v51 = vpop.f32.mrb[35].mxu0 }
0x1ace   :  { %v4491_v52 = vpop.f32.mrb[58].mxu1  ;;  %v4589_v54 = vpop.f32.mrb[36].mxu0 }
0x1acf   :  { %v4821_v53 = vmul.f32 0.35355338, %v4589_v54  ;;  %v8031_v56 = vpop.f32.mrb[59].mxu1  ;;  %v8036_v57 = vpop.f32.mrb[37].mxu0 }
0x1ad0   :  { %v7401_v57 = vld [vmem:[%s10151_s1 + $0x28] sm:$0xff] }
0x1ad1   :  { %v4825_v55 = vsel %vm9155_vm3, %v4821_v53, -1e+30 }
0x1ad2   :  { %v4665_v58 = vpop.f32.mrb[60].mxu1  ;;  %v4741_v62 = vpop.f32.mrb[38].mxu0  ;;  %v4829_v63 = vsel %vm305_vm2, %v4825_v55, -inf }
0x1ad3   :  { %v4822_v1 = vmul.f32 0.35355338, %v4665_v58  ;;  %v4823_v2 = vmul.f32 0.35355338, %v4741_v62  ;;  %4830 = vmax.xlane.f32.xlu0 %v4829_v63  ;;  %v8041_v3 = vpop.f32.mrb[61].mxu1  ;;  %v8046_v4 = vpop.f32.mrb[39].mxu0 }
0x1ad4   :  { %v7402_v58 = vld [vmem:[%s10151_s1 + $0x30] sm:$0xff]  ;;  %v7403_v62 = vld [vmem:[%s10151_s1 + $0x38] sm:$0xff] }
0x1ad5   :  { %v4826_v6 = vsel %vm9155_vm3, %v4822_v1, -1e+30  ;;  %v4827_v0 = vsel %vm9155_vm3, %v4823_v2, -1e+30  ;;  %v8334_v63 = vpack.c.bf16 %v7403_v62, %v7402_v58 }
0x1ad6   :  { %v4817_v12 = vpop.f32.mrb[62].mxu1  ;;  %v4835_v11 = vsel %vm305_vm2, %v4827_v0, -inf  ;;  %v4832_v10 = vsel %vm305_vm2, %v4826_v6, -inf }
0x1ad7   :  { %v4824_v9 = vmul.f32 0.35355338, %v4817_v12  ;;  %4836 = vmax.xlane.f32.xlu0 %v4835_v11  ;;  %4833 = vmax.xlane.f32.xlu1 %v4832_v10  ;;  %v8051_v13 = vpop.f32.mrb[63].mxu1 }
0x1ad9   :  { %v4828_v14 = vsel %vm9155_vm3, %v4824_v9, -1e+30 }
0x1ada   :  { %v4838_v15 = vsel %vm305_vm2, %v4828_v14, -inf }
0x1adb   :  { %4839 = vmax.xlane.f32.xlu0 %v4838_v15 }
0x1ae8   :  { %4873 = vrot.lane.b32.xlu1 %v9623_v33, %s8837_s5 }
0x1b60   :  { %v4831_v16 = vpop.xlane.xlu0 %4830 }
0x1b61   :  { %v4841_v17 = vsub.f32 %v4825_v55, %v4831_v16 }
0x1b63   :  { %v4845_v7 = vmul.f32 1.442695, %v4841_v17  ;;  %v8584_v17 = vld [vmem:[#allocation5] sm:$0xff] }
0x1b64   :  { %v4837_v19 = vpop.xlane.xlu0 %4836  ;;  %v4834_v20 = vpop.xlane.xlu1 %4833 }
0x1b65   :  { %8520 = vpow2.f32 %v4845_v7  ;;  %v4843_v21 = vsub.f32 %v4827_v0, %v4837_v19  ;;  %v4842_v22 = vsub.f32 %v4826_v6, %v4834_v20  ;;  %v7405_v7 = vld [vmem:[%s10152_s15 + $0x1] ss:$0 sm:$0xff] }
0x1b67   :  { %v4849_v59 = vmul.f32 1.442695, %v4843_v21  ;;  %v4847_v23 = vmul.f32 1.442695, %v4842_v22 }
0x1b68   :  { %v4840_v61 = vpop.xlane.xlu0 %4839  ;;  %v4874_v26 = vpop.permute.xlu1 %4873 }
0x1b69   :  { %8522 = vpow2.f32 %v4849_v59  ;;  %v4844_v25 = vsub.f32 %v4828_v14, %v4840_v61  ;;  %8053 = vmatpush3.msra.mxu0 %v4874_v26 }
0x1b6a   :  { %8524 = vpow2.f32 %v4847_v23  ;;  %8062 = vmatprep.subr.mxu0 %v8831_v8 }
0x1b6b   :  { %v4851_v27 = vmul.f32 1.442695, %v4844_v25 }
0x1b6d   :  { %8526 = vpow2.f32 %v4851_v27 }
0x1b6f   :  { %v8521_v33 = vpop.eup %8520 }
0x1b70   :  { %v4853_v60 = vsel %vm305_vm2, %v8521_v33, 0.0 }
0x1b71   :  { %4854 = vadd.xlane.f32.xlu1 %v4853_v60 }
0x1b73   :  { %v8523_v31 = vpop.eup %8522 }
0x1b74   :  { %v8525_v32 = vpop.eup %8524  ;;  %v4859_v34 = vsel %vm305_vm2, %v8523_v31, 0.0 }
0x1b75   :  { %4860 = vadd.xlane.f32.xlu1 %v4859_v34  ;;  %v4856_v35 = vsel %vm305_vm2, %v8525_v32, 0.0 }
0x1b76   :  { %4857 = vadd.xlane.f32.xlu0 %v4856_v35 }
0x1b77   :  { %v8527_v36 = vpop.eup %8526 }
0x1b78   :  { %v4862_v37 = vsel %vm305_vm2, %v8527_v36, 0.0 }
0x1b7a   :  { %4863 = vadd.xlane.f32.xlu0 %v4862_v37  ;;  %v7421_v37 = vld [vmem:[%s10113_s10 + $0x28] sm:$0xff] }
0x1b86   :  { %5025 = vrot.lane.b32.xlu1 %v9677_v18, %s8837_s5 }
0x1b8a   :  { %5101 = vrot.lane.b32.xlu1 %v9679_v5, %s8837_s5 }
0x1b8e   :  { %4500 = vrot.lane.b32.xlu1 %v4415_v50, %s8823_s4 }
0x1b90   :  { %4949 = vrot.lane.b32.xlu0 %v9686_v24, %s8837_s5 }
0x1b92   :  { %4504 = vrot.lane.b32.xlu1 %v4491_v52, %s8838_s3 }
0x1b94   :  { %4496 = vrot.lane.b32.xlu0 %v9734_v47, %s8820_s26 }
0x1bfe   :  { %v4855_v48 = vpop.xlane.xlu1 %4854 }
0x1bff   :  { %8528 = vrcp.f32 %v4855_v48 }
0x1c02   :  { %v4861_v38 = vpop.xlane.xlu1 %4860 }
0x1c03   :  { %v4858_v39 = vpop.xlane.xlu0 %4857  ;;  %8530 = vrcp.f32 %v4861_v38  ;;  %v7422_v38 = vld [vmem:[%s10113_s10 + $0x30] sm:$0xff] }
0x1c04   :  { %8532 = vrcp.f32 %v4858_v39  ;;  %v7423_v39 = vld [vmem:[%s10113_s10 + $0x38] sm:$0xff] }
0x1c06   :  { %v5026_v18 = vpop.permute.xlu1 %5025 }
0x1c07   :  { %v4864_v29 = vpop.xlane.xlu0 %4863 }
0x1c08   :  { %8534 = vrcp.f32 %v4864_v29  ;;  %v8585_v29 = vld [vmem:[#allocation5 + $0x8] sm:$0xff] }
0x1c09   :  { %v8529_v5 = vpop.eup %8528 }
0x1c0a   :  { %v4866_v40 = vmul.f32 %v8529_v5, %v8521_v33  ;;  %v5102_v41 = vpop.permute.xlu1 %5101  ;;  %v7412_v5 = vld [vmem:[%s10111_s8 + $0x20] sm:$0xff] }
0x1c0b   :  { %v4950_v45 = vpop.permute.xlu0 %4949 }
0x1c0c   :  { %8058 = vmatpush3.msra.mxu1 %v4950_v45  ;;  %8055 = vmatmul.mubr.msk.f32.vlgmr.msra.gmra.mrb[40].mxu0 %vm305_vm2, %v4866_v40  ;;  %v7413_v40 = vld [vmem:[%s10111_s8 + $0x28] sm:$0xff]  ;;  %v7414_v45 = vld [vmem:[%s10111_s8 + $0x30] sm:$0xff] }
0x1c0d   :  { %v8531_v24 = vpop.eup %8530  ;;  %8063 = vmatpush3.msra.mxu0 %v5026_v18  ;;  %8064 = vmatprep.mubr.msk.f32.mxu0 %vm8832_vm1, %v8831_v8  ;;  %v8350_v18 = vpack.c.bf16 %v7423_v39, %v7422_v38 }
0x1c0e   :  { %v8533_v43 = vpop.eup %8532  ;;  %v4870_v42 = vmul.f32 %v8531_v24, %v8523_v31  ;;  %v4501_v46 = vpop.permute.xlu1 %4500  ;;  %8067 = vmatprep.subr.mxu1 %v8831_v8  ;;  %v7415_v24 = vld [vmem:[%s10111_s8 + $0x38] sm:$0xff] }
0x1c0f   :  { %v4868_v47 = vmul.f32 %v8533_v43, %v8525_v32  ;;  %v4497_v49 = vpop.permute.xlu0 %4496  ;;  %v8342_v43 = vpack.c.bf16 %v7415_v24, %v7414_v45 }
0x1c10   :  { %v4507_v50 = vsel %vm305_vm2, %v9732_v44, %v4497_v49  ;;  %8065 = vmatmul.mubr.msk.f32.vlgmr.msra.gmra.mrb[42].mxu0 %vm305_vm2, %v4870_v42  ;;  %v7400_v44 = vld [vmem:[%s10151_s1 + $0x20] sm:$0xff] }
0x1c11   :  { %8060 = vmatmul.mubr.msk.f32.vlgmr.msra.gmra.mrb[64].mxu1 %vm305_vm2, %v4868_v47  ;;  %v4508_v52 = vsel %vm979_vm4, %v4507_v50, %v4501_v46  ;;  %v8330_v55 = vpack.c.bf16 %v7401_v57, %v7400_v44 }
0x1c12   :  { %v8535_v51 = vpop.eup %8534  ;;  %8068 = vmatpush3.msra.mxu1 %v5102_v41  ;;  %v4505_v54 = vpop.permute.xlu1 %4504  ;;  %8069 = vmatprep.mubr.msk.f32.mxu1 %vm8832_vm1, %v8831_v8  ;;  %v8338_v41 = vpack.c.bf16 %v7413_v40, %v7412_v5 }
0x1c13   :  { %v4872_v53 = vmul.f32 %v8535_v51, %v8527_v36  ;;  %v4509_v56 = vsel %vm981_vm5, %v4508_v52, %v4505_v54  ;;  %8331 = vmatprep.subr.bf16.mxu0 %v8330_v55  ;;  %v7410_v54 = vld [vmem:[%s10153_s21 + $0x1] ss:$0 sm:$0xff] }
0x1c14   :  { %8080 = vmatprep.mubr.msk.f32.mxu0 %vm214_vm0, %v4509_v56  ;;  %8333 = vmatpush3.bf16.msra.mxu0 %v8330_v55  ;;  %v7411_v56 = vld [vmem:[%s10110_s7 + $0x1] ss:$0 sm:$0xff] }
0x1c15   :  { %8070 = vmatmul.mubr.msk.f32.vlgmr.msra.gmra.mrb[66].mxu1 %vm305_vm2, %v4872_v53  ;;  %8335 = vmatprep.subr.bf16.mxu0 %v8334_v63 }
0x1c16   :  { %8339 = vmatprep.subr.bf16.mxu1 %v8338_v41 }
0x1c17   :  { %8341 = vmatpush3.bf16.msra.mxu1 %v8338_v41 }
0x1c18   :  { %8337 = vmatpush3.bf16.msra.mxu0 %v8334_v63  ;;  %8343 = vmatprep.subr.bf16.mxu1 %v8342_v43 }
0x1c1b   :  { %8345 = vmatpush3.bf16.msra.mxu1 %v8342_v43 }
0x1c1c   :  { %8105 = vmatprep.subr.mxu1 %v8831_v8 }
0x1cdf   :  { %v4945_v1 = vpop.f32.mrb[40].mxu0 }
0x1ce0   :  { %v8056_v2 = vpop.f32.mrb[41].mxu0 }
0x1ce3   :  { %v5097_v3 = vpop.f32.mrb[42].mxu0 }
0x1ce4   :  { %v5021_v4 = vpop.f32.mrb[64].mxu1  ;;  %v8066_v6 = vpop.f32.mrb[43].mxu0 }
0x1ce5   :  { %5178 = vrot.lane.b32.xlu0 %v5021_v4, %s8820_s26  ;;  %v8061_v0 = vpop.f32.mrb[65].mxu1 }
0x1ce8   :  { %v5173_v12 = vpop.f32.mrb[66].mxu1 }
0x1ce9   :  { %5182 = vrot.lane.b32.xlu0 %v5097_v3, %s8823_s4  ;;  %5186 = vrot.lane.b32.xlu1 %v5173_v12, %s8838_s3  ;;  %v8071_v11 = vpop.f32.mrb[67].mxu1 }
0x1cea   :  { %v7417_v11 = vld [vmem:[%s10112_s9 + $0x1] ss:$0 sm:$0xff] }
0x1d57   :  { %v5179_v10 = vpop.permute.xlu0 %5178 }
0x1d58   :  { %v5189_v9 = vsel %vm305_vm2, %v4945_v1, %v5179_v10  ;;  %v7425_v1 = vld [vmem:[%s10114_s11 + $0x1] ss:$0 sm:$0xff] }
0x1d5b   :  { %v5183_v13 = vpop.permute.xlu0 %5182  ;;  %v5187_v14 = vpop.permute.xlu1 %5186 }
0x1d5c   :  { %v5190_v15 = vsel %vm979_vm4, %v5189_v9, %v5183_v13 }
0x1d5d   :  { %v5191_v16 = vsel %vm981_vm5, %v5190_v15, %v5187_v14 }
0x1d5e   :  { %8081 = vmatmul.mubr.msk.f32.vlgmr.msra.gmra.mrb[44].mxu0 %vm214_vm0, %v5191_v16 }
0x1d5f   :  { %8102 = vmatprep.mubr.msk.f32.mxu0 %vm214_vm0, %v8584_v17 }
0x1e31   :  { %v8082_v19 = vpop.f32.mrb[44].mxu0 }
0x1e32   :  { %v5283_v20 = vadd.f32 %v8082_v19, %v7405_v7  ;;  %v5277_v21 = vpop.f32.mrb[45].mxu0 }
0x1e33   :  { %v5278_v22 = vadd.f32 %v7405_v7, %v5277_v21 }
0x1e34   :  { %v5287_v59 = vadd.f32 %v5283_v20, %v9612_v30 }
0x1e35   :  { %v5286_v23 = vadd.f32 %v5278_v22, %v9610_v28  ;;  %v7420_v28 = vld [vmem:[%s10113_s10 + $0x20] sm:$0xff] }
0x1e36   :  { %v5295_v61 = vsel %vm214_vm0, %v5287_v59, 0.0  ;;  %v8346_v48 = vpack.c.bf16 %v7421_v37, %v7420_v28 }
0x1e37   :  { %5296 = vadd.xlane.f32.xlu1 %v5295_v61  ;;  %v5292_v26 = vsel %vm214_vm0, %v5286_v23, 0.0 }
0x1e38   :  { %5293 = vadd.xlane.f32.xlu0 %v5292_v26  ;;  %8347 = vmatprep.subr.bf16.mxu0 %v8346_v48 }
0x1e39   :  { %8349 = vmatpush3.bf16.msra.mxu0 %v8346_v48 }
0x1e3a   :  { %8351 = vmatprep.subr.bf16.mxu0 %v8350_v18 }
0x1e3d   :  { %8353 = vmatpush3.bf16.msra.mxu0 %v8350_v18 }
0x1e3e   :  { %8115 = vmatprep.subr.mxu0 %v8831_v8 }
0x1e40   :  { %8103 = vmatmul.mubr.msk.f32.vlgmr.msra.gmra.mrb[46].mxu0 %vm214_vm0, %v8585_v29 }
0x1e41   :  { %8117 = vmatprep.mubr.msk.f32.mxu0 %vm8832_vm1, %v8831_v8 }
0x1ec4   :  { %v5297_v25 = vpop.xlane.xlu1 %5296 }
0x1ec5   :  { %v5299_v27 = vmul.f32 0.03125, %v5297_v25  ;;  %v5294_v33 = vpop.xlane.xlu0 %5293 }
0x1ec6   :  { %v5298_v60 = vmul.f32 0.03125, %v5294_v33 }
0x1ec7   :  { %v5301_v31 = vsub.f32 %v5287_v59, %v5299_v27 }
0x1ec8   :  { %v5300_v32 = vsub.f32 %v5286_v23, %v5298_v60 }
0x1ec9   :  { %v5303_v36 = vmul.f32 %v5301_v31, %v5301_v31 }
0x1eca   :  { %v5302_v34 = vmul.f32 %v5300_v32, %v5300_v32 }
0x1ecb   :  { %v5307_v30 = vsel %vm214_vm0, %v5303_v36, 0.0 }
0x1ecc   :  { %v5304_v35 = vsel %vm214_vm0, %v5302_v34, 0.0 }
0x1ecd   :  { %5305 = vadd.xlane.f32.xlu0 %v5304_v35 }
0x1ed1   :  { %5308 = vadd.xlane.f32.xlu0 %v5307_v30 }
0x1f13   :  { %v8104_v2 = vpop.f32.mrb[46].mxu0 }
0x1f14   :  { %v9856_v3 = vadd.f32 %v8104_v2, %v7425_v1  ;;  %v5507_v4 = vpop.f32.mrb[47].mxu0 }
0x1f15   :  { %v5508_v6 = vadd.f32 %v7425_v1, %v5507_v4 }
0x1f17   :  { %5524 = vrot.lane.b32.xlu1 %v5508_v6, %s8834_s14 }
0x1f1b   :  { %5526 = vrot.lane.b32.xlu1 %v5508_v6, %s8836_s23 }
0x1f1f   :  { %5528 = vrot.lane.b32.xlu1 %v5508_v6, %s8833_s30 }
0x1f5a   :  { %v5306_v42 = vpop.xlane.xlu0 %5305 }
0x1f5b   :  { %v5310_v46 = vmul.f32 0.03125, %v5306_v42 }
0x1f5d   :  { %v5312_v47 = vadd.f32 1e-05, %v5310_v46 }
0x1f5e   :  { %v5309_v49 = vpop.xlane.xlu0 %5308 }
0x1f5f   :  { %8536 = vrsqrt.f32 %v5312_v47  ;;  %v5311_v50 = vmul.f32 0.03125, %v5309_v49 }
0x1f61   :  { %v5313_v51 = vadd.f32 1e-05, %v5311_v50 }
0x1f63   :  { %8538 = vrsqrt.f32 %v5313_v51 }
0x1f69   :  { %v8537_v52 = vpop.eup %8536 }
0x1f6a   :  { %v5316_v53 = vmul.f32 %v8537_v52, %v5300_v32 }
0x1f6c   :  { %v5324_v44 = vmul.f32 %v7410_v54, %v5316_v53 }
0x1f6d   :  { %v8539_v57 = vpop.eup %8538 }
0x1f6e   :  { %v5317_v55 = vmul.f32 %v8539_v57, %v5301_v31  ;;  %v9843_v58 = vadd.f32 %v7411_v56, %v5324_v44 }
0x1f70   :  { %v5325_v62 = vmul.f32 %v7410_v54, %v5317_v55  ;;  %8091 = vmatprep.mubr.msk.f32.mxu1 %vm214_vm0, %v9843_v58 }
0x1f72   :  { %v9847_v63 = vadd.f32 %v7411_v56, %v5325_v62 }
0x1f74   :  { %8092 = vmatmul.mubr.msk.f32.vlgmr.msra.gmra.mrb[68].mxu1 %vm214_vm0, %v9847_v63 }
0x1f75   :  { %8107 = vmatprep.mubr.msk.f32.mxu1 %vm8832_vm1, %v8831_v8  ;;  %8106 = vmatpush3.xpose.msk.msra.mxu1 %vm305_vm2, %v5508_v6 }
0x1f76   :  { %8110 = vmatprep.subr.mxu1 %v8831_v8 }
0x1f89   :  { %v5525_v0 = vpop.permute.xlu1 %5524 }
0x1f8d   :  { %v5527_v12 = vpop.permute.xlu1 %5526 }
0x1f8e   :  { %8116 = vmatpush3.xpose.msk.msra.mxu0 %vm305_vm2, %v5527_v12 }
0x1f8f   :  { %8125 = vmatprep.subr.mxu0 %v8831_v8 }
0x1f91   :  { %v5529_v15 = vpop.permute.xlu1 %5528 }
0x2047   :  { %v8093_v10 = vpop.f32.mrb[68].mxu1 }
0x2048   :  { %v9868_v9 = vadd.f32 %v8093_v10, %v7417_v11  ;;  %v5419_v13 = vpop.f32.mrb[69].mxu1 }
0x2049   :  { %v5420_v14 = vadd.f32 %v7417_v11, %v5419_v13 }
0x204b   :  { %5521 = vrot.lane.b32.xlu1 %v5420_v14, %s8833_s30  ;;  %5517 = vrot.lane.b32.xlu0 %v5420_v14, %s8834_s14 }
0x204c   :  { %8108 = vmatmul.mubr.msk.f32.vlgmr.msra.gmra.mrb[70].mxu1 %vm305_vm2, %v5420_v14 }
0x204d   :  { %8111 = vmatpush3.xpose.msk.msra.mxu1 %vm305_vm2, %v5525_v0  ;;  %8112 = vmatprep.mubr.msk.f32.mxu1 %vm8832_vm1, %v8831_v8 }
0x204e   :  { %8120 = vmatprep.subr.mxu1 %v8831_v8 }
0x204f   :  { %5874 = vrot.lane.b32.xlu1 %v5508_v6, %s8835_s17  ;;  %5519 = vrot.lane.b32.xlu0 %v5420_v14, %s8836_s23 }
0x20bd   :  { %v5522_v16 = vpop.permute.xlu1 %5521  ;;  %v5518_v17 = vpop.permute.xlu0 %5517 }
0x20be   :  { %8113 = vmatmul.mubr.msk.f32.vlgmr.msra.gmra.mrb[72].mxu1 %vm305_vm2, %v5518_v17 }
0x20bf   :  { %8121 = vmatpush3.xpose.msk.msra.mxu1 %vm305_vm2, %v5529_v15  ;;  %8122 = vmatprep.mubr.msk.f32.mxu1 %vm8832_vm1, %v8831_v8 }
0x20c0   :  { %8130 = vmatprep.subr.mxu1 %v8831_v8 }
0x20c1   :  { %v5875_v7 = vpop.permute.xlu1 %5874  ;;  %v5520_v19 = vpop.permute.xlu0 %5519 }
0x20c2   :  { %8118 = vmatmul.mubr.msk.f32.vlgmr.msra.gmra.mrb[48].mxu0 %vm305_vm2, %v5520_v19  ;;  %8123 = vmatmul.mubr.msk.f32.vlgmr.msra.gmra.mrb[74].mxu1 %vm305_vm2, %v5522_v16 }
0x20c3   :  { %8126 = vmatpush3.msra.mxu0 %v5875_v7  ;;  %8127 = vmatprep.mubr.msk.f32.mxu0 %vm8832_vm1, %v8831_v8 }
0x20c4   :  { %8135 = vmatprep.subr.mxu0 %v8831_v8  ;;  %8132 = vmatprep.mubr.msk.f32.mxu1 %vm8832_vm1, %v8831_v8 }
0x211f   :  { %v5600_v20 = vpop.f32.mrb[70].mxu1 }
0x2120   :  { %v5826_v21 = vmul.f32 0.35355338, %v5600_v20  ;;  %v8109_v22 = vpop.f32.mrb[71].mxu1 }
0x2122   :  { %v5830_v59 = vsel %vm305_vm2, %v5826_v21, -inf }
0x2123   :  { %5831 = vmax.xlane.f32.xlu0 %v5830_v59 }
0x2191   :  { %v5674_v23 = vpop.f32.mrb[72].mxu1 }
0x2192   :  { %v5827_v61 = vmul.f32 0.35355338, %v5674_v23  ;;  %v8114_v26 = vpop.f32.mrb[73].mxu1 }
0x2194   :  { %v5833_v25 = vsel %vm305_vm2, %v5827_v61, -inf }
0x2195   :  { %v5748_v27 = vpop.f32.mrb[48].mxu0  ;;  %5834 = vmax.xlane.f32.xlu1 %v5833_v25  ;;  %v5822_v33 = vpop.f32.mrb[74].mxu1 }
0x2196   :  { %v5828_v60 = vmul.f32 0.35355338, %v5748_v27  ;;  %v8119_v31 = vpop.f32.mrb[49].mxu0  ;;  %v8124_v32 = vpop.f32.mrb[75].mxu1  ;;  %v5829_v34 = vmul.f32 0.35355338, %v5822_v33 }
0x2198   :  { %v5836_v35 = vsel %vm305_vm2, %v5828_v60, -inf  ;;  %v5839_v36 = vsel %vm305_vm2, %v5829_v34, -inf }
0x2199   :  { %5837 = vmax.xlane.f32.xlu0 %v5836_v35 }
0x219d   :  { %5840 = vmax.xlane.f32.xlu0 %v5839_v36 }
0x21a6   :  { %6026 = vrot.lane.b32.xlu1 %v5527_v12, %s8835_s17 }
0x21aa   :  { %6102 = vrot.lane.b32.xlu1 %v5529_v15, %s8835_s17 }
0x21b0   :  { %v5832_v30 = vpop.xlane.xlu0 %5831 }
0x21b1   :  { %v5842_v28 = vsub.f32 %v5826_v21, %v5832_v30 }
0x21b3   :  { %5950 = vrot.lane.b32.xlu0 %v5525_v0, %s8835_s17  ;;  %v5846_v37 = vmul.f32 1.442695, %v5842_v28 }
0x21b5   :  { %8540 = vpow2.f32 %v5846_v37 }
0x21bf   :  { %v8541_v48 = vpop.eup %8540 }
0x21c0   :  { %v5854_v38 = vsel %vm305_vm2, %v8541_v48, 0.0 }
0x21ce   :  { %5855 = vadd.xlane.f32.xlu1 %v5854_v38 }
0x21df   :  { %6194 = vrot.lane.b32.xlu1 %v9868_v9, %s8834_s14 }
0x2222   :  { %v5835_v39 = vpop.xlane.xlu1 %5834 }
0x2223   :  { %v5843_v18 = vsub.f32 %v5827_v61, %v5835_v39 }
0x2225   :  { %v5848_v29 = vmul.f32 1.442695, %v5843_v18 }
0x2226   :  { %v5838_v5 = vpop.xlane.xlu0 %5837  ;;  %v6027_v49 = vpop.permute.xlu1 %6026 }
0x2227   :  { %8542 = vpow2.f32 %v5848_v29  ;;  %v5844_v40 = vsub.f32 %v5828_v60, %v5838_v5 }
0x2229   :  { %v5850_v41 = vmul.f32 1.442695, %v5844_v40 }
0x222a   :  { %v5841_v45 = vpop.xlane.xlu0 %5840  ;;  %v6103_v52 = vpop.permute.xlu1 %6102 }
0x222b   :  { %8544 = vpow2.f32 %v5850_v41  ;;  %v5845_v50 = vsub.f32 %v5829_v34, %v5841_v45 }
0x222d   :  { %v5852_v51 = vmul.f32 1.442695, %v5845_v50 }
0x222e   :  { %v5951_v24 = vpop.permute.xlu0 %5950 }
0x222f   :  { %8131 = vmatpush3.msra.mxu1 %v5951_v24  ;;  %8546 = vpow2.f32 %v5852_v51 }
0x2230   :  { %8140 = vmatprep.subr.mxu1 %v8831_v8 }
0x2231   :  { %v8543_v43 = vpop.eup %8542 }
0x2232   :  { %v5857_v42 = vsel %vm305_vm2, %v8543_v43, 0.0 }
0x2233   :  { %5858 = vadd.xlane.f32.xlu0 %v5857_v42 }
0x2235   :  { %v8545_v46 = vpop.eup %8544 }
0x2236   :  { %v5860_v47 = vsel %vm305_vm2, %v8545_v46, 0.0 }
0x2237   :  { %5861 = vadd.xlane.f32.xlu1 %v5860_v47 }
0x2239   :  { %v8547_v53 = vpop.eup %8546 }
0x223a   :  { %v5863_v57 = vsel %vm305_vm2, %v8547_v53, 0.0 }
0x2248   :  { %6205 = vrot.lane.b32.xlu1 %v9856_v3, %s8833_s30 }
0x2249   :  { %6201 = vrot.lane.b32.xlu0 %v9856_v3, %s8834_s14 }
0x224c   :  { %6198 = vrot.lane.b32.xlu1 %v9868_v9, %s8833_s30 }
0x225b   :  { %v5856_v54 = vpop.xlane.xlu1 %5855 }
0x225c   :  { %8548 = vrcp.f32 %v5856_v54 }
0x225f   :  { %v6195_v55 = vpop.permute.xlu1 %6194 }
0x2266   :  { %v8549_v56 = vpop.eup %8548 }
0x2267   :  { %v5867_v44 = vmul.f32 %v8549_v56, %v8541_v48 }
0x2268   :  { %5864 = vadd.xlane.f32.xlu0 %v5863_v57 }
0x2269   :  { %8128 = vmatmul.mubr.msk.f32.vlgmr.msra.gmra.mrb[50].mxu0 %vm305_vm2, %v5867_v44 }
0x226a   :  { %8136 = vmatpush3.msra.mxu0 %v6027_v49  ;;  %8137 = vmatprep.mubr.msk.f32.mxu0 %vm8832_vm1, %v8831_v8 }
0x226b   :  { %8145 = vmatprep.subr.mxu0 %v8831_v8 }
0x227e   :  { %6203 = vrot.lane.b32.xlu0 %v9856_v3, %s8836_s23 }
0x2282   :  { %6196 = vrot.lane.b32.xlu0 %v9868_v9, %s8836_s23 }
0x22c0   :  { %v5859_v62 = vpop.xlane.xlu0 %5858 }
0x22c1   :  { %8550 = vrcp.f32 %v5859_v62 }
0x22c4   :  { %v5862_v1 = vpop.xlane.xlu1 %5861  ;;  %v9933_v12 = vpop.permute.xlu0 %6201 }
0x22c5   :  { %8552 = vrcp.f32 %v5862_v1 }
0x22c8   :  { %v9944_v15 = vpop.permute.xlu1 %6205 }
0x22cb   :  { %v8551_v2 = vpop.eup %8550 }
0x22cc   :  { %v5869_v4 = vmul.f32 %v8551_v2, %v8543_v43  ;;  %v6199_v16 = vpop.permute.xlu1 %6198 }
0x22ce   :  { %8133 = vmatmul.mubr.msk.f32.vlgmr.msra.gmra.mrb[76].mxu1 %vm305_vm2, %v5869_v4 }
0x22cf   :  { %v8553_v6 = vpop.eup %8552  ;;  %8141 = vmatpush3.msra.mxu1 %v6103_v52  ;;  %8142 = vmatprep.mubr.msk.f32.mxu1 %vm8832_vm1, %v8831_v8 }
0x22d0   :  { %v5871_v0 = vmul.f32 %v8553_v6, %v8545_v46  ;;  %8150 = vmatprep.subr.mxu1 %v8831_v8 }
0x22d2   :  { %8138 = vmatmul.mubr.msk.f32.vlgmr.msra.gmra.mrb[52].mxu0 %vm305_vm2, %v5871_v0 }
0x22d3   :  { %8146 = vmatpush3.xpose.msk.msra.mxu0 %vm305_vm2, %v9856_v3  ;;  %8147 = vmatprep.mubr.msk.f32.mxu0 %vm8832_vm1, %v8831_v8 }
0x22d4   :  { %8155 = vmatprep.subr.mxu0 %v8831_v8 }
0x22d6   :  { %8148 = vmatmul.mubr.msk.f32.vlgmr.msra.gmra.mrb[54].mxu0 %vm305_vm2, %v9868_v9 }
0x22d7   :  { %8157 = vmatprep.mubr.msk.f32.mxu0 %vm8832_vm1, %v8831_v8 }
0x22f5   :  { %v5865_v11 = vpop.xlane.xlu0 %5864 }
0x22f6   :  { %8554 = vrcp.f32 %v5865_v11 }
0x22f9   :  { %v9935_v10 = vpop.permute.xlu0 %6203 }
0x22fa   :  { %8156 = vmatpush3.xpose.msk.msra.mxu0 %vm305_vm2, %v9935_v10 }
0x22fb   :  { %8165 = vmatprep.subr.mxu0 %v8831_v8 }
0x22fd   :  { %v6197_v13 = vpop.permute.xlu0 %6196 }
0x22fe   :  { %8158 = vmatmul.mubr.msk.f32.vlgmr.msra.gmra.mrb[56].mxu0 %vm305_vm2, %v6197_v13 }
0x22ff   :  { %8167 = vmatprep.mubr.msk.f32.mxu0 %vm8832_vm1, %v8831_v8 }
0x2300   :  { %v8555_v9 = vpop.eup %8554 }
0x2301   :  { %v5873_v14 = vmul.f32 %v8555_v9, %v8547_v53 }
0x2303   :  { %8143 = vmatmul.mubr.msk.f32.vlgmr.msra.gmra.mrb[78].mxu1 %vm305_vm2, %v5873_v14 }
0x2304   :  { %8151 = vmatpush3.xpose.msk.msra.mxu1 %vm305_vm2, %v9933_v12  ;;  %8152 = vmatprep.mubr.msk.f32.mxu1 %vm8832_vm1, %v8831_v8 }
0x2305   :  { %8160 = vmatprep.subr.mxu1 %v8831_v8 }
0x2307   :  { %8153 = vmatmul.mubr.msk.f32.vlgmr.msra.gmra.mrb[80].mxu1 %vm305_vm2, %v6195_v55 }
0x2308   :  { %8161 = vmatpush3.xpose.msk.msra.mxu1 %vm305_vm2, %v9944_v15  ;;  %8162 = vmatprep.mubr.msk.f32.mxu1 %vm8832_vm1, %v8831_v8 }
0x2309   :  { %8170 = vmatprep.subr.mxu1 %v8831_v8 }
0x230b   :  { %8163 = vmatmul.mubr.msk.f32.vlgmr.msra.gmra.mrb[82].mxu1 %vm305_vm2, %v6199_v16 }
0x230c   :  { %8172 = vmatprep.mubr.msk.f32.mxu1 %vm8832_vm1, %v8831_v8 }
0x233c   :  { %v9960_v17 = vpop.f32.mrb[50].mxu0 }
0x233d   :  { %v8129_v7 = vpop.f32.mrb[51].mxu0 }
0x23a1   :  { %v6022_v19 = vpop.f32.mrb[76].mxu1 }
0x23a2   :  { %v8134_v20 = vpop.f32.mrb[77].mxu1 }
0x23a5   :  { %v6098_v21 = vpop.f32.mrb[52].mxu0 }
0x23a6   :  { %v8139_v22 = vpop.f32.mrb[53].mxu0 }
0x23a9   :  { %v6277_v59 = vpop.f32.mrb[54].mxu0 }
0x23aa   :  { %v6503_v23 = vmul.f32 0.35355338, %v6277_v59  ;;  %v8149_v61 = vpop.f32.mrb[55].mxu0  ;;  %v7453_v59 = vld [vmem:[%s10115_s12 + $0x28] sm:$0xff] }
0x23ac   :  { %v6507_v26 = vsel %vm305_vm2, %v6503_v23, -inf }
0x23ad   :  { %6508 = vmax.xlane.f32.xlu0 %v6507_v26 }
0x23d1   :  { %v6425_v25 = vpop.f32.mrb[56].mxu0 }
0x23d2   :  { %v6505_v27 = vmul.f32 0.35355338, %v6425_v25  ;;  %v8159_v33 = vpop.f32.mrb[57].mxu0  ;;  %v7455_v25 = vld [vmem:[%s10115_s12 + $0x38] sm:$0xff] }
0x23d4   :  { %v6513_v60 = vsel %vm305_vm2, %v6505_v27, -inf }
0x23d5   :  { %6514 = vmax.xlane.f32.xlu0 %v6513_v60 }
0x23d6   :  { %v6174_v31 = vpop.f32.mrb[78].mxu1 }
0x23d7   :  { %v8144_v32 = vpop.f32.mrb[79].mxu1 }
0x23da   :  { %v6351_v34 = vpop.f32.mrb[80].mxu1 }
0x23db   :  { %v6504_v35 = vmul.f32 0.35355338, %v6351_v34  ;;  %v8154_v36 = vpop.f32.mrb[81].mxu1 }
0x23dd   :  { %v6510_v30 = vsel %vm305_vm2, %v6504_v35, -inf }
0x23de   :  { %6511 = vmax.xlane.f32.xlu1 %v6510_v30  ;;  %v6499_v28 = vpop.f32.mrb[82].mxu1 }
0x23df   :  { %v6506_v37 = vmul.f32 0.35355338, %v6499_v28  ;;  %v8164_v48 = vpop.f32.mrb[83].mxu1 }
0x23e1   :  { %v6516_v38 = vsel %vm305_vm2, %v6506_v37, -inf }
0x23e2   :  { %6517 = vmax.xlane.f32.xlu0 %v6516_v38 }
0x23ef   :  { %6551 = vrot.lane.b32.xlu1 %v9856_v3, %s8835_s17 }
0x243a   :  { %v6509_v39 = vpop.xlane.xlu0 %6508 }
0x243b   :  { %v6519_v18 = vsub.f32 %v6503_v23, %v6509_v39  ;;  %v7457_v39 = vld [vmem:[%s10116_s13 + $0x1] ss:$0 sm:$0xff] }
0x243d   :  { %v6523_v29 = vmul.f32 1.442695, %v6519_v18 }
0x243f   :  { %8556 = vpow2.f32 %v6523_v29 }
0x2449   :  { %v8557_v5 = vpop.eup %8556 }
0x244a   :  { %v6531_v40 = vsel %vm305_vm2, %v8557_v5, 0.0 }
0x244b   :  { %6532 = vadd.xlane.f32.xlu1 %v6531_v40 }
0x2462   :  { %v6515_v41 = vpop.xlane.xlu0 %6514 }
0x2463   :  { %v6521_v45 = vsub.f32 %v6505_v27, %v6515_v41 }
0x2465   :  { %v6527_v24 = vmul.f32 1.442695, %v6521_v45 }
0x2467   :  { %8558 = vpow2.f32 %v6527_v24 }
0x246b   :  { %v6512_v43 = vpop.xlane.xlu1 %6511 }
0x246c   :  { %v6520_v42 = vsub.f32 %v6504_v35, %v6512_v43 }
0x246e   :  { %v6525_v46 = vmul.f32 1.442695, %v6520_v42 }
0x246f   :  { %v6552_v47 = vpop.permute.xlu1 %6551  ;;  %v6518_v49 = vpop.xlane.xlu0 %6517 }
0x2470   :  { %8560 = vpow2.f32 %v6525_v46  ;;  %v6522_v50 = vsub.f32 %v6506_v37, %v6518_v49  ;;  %8166 = vmatpush3.msra.mxu0 %v6552_v47 }
0x2471   :  { %v8559_v3 = vpop.eup %8558  ;;  %8175 = vmatprep.subr.mxu0 %v8831_v8 }
0x2472   :  { %v6529_v51 = vmul.f32 1.442695, %v6522_v50  ;;  %v6537_v52 = vsel %vm305_vm2, %v8559_v3, 0.0 }
0x2473   :  { %6538 = vadd.xlane.f32.xlu1 %v6537_v52 }
0x2474   :  { %8562 = vpow2.f32 %v6529_v51 }
0x247a   :  { %v8561_v54 = vpop.eup %8560 }
0x247b   :  { %v6534_v53 = vsel %vm305_vm2, %v8561_v54, 0.0 }
0x247c   :  { %6535 = vadd.xlane.f32.xlu0 %v6534_v53  ;;  %v7014_v53 = vld [vmem:[#allocation10 + $0x28] sm:$0xff] }
0x247e   :  { %v8563_v56 = vpop.eup %8562 }
0x247f   :  { %v6540_v44 = vsel %vm305_vm2, %v8563_v56, 0.0 }
0x2480   :  { %6541 = vadd.xlane.f32.xlu0 %v6540_v44  ;;  %v7015_v44 = vld [vmem:[#allocation10 + $0x30] sm:$0xff] }
0x2484   :  { %6703 = vrot.lane.b32.xlu1 %v9935_v10, %s8835_s17 }
0x2488   :  { %6779 = vrot.lane.b32.xlu1 %v9944_v15, %s8835_s17 }
0x248c   :  { %6183 = vrot.lane.b32.xlu1 %v6098_v21, %s8823_s4 }
0x2490   :  { %6187 = vrot.lane.b32.xlu1 %v6174_v31, %s8838_s3 }
0x2496   :  { %6627 = vrot.lane.b32.xlu0 %v9933_v12, %s8835_s17 }
0x249a   :  { %6179 = vrot.lane.b32.xlu0 %v6022_v19, %s8820_s26 }
0x24d8   :  { %v6533_v57 = vpop.xlane.xlu1 %6532 }
0x24d9   :  { %8564 = vrcp.f32 %v6533_v57  ;;  %v7016_v57 = vld [vmem:[#allocation10 + $0x38] sm:$0xff] }
0x24e3   :  { %v8565_v55 = vpop.eup %8564 }
0x24e4   :  { %v6544_v62 = vmul.f32 %v8565_v55, %v8557_v5  ;;  %v8366_v55 = vpack.c.bf16 %v7016_v57, %v7015_v44 }
0x24e6   :  { %8168 = vmatmul.mubr.msk.f32.vlgmr.msra.gmra.mrb[58].mxu0 %vm305_vm2, %v6544_v62  ;;  %v7465_v62 = vld [vmem:[%s10154_s0 + $0x80] sm:$0xff] }
0x24e7   :  { %8177 = vmatprep.mubr.msk.f32.mxu0 %vm8832_vm1, %v8831_v8 }
0x2500   :  { %v6539_v1 = vpop.xlane.xlu1 %6538 }
0x2501   :  { %8566 = vrcp.f32 %v6539_v1  ;;  %v7466_v1 = vld [vmem:[%s10154_s0 + $0x88] sm:$0xff] }
0x2504   :  { %v6704_v2 = vpop.permute.xlu1 %6703 }
0x2505   :  { %8176 = vmatpush3.msra.mxu0 %v6704_v2  ;;  %v8370_v2 = vpack.c.bf16 %v7466_v1, %v7465_v62 }
0x2508   :  { %v6780_v0 = vpop.permute.xlu1 %6779 }
0x2509   :  { %v6536_v4 = vpop.xlane.xlu0 %6535 }
0x250a   :  { %8568 = vrcp.f32 %v6536_v4 }
0x250b   :  { %v8567_v6 = vpop.eup %8566 }
0x250c   :  { %v6548_v12 = vmul.f32 %v8567_v6, %v8559_v3  ;;  %v6184_v10 = vpop.permute.xlu1 %6183 }
0x250d   :  { %v6542_v11 = vpop.xlane.xlu0 %6541 }
0x250e   :  { %8570 = vrcp.f32 %v6542_v11  ;;  %8178 = vmatmul.mubr.msk.f32.vlgmr.msra.gmra.mrb[60].mxu0 %vm305_vm2, %v6548_v12 }
0x2510   :  { %v6188_v7 = vpop.permute.xlu1 %6187 }
0x2511   :  { %v6628_v13 = vpop.permute.xlu0 %6627 }
0x2512   :  { %8171 = vmatpush3.msra.mxu1 %v6628_v13 }
0x2513   :  { %8180 = vmatprep.subr.mxu1 %v8831_v8 }
0x2514   :  { %v8569_v9 = vpop.eup %8568 }
0x2515   :  { %v6546_v14 = vmul.f32 %v8569_v9, %v8561_v54  ;;  %v6180_v15 = vpop.permute.xlu0 %6179  ;;  %v7460_v9 = vld [vmem:[#allocation7 + $0x1] ss:$0 sm:$0xff] }
0x2516   :  { %v6190_v16 = vsel %vm305_vm2, %v9960_v17, %v6180_v15  ;;  %v7452_v17 = vld [vmem:[%s10115_s12 + $0x20] sm:$0xff] }
0x2517   :  { %v6191_v19 = vsel %vm979_vm4, %v6190_v16, %v6184_v10  ;;  %8173 = vmatmul.mubr.msk.f32.vlgmr.msra.gmra.mrb[84].mxu1 %vm305_vm2, %v6546_v14  ;;  %v8354_v23 = vpack.c.bf16 %v7453_v59, %v7452_v17  ;;  %v7461_v15 = vld [vmem:[#allocation8 + $0x1] ss:$0 sm:$0xff]  ;;  %v7467_v17 = vld [vmem:[%s10154_s0 + $0x90] sm:$0xff]  ;;  %v7468_v59 = vld [vmem:[%s10154_s0 + $0x98] sm:$0xff] }
0x2518   :  { %v8571_v20 = vpop.eup %8570  ;;  %8181 = vmatpush3.msra.mxu1 %v6780_v0  ;;  %v6192_v21 = vsel %vm981_vm5, %v6191_v19, %v6188_v7  ;;  %8182 = vmatprep.mubr.msk.f32.mxu1 %vm8832_vm1, %v8831_v8  ;;  %v7454_v8 = vld [vmem:[%s10115_s12 + $0x30] sm:$0xff] }
0x2519   :  { %v6550_v22 = vmul.f32 %v8571_v20, %v8563_v56  ;;  %8193 = vmatprep.mubr.msk.f32.mxu0 %vm214_vm0, %v6192_v21  ;;  %8355 = vmatprep.subr.bf16.mxu0 %v8354_v23  ;;  %v8358_v27 = vpack.c.bf16 %v7455_v25, %v7454_v8  ;;  %v7471_v25 = vld [vmem:[%s10154_s0 + $0xb0] sm:$0xff] }
0x251a   :  { %8357 = vmatpush3.bf16.msra.mxu0 %v8354_v23  ;;  %v8374_v23 = vpack.c.bf16 %v7468_v59, %v7467_v17 }
0x251b   :  { %8183 = vmatmul.mubr.msk.f32.vlgmr.msra.gmra.mrb[86].mxu1 %vm305_vm2, %v6550_v22  ;;  %8359 = vmatprep.subr.bf16.mxu0 %v8358_v27 }
0x251e   :  { %8361 = vmatpush3.bf16.msra.mxu0 %v8358_v27  ;;  %v7472_v27 = vld [vmem:[%s10154_s0 + $0xb8] sm:$0xff] }
0x251f   :  { %8371 = vmatprep.subr.bf16.mxu0 %v8370_v2 }
0x25b9   :  { %v6623_v61 = vpop.f32.mrb[58].mxu0 }
0x25ba   :  { %v8169_v26 = vpop.f32.mrb[59].mxu0 }
0x25bb   :  { %v7470_v26 = vld [vmem:[%s10154_s0 + $0xa8] sm:$0xff] }
0x25e1   :  { %v6775_v33 = vpop.f32.mrb[60].mxu0 }
0x25e2   :  { %v8179_v60 = vpop.f32.mrb[61].mxu0 }
0x25e3   :  { %v7473_v60 = vld [vmem:[%s10154_s0 + $0xc0] sm:$0xff] }
0x25ea   :  { %v6699_v31 = vpop.f32.mrb[84].mxu1 }
0x25eb   :  { %6856 = vrot.lane.b32.xlu0 %v6699_v31, %s8820_s26  ;;  %v8174_v32 = vpop.f32.mrb[85].mxu1  ;;  %v7474_v31 = vld [vmem:[%s10154_s0 + $0xc8] sm:$0xff] }
0x25ec   :  { %v8386_v32 = vpack.c.bf16 %v7474_v31, %v7473_v60  ;;  %v7483_v31 = vld [vmem:[#allocation16 + $0x1] ss:$0 sm:$0xff] }
0x25ee   :  { %v6851_v34 = vpop.f32.mrb[86].mxu1 }
0x25ef   :  { %6860 = vrot.lane.b32.xlu0 %v6775_v33, %s8823_s4  ;;  %6864 = vrot.lane.b32.xlu1 %v6851_v34, %s8838_s3  ;;  %v8184_v35 = vpop.f32.mrb[87].mxu1  ;;  %v8382_v33 = vpack.c.bf16 %v7472_v27, %v7471_v25  ;;  %v7475_v34 = vld [vmem:[%s10154_s0 + $0xd0] sm:$0xff]  ;;  %v7482_v25 = vld [vmem:[#allocation14 + $0x1] ss:$0 sm:$0xff] }
0x25f0   :  { %v7476_v35 = vld [vmem:[%s10154_s0 + $0xd8] sm:$0xff] }
0x265d   :  { %v6857_v36 = vpop.permute.xlu0 %6856 }
0x265e   :  { %v6867_v30 = vsel %vm305_vm2, %v6623_v61, %v6857_v36  ;;  %v7469_v61 = vld [vmem:[%s10154_s0 + $0xa0] sm:$0xff]  ;;  %v8390_v36 = vpack.c.bf16 %v7476_v35, %v7475_v34 }
0x265f   :  { %v8378_v8 = vpack.c.bf16 %v7470_v26, %v7469_v61 }
0x2661   :  { %v6861_v28 = vpop.permute.xlu0 %6860  ;;  %v6865_v37 = vpop.permute.xlu1 %6864 }
0x2662   :  { %v6868_v48 = vsel %vm979_vm4, %v6867_v30, %v6861_v28  ;;  %v7477_v30 = vld [vmem:[%s10154_s0 + $0xe0] sm:$0xff]  ;;  %v7478_v28 = vld [vmem:[%s10154_s0 + $0xe8] sm:$0xff] }
0x2663   :  { %v6869_v38 = vsel %vm981_vm5, %v6868_v48, %v6865_v37  ;;  %v8394_v37 = vpack.c.bf16 %v7478_v28, %v7477_v30  ;;  %v7479_v48 = vld [vmem:[%s10154_s0 + $0xf0] sm:$0xff] }
0x2664   :  { %8194 = vmatmul.mubr.msk.f32.vlgmr.msra.gmra.mrb[62].mxu0 %vm214_vm0, %v6869_v38  ;;  %v7480_v38 = vld [vmem:[%s10154_s0 + $0xf8] sm:$0xff]  ;;  %s8839_s0 = smov [#allocation17]  }
0x2665   :  { %8373 = vmatpush3.bf16.msra.mxu0 %v8370_v2  ;;  %s7279_s2 = sshll.u32 %s8839_s0, 4  ;;  %s7280_s2 = int_to_ptr.vmem [resolvable:$true] %s7279_s2 }
0x2666   :  { %8375 = vmatprep.subr.bf16.mxu0 %v8374_v23  ;;  %s8784_s18 = scalar_lea.vmem %s7280_s2, 256  ;;  %p8789_p3 = scmp.lt.s32.totalorder %s7280_s2, %s7280_s2 }
0x2667   :  { %p8785_p2 = scmp.ne.s32.totalorder %s7280_s2, %s8784_s18  ;;  %p8790_p4 = scmp.lt.s32.totalorder %s8784_s18, %s8784_s18 }
0x2669   :  { %8377 = vmatpush3.bf16.msra.mxu0 %v8374_v23  ;;  %p8791_p5 = por %p8790_p4, %p8789_p3 }
0x266a   :  { %8379 = vmatprep.subr.bf16.mxu0 %v8378_v8 }
0x266b   :  { %p8792_p6 = pnand %p8791_p5, %p8785_p2 }
0x266d   :  { %8381 = vmatpush3.bf16.msra.mxu0 %v8378_v8 }
0x266e   :  { %8383 = vmatprep.subr.bf16.mxu0 %v8382_v33 }
0x2671   :  { %8385 = vmatpush3.bf16.msra.mxu0 %v8382_v33 }
0x2672   :  { %8387 = vmatprep.subr.bf16.mxu0 %v8386_v32 }
0x2675   :  { %8389 = vmatpush3.bf16.msra.mxu0 %v8386_v32 }
0x2676   :  { %8391 = vmatprep.subr.bf16.mxu0 %v8390_v36 }
0x2679   :  { %8393 = vmatpush3.bf16.msra.mxu0 %v8390_v36 }
0x267a   :  { %8395 = vmatprep.subr.bf16.mxu0 %v8394_v37 }
0x267d   :  { %8397 = vmatpush3.bf16.msra.mxu0 %v8394_v37 }
0x2737   :  { %v8195_v18 = vpop.f32.mrb[62].mxu0 }
0x2738   :  { %v6961_v29 = vadd.f32 %v8195_v18, %v7457_v39  ;;  %v6955_v5 = vpop.f32.mrb[63].mxu0  ;;  %v7462_v18 = vld [vmem:[#allocation11 + $0x1] ss:$0 sm:$0xff] }
0x2739   :  { %v6956_v40 = vadd.f32 %v7457_v39, %v6955_v5  ;;  %v8398_v39 = vpack.c.bf16 %v7480_v38, %v7479_v48 }
0x273a   :  { %v6965_v41 = vadd.f32 %v6961_v29, %v9847_v63 }
0x273b   :  { %v6964_v45 = vadd.f32 %v6956_v40, %v9843_v58  ;;  %v7013_v58 = vld [vmem:[#allocation10 + $0x20] sm:$0xff]  ;;  %8399 = vmatprep.subr.bf16.mxu0 %v8398_v39 }
0x273c   :  { %v6973_v24 = vsel %vm214_vm0, %v6965_v41, 0.0  ;;  %v8362_v56 = vpack.c.bf16 %v7014_v53, %v7013_v58  ;;  %8401 = vmatpush3.bf16.msra.mxu0 %v8398_v39 }
0x273d   :  { %6974 = vadd.xlane.f32.xlu1 %v6973_v24  ;;  %v6970_v43 = vsel %vm214_vm0, %v6964_v45, 0.0 }
0x273e   :  { %6971 = vadd.xlane.f32.xlu0 %v6970_v43  ;;  %8363 = vmatprep.subr.bf16.mxu1 %v8362_v56 }
0x273f   :  { %8365 = vmatpush3.bf16.msra.mxu1 %v8362_v56 }
0x2740   :  { %8367 = vmatprep.subr.bf16.mxu1 %v8366_v55 }
0x2743   :  { %8369 = vmatpush3.bf16.msra.mxu1 %v8366_v55  ;;  %v7481_v55 = vld [vmem:[#allocation13 + $0x1] ss:$0 sm:$0xff] }
0x27ca   :  { %v6975_v42 = vpop.xlane.xlu1 %6974 }
0x27cb   :  { %v6977_v46 = vmul.f32 0.03125, %v6975_v42  ;;  %v6972_v47 = vpop.xlane.xlu0 %6971 }
0x27cc   :  { %v6976_v49 = vmul.f32 0.03125, %v6972_v47 }
0x27cd   :  { %v6979_v50 = vsub.f32 %v6965_v41, %v6977_v46 }
0x27ce   :  { %v6978_v3 = vsub.f32 %v6964_v45, %v6976_v49 }
0x27cf   :  { %v6981_v54 = vmul.f32 %v6979_v50, %v6979_v50 }
0x27d0   :  { %v6980_v51 = vmul.f32 %v6978_v3, %v6978_v3 }
0x27d1   :  { %v6985_v63 = vsel %vm214_vm0, %v6981_v54, 0.0 }
0x27d2   :  { %v6982_v52 = vsel %vm214_vm0, %v6980_v51, 0.0 }
0x27d3   :  { %6983 = vadd.xlane.f32.xlu0 %v6982_v52 }
0x27d7   :  { %6986 = vadd.xlane.f32.xlu0 %v6985_v63 }
0x2860   :  { %v6984_v4 = vpop.xlane.xlu0 %6983 }
0x2861   :  { %v6988_v6 = vmul.f32 0.03125, %v6984_v4 }
0x2863   :  { %v6990_v0 = vadd.f32 1e-05, %v6988_v6 }
0x2864   :  { %v6987_v12 = vpop.xlane.xlu0 %6986 }
0x2865   :  { %8572 = vrsqrt.f32 %v6990_v0  ;;  %v6989_v11 = vmul.f32 0.03125, %v6987_v12 }
0x2867   :  { %v6991_v10 = vadd.f32 1e-05, %v6989_v11 }
0x2869   :  { %8574 = vrsqrt.f32 %v6991_v10 }
0x286f   :  { %v8573_v13 = vpop.eup %8572 }
0x2870   :  { %v6994_v14 = vmul.f32 %v8573_v13, %v6978_v3 }
0x2872   :  { %v7002_v16 = vmul.f32 %v7460_v9, %v6994_v14 }
0x2873   :  { %v8575_v7 = vpop.eup %8574 }
0x2874   :  { %v6995_v19 = vmul.f32 %v8575_v7, %v6979_v50  ;;  %v10030_v20 = vadd.f32 %v7461_v15, %v7002_v16 }
0x2876   :  { %v7003_v21 = vmul.f32 %v7460_v9, %v6995_v19  ;;  %8204 = vmatprep.mubr.msk.f32.mxu1 %vm214_vm0, %v10030_v20 }
0x2878   :  { %v10034_v22 = vadd.f32 %v7461_v15, %v7003_v21 }
0x287a   :  { %8205 = vmatmul.mubr.msk.f32.vlgmr.msra.gmra.mrb[88].mxu1 %vm214_vm0, %v10034_v22 }
0x294d   :  { %v8206_v29 = vpop.f32.mrb[88].mxu1 }
0x294e   :  { %v7103_v5 = vadd.f32 %v8206_v29, %v7462_v18  ;;  %v7097_v40 = vpop.f32.mrb[89].mxu1 }
0x294f   :  { %v7098_v41 = vadd.f32 %v7462_v18, %v7097_v40 }
0x2950   :  { %v7109_v45 = vmul.f32 0.044715, %v7103_v5  ;;  %v7107_v56 = vmul.f32 0.5, %v7103_v5 }
0x2951   :  { %v7108_v24 = vmul.f32 0.044715, %v7098_v41  ;;  %v7106_v58 = vmul.f32 0.5, %v7098_v41 }
0x2952   :  { %v7111_v43 = vmul.f32 %v7109_v45, %v7103_v5 }
0x2953   :  { %v7110_v42 = vmul.f32 %v7108_v24, %v7098_v41 }
0x2954   :  { %v7113_v46 = vmul.f32 %v7111_v43, %v7103_v5 }
0x2955   :  { %v7112_v47 = vmul.f32 %v7110_v42, %v7098_v41 }
0x2956   :  { %v7115_v49 = vadd.f32 %v7113_v46, %v7103_v5 }
0x2957   :  { %v7114_v50 = vadd.f32 %v7112_v47, %v7098_v41 }
0x2958   :  { %v7117_v3 = vmul.f32 0.7978846, %v7115_v49 }
0x2959   :  { %v7116_v51 = vmul.f32 0.7978846, %v7114_v50 }
0x295a   :  { %8576 = vtanh.f32 %v7117_v3 }
0x295b   :  { %8578 = vtanh.f32 %v7116_v51 }
0x2964   :  { %v8577_v52 = vpop.eup %8576 }
0x2965   :  { %v8579_v54 = vpop.eup %8578  ;;  %v7121_v63 = vadd.f32 1.0, %v8577_v52 }
0x2966   :  { %v7120_v53 = vadd.f32 1.0, %v8579_v54 }
0x2967   :  { %v7123_v57 = vmul.f32 %v7121_v63, %v7107_v56 }
0x2968   :  { %v7122_v44 = vmul.f32 %v7120_v53, %v7106_v58 }
0x296a   :  { %8239 = vmatprep.mubr.f32.mxu0 %v7122_v44 }
0x296b   :  { %8240 = vmatmul.mubr.f32.vlgmr.msra.gmra.mrb[64].mxu0 %v7123_v57 }
0x2a3e   :  { %v8241_v62 = vpop.f32.mrb[64].mxu0 }
0x2a3f   :  { %v7221_v1 = vadd.f32 %v8241_v62, %v7481_v55  ;;  %v7215_v2 = vpop.f32.mrb[65].mxu0 }
0x2a40   :  { %v7216_v4 = vadd.f32 %v7481_v55, %v7215_v2 }
0x2a41   :  { %v7225_v6 = vadd.f32 %v7221_v1, %v10034_v22 }
0x2a42   :  { %v7224_v0 = vadd.f32 %v7216_v4, %v10030_v20 }
0x2a43   :  { %v7233_v12 = vsel %vm214_vm0, %v7225_v6, 0.0 }
0x2a44   :  { %7234 = vadd.xlane.f32.xlu0 %v7233_v12  ;;  %v7230_v11 = vsel %vm214_vm0, %v7224_v0, 0.0 }
0x2a45   :  { %7231 = vadd.xlane.f32.xlu1 %v7230_v11 }
0x2ad1   :  { %v7235_v10 = vpop.xlane.xlu0 %7234 }
0x2ad2   :  { %v7237_v13 = vmul.f32 0.03125, %v7235_v10  ;;  %v7232_v9 = vpop.xlane.xlu1 %7231 }
0x2ad3   :  { %v7236_v14 = vmul.f32 0.03125, %v7232_v9 }
0x2ad4   :  { %v7239_v15 = vsub.f32 %v7225_v6, %v7237_v13 }
0x2ad5   :  { %v7238_v16 = vsub.f32 %v7224_v0, %v7236_v14 }
0x2ad6   :  { %v7241_v7 = vmul.f32 %v7239_v15, %v7239_v15 }
0x2ad7   :  { %v7240_v19 = vmul.f32 %v7238_v16, %v7238_v16 }
0x2ad8   :  { %v7245_v21 = vsel %vm214_vm0, %v7241_v7, 0.0 }
0x2ad9   :  { %7246 = vadd.xlane.f32.xlu0 %v7245_v21  ;;  %v7242_v22 = vsel %vm214_vm0, %v7240_v19, 0.0 }
0x2ada   :  { %7243 = vadd.xlane.f32.xlu1 %v7242_v22 }
0x2b66   :  { %v7247_v20 = vpop.xlane.xlu0 %7246 }
0x2b67   :  { %v7249_v17 = vmul.f32 0.03125, %v7247_v20  ;;  %v7244_v59 = vpop.xlane.xlu1 %7243 }
0x2b68   :  { %v7248_v23 = vmul.f32 0.03125, %v7244_v59 }
0x2b69   :  { %v7251_v61 = vadd.f32 1e-05, %v7249_v17 }
0x2b6a   :  { %v7250_v26 = vadd.f32 1e-05, %v7248_v23 }
0x2b6b   :  { %8580 = vrsqrt.f32 %v7251_v61 }
0x2b6c   :  { %8582 = vrsqrt.f32 %v7250_v26 }
0x2b75   :  { %v8581_v8 = vpop.eup %8580 }
0x2b76   :  { %v8583_v27 = vpop.eup %8582  ;;  %v7255_v33 = vmul.f32 %v8581_v8, %v7239_v15 }
0x2b77   :  { %v7254_v60 = vmul.f32 %v8583_v27, %v7238_v16 }
0x2b78   :  { %v7263_v32 = vmul.f32 %v7482_v25, %v7255_v33 }
0x2b79   :  { %v7262_v34 = vmul.f32 %v7482_v25, %v7254_v60 }
0x2b7a   :  { %v7271_v35 = vadd.f32 %v7483_v31, %v7263_v32 }
0x2b7b   :  { %v7270_v36 = vadd.f32 %v7483_v31, %v7262_v34 }
0x2b7c   :  { %7273 = vst.msk [vmem:[#allocation17 + $0x8] sm:$0xff] %vm214_vm0, %v7271_v35 }
0x2b7d   :  { %7272 = vst.msk [vmem:[#allocation17] sm:$0xff] %vm214_vm0, %v7270_v36 }
0x2b7e   :  { %8795 = shalt.err (!%p8792_p6)
}
0x2b7f   :  { %s10155_s10 = sld [smem:[#allocation32_spill]] }
0x2b85   :  { %s8796_s28 = scalar_lea.hbm %s10155_s10, 256 }
0x2b86   :  { %p8797_p7 = scmp.ne.s32.totalorder %s10155_s10, %s8796_s28  ;;  %p8800_p8 = scmp.lt.u32.totalorder %s8796_s28, %s10155_s10 }
0x2b88   :  { %p8802_p9 = pnand %p8800_p8, %p8797_p7 }
0x2b8a   :  { %8805 = shalt.err (!%p8802_p9)
}
0x2b8b   :  { %s10156_s8 = smov 128  }
0x2b8c   :  { %7285 = dma.vmem_to_hbm [thread:$0]  %s7280_s2, 256, %s10155_s10, [#allocation4], %s10156_s8, %s10156_s8, %s8820_s26  }
0x2b8d   :  { %8816 = dma.done.wait [#allocation4], 256  }
0x2b8e   :  { %8817 = vsyncadd [#allocation4], 4294967040 }
0x2b8f   :  { %7289 = vsyncpa [#allocation3], 1 }
0x2b90   :  { %7290 = vsyncpa [#allocation6], 1 }
0x2b91   :  { %7291 = vsyncpa [#allocation9], 1 }
0x2b92   :  { %7292 = vsyncpa [#allocation12], 1 }
0x2b93   :  { %7293 = vsyncpa [#allocation15], 1 }
0x2b94   :  { %7294 = vsyncpa [#allocation4], 1 }

</bundles_post_ra>
